<compile_context>
chip_gen: v6e
topology: v6e:2x2x1
jax: 0.10.0
libtpu: 0.0.40
codegen_flags: <defaults>
</compile_context>

<pallas_src>
import functools
import numpy as np
import jax
import jax.numpy as jnp
from jax.experimental import pallas as pl


# ----------------------------- the fused kernel ------------------------------

def _lenet5_kernel(n,
                   a0_ref, t1e_ref, t1o_ref, chan1_ref, gb1_ref, rf1_ref,
                   t3e_ref, t3o_ref, chan3_ref, gb3_ref, rf3_ref,
                   wh_ref, bh_ref, out_ref):
    f32 = jnp.float32

    def dot(a, b):
        return jnp.dot(a, b, preferred_element_type=f32)

    def conv_bn_pool(src, te_ref, to_ref, chan_ref, gb_ref, rf_ref, rows_in, rows_out):
        # src rows are (batch, width); cols are (in_channel, height).
        # The 5 width taps accumulate on the MXU; the 5 height taps, input-channel mixing
        # and the even/odd HEIGHT-pool selection are all folded into the banded te/to
        # weights (built host-side).  Conv bias is omitted: it cancels in train-mode BN.
        ye = yo = None
        for j in range(5):
            xj = jnp.concatenate(
                [src[b * rows_in + j: b * rows_in + j + rows_out, :] for b in range(n)],
                axis=0)                                                 # (n*rows_out, Kin)
            pe, po = dot(xj, te_ref[j]), dot(xj, to_ref[j])
            ye = pe if ye is None else ye + pe                          # even height cols
            yo = po if yo is None else yo + po                          # odd height cols

        # Train-mode BatchNorm2d: batch stats over the full pre-pool activation
        # (= even ∪ odd height columns).  Row-reduce first, one tiny moment matmul.
        s1 = jnp.sum(ye, axis=0, keepdims=True) + jnp.sum(yo, axis=0, keepdims=True)
        s2 = (jnp.sum(ye * ye, axis=0, keepdims=True)
              + jnp.sum(yo * yo, axis=0, keepdims=True))
        mom = dot(jnp.concatenate([s1, s2], axis=0), chan_ref[...])     # (2, Cout*ph)
        mean = mom[0:1, :]
        var = jnp.maximum(mom[1:2, :] - mean * mean, 0.0)               # clamp cancellation
        gb = gb_ref[...]
        scale = gb[0:1, :] * jax.lax.rsqrt(var + 1e-5)
        shift = gb[1:2, :] - mean * scale

        # height pool (max of BN'd even/odd columns), then fused even|odd WIDTH pool.
        cmax = jnp.maximum(ye * scale + shift, yo * scale + shift)      # (n*rows_out, C*ph)
        rcat = dot(rf_ref[...], cmax)                                   # (2*n*pw, C*ph)
        half = rcat.shape[0] // 2
        return jnp.maximum(rcat[:half, :], rcat[half:, :])              # (n*pw, C*ph)

    a0 = a0_ref[...]                                                    # (n*32, 96)
    p1 = conv_bn_pool(a0, t1e_ref, t1o_ref, chan1_ref, gb1_ref, rf1_ref, 32, 28)  # (n*14, 84)
    p3 = conv_bn_pool(p1, t3e_ref, t3o_ref, chan3_ref, gb3_ref, rf3_ref, 14, 10)  # (n*5, 80)

    # head: conv5 (1x1 spatial) -> full6 -> full7 are purely linear; folded host-side into
    # one (80, 10) weight per width position + one bias.  (bn5 is unused in forward();
    # skipped intentionally.)
    logits = bh_ref[...]
    for w in range(5):
        rows_w = jnp.concatenate(
            [p3[b * 5 + w: b * 5 + w + 1, :] for b in range(n)], axis=0)    # (n, 80)
        logits = logits + dot(rows_w, wh_ref[w])
    out_ref[...] = jax.nn.sigmoid(logits)


# ----------------------------- wrapper ---------------------------------------

def _full_spec(shape):
    nd = len(shape)
    return pl.BlockSpec(shape, lambda *_: (0,) * nd)


def lenet5_forward(x, kp):
    """x: (N, 3, 32, 32) float32 NCHW (PyTorch convention) -> (N, 10) sigmoid outputs."""
    n = x.shape[0]
    # single tiny layout adapter: NCHW -> internal [b*W + w, c*H + h]  (24 KB at batch 2)
    a0 = jnp.transpose(x, (0, 3, 1, 2)).reshape(n * 32, 3 * 32)

    args = (a0,
            kp['t1e'], kp['t1o'], kp['chan1'], kp['gb1'], kp['rf1'],
            kp['t3e'], kp['t3o'], kp['chan3'], kp['gb3'], kp['rf3'],
            kp['wh'], kp['bh'])

    return pl.pallas_call(
        functools.partial(_lenet5_kernel, n),
        out_shape=jax.ShapeDtypeStruct((n, 10), jnp.float32),
        in_specs=[_full_spec(a.shape) for a in args],
        out_specs=_full_spec((n, 10)),
    )(*args)


# ----------------------------- parameter preparation --------------------------

# Sparse connection table of the 16 C3 feature maps (exactly the slices taken in the
# PyTorch forward): maps 0-5 -> conv3_3 (3 ch), 6-14 -> conv3_4 (4 ch), 15 -> conv3_6 (6 ch).
_C3_SUBSETS = [
    [0, 1, 2], [1, 2, 3], [2, 3, 4], [3, 4, 5], [0, 4, 5], [0, 1, 5],
    [0, 1, 2, 3], [1, 2, 3, 4], [2, 3, 4, 5], [0, 3, 4, 5], [0, 1, 4, 5],
    [0, 1, 2, 5], [0, 1, 3, 4], [1, 2, 4, 5], [0, 2, 3, 5],
    [0, 1, 2, 3, 4, 5],
]


def init_params(key):
    """PyTorch-shaped parameters (deterministic random init)."""
    ks = jax.random.split(key, 12)

    def u(k, shape, scale):
        return jax.random.uniform(k, shape, jnp.float32, -1.0, 1.0) * scale

    p = {}
    p['w1'] = u(ks[0], (6, 3, 5, 5), 0.1)
    p['b1'] = u(ks[1], (6,), 0.1)
    p['g1'] = jnp.ones((6,), jnp.float32)        # BatchNorm2d default init
    p['be1'] = jnp.zeros((6,), jnp.float32)
    p['w3_3'] = u(ks[2], (1, 3, 5, 5), 0.1); p['b3_3'] = u(ks[3], (1,), 0.1)
    p['w3_4'] = u(ks[4], (1, 4, 5, 5), 0.1); p['b3_4'] = u(ks[5], (1,), 0.1)
    p['w3_6'] = u(ks[6], (1, 6, 5, 5), 0.1); p['b3_6'] = u(ks[7], (1,), 0.1)
    p['g3'] = jnp.ones((16,), jnp.float32)
    p['be3'] = jnp.zeros((16,), jnp.float32)
    p['w5'] = u(ks[8], (120, 16, 5, 5), 0.05)
    p['b5'] = u(ks[9], (120,), 0.05)
    p['w6'] = u(ks[10], (84, 120), 0.1)
    p['b6'] = jnp.zeros((84,), jnp.float32)
    p['w7'] = u(ks[11], (10, 84), 0.1)
    p['b7'] = jnp.zeros((10,), jnp.float32)
    return p


def _tap_weights(w, h_in, oh):
    """w: (Cout, Cin, 5, 5) -> per-width-tap banded weights (5, Cin*h_in, Cout*oh) with
    T[j, c*h_in + oh_i + i, co*oh + oh_i] = w[co, c, i, j]; other entries zero."""
    cout, cin, kh, kw = w.shape
    t = np.zeros((kw, cin * h_in, cout * oh), np.float32)
    ar = np.arange(oh)
    for j in range(kw):
        for c in range(cin):
            for i in range(kh):
                rows = c * h_in + i + ar
                for co in range(cout):
                    t[j, rows, co * oh + ar] = w[co, c, i, j]
    return t


def _fold_colpool(t, cout, oh):
    """Fold the even/odd height-pool column selection into the per-tap conv weights."""
    ph = oh // 2
    kw, kdim, _ = t.shape
    te = np.zeros((kw, kdim, cout * ph), np.float32)
    to = np.zeros((kw, kdim, cout * ph), np.float32)
    for co in range(cout):
        blk = t[:, :, co * oh:(co + 1) * oh]
        te[:, :, co * ph:(co + 1) * ph] = blk[:, :, 0::2]
        to[:, :, co * ph:(co + 1) * ph] = blk[:, :, 1::2]
    return te, to


def _rowpool_selector(n, ow):
    """Fused even|odd width-pool row selector: (2*n*pw, n*ow)."""
    pw = ow // 2
    r = np.zeros((2 * n * pw, n * ow), np.float32)
    ar = np.arange(pw)
    for b in range(n):
        r[b * pw + ar, b * ow + 2 * ar] = 1.0                 # even rows -> top half
        r[n * pw + b * pw + ar, b * ow + 2 * ar + 1] = 1.0    # odd rows  -> bottom half
    return r


def _channel_avg(c, cols, cnt):
    """Block-diagonal per-channel averaging matrix (c*cols, c*cols) with entries 1/cnt."""
    m = np.zeros((c * cols, c * cols), np.float32)
    for cc in range(c):
        m[cc * cols:(cc + 1) * cols, cc * cols:(cc + 1) * cols] = 1.0 / cnt
    return m


def prepare_kernel_params(p, n):
    """Host-side (numpy, one-time) folding of the PyTorch params into kernel operands."""
    f = lambda a: np.asarray(a, np.float32)

    # fold the 16 sparse C3 branches into one (16, 6, 5, 5) weight (exact).
    w3 = np.zeros((16, 6, 5, 5), np.float32)
    for o, sub in enumerate(_C3_SUBSETS):
        ww = {3: f(p['w3_3']), 4: f(p['w3_4']), 6: f(p['w3_6'])}[len(sub)]
        for idx, c in enumerate(sub):
            w3[o, c] = ww[0, idx]
    # conv biases b1 / b3_* are dropped: they cancel exactly inside train-mode BatchNorm.

    kp = {}
    # conv1 (+ folded height-pool selection), bn1, pool2
    t1 = _tap_weights(f(p['w1']), h_in=32, oh=28)                        # (5, 96, 168)
    t1e, t1o = _fold_colpool(t1, cout=6, oh=28)                          # (5, 96, 84) each
    kp['t1e'], kp['t1o'] = jnp.asarray(t1e), jnp.asarray(t1o)
    kp['chan1'] = jnp.asarray(_channel_avg(6, 14, float(n * 28 * 28)))   # (84, 84)
    kp['gb1'] = jnp.asarray(np.stack([np.repeat(f(p['g1']), 14),
                                      np.repeat(f(p['be1']), 14)]))      # (2, 84)
    kp['rf1'] = jnp.asarray(_rowpool_selector(n, 28))                    # (2*n*14, n*28)

    # conv3 (folded sparse branches), bn3, pool4
    t3 = _tap_weights(w3, h_in=14, oh=10)                                # (5, 84, 160)
    t3e, t3o = _fold_colpool(t3, cout=16, oh=10)                         # (5, 84, 80) each
    kp['t3e'], kp['t3o'] = jnp.asarray(t3e), jnp.asarray(t3o)
    kp['chan3'] = jnp.asarray(_channel_avg(16, 5, float(n * 10 * 10)))   # (80, 80)
    kp['gb3'] = jnp.asarray(np.stack([np.repeat(f(p['g3']), 5),
                                      np.repeat(f(p['be3']), 5)]))       # (2, 80)
    kp['rf3'] = jnp.asarray(_rowpool_selector(n, 10))                    # (2*n*5, n*10)

    # head: conv5 -> full6 -> full7 are purely linear; fold into (5, 80, 10) + bias.
    w5, b5 = f(p['w5']), f(p['b5'])
    w6t, w7t = f(p['w6']).T, f(p['w7']).T
    head_tail = w6t @ w7t                                                # (120, 10)
    wh = np.zeros((5, 80, 10), np.float32)
    for w in range(5):
        wh[w] = w5[:, :, :, w].reshape(120, 80).T @ head_tail            # (80, 10)
    kp['wh'] = jnp.asarray(wh)
    kp['bh'] = jnp.asarray((b5 @ head_tail + f(p['b6']) @ w7t + f(p['b7']))[None, :])
    return kp


# ----------------------------- pure-JAX reference -----------------------------

def lenet5_reference(x, p):
    """Pure-JAX reference of LeNet5.forward (train-mode BatchNorm, sparse C3 branches)."""
    hi = jax.lax.Precision.HIGHEST

    def conv(v, w, b):
        y = jax.lax.conv_general_dilated(
            v, w, window_strides=(1, 1), padding='VALID',
            dimension_numbers=('NCHW', 'OIHW', 'NCHW'), precision=hi)
        return y + b[None, :, None, None]

    def bn(v, g, be):
        mean = jnp.mean(v, axis=(0, 2, 3), keepdims=True)
        var = jnp.var(v, axis=(0, 2, 3), keepdims=True)      # biased (train-mode)
        return ((v - mean) * jax.lax.rsqrt(var + 1e-5) * g[None, :, None, None]
                + be[None, :, None, None])

    def pool(v):
        return jax.lax.reduce_window(v, -jnp.inf, jax.lax.max,
                                     (1, 1, 2, 2), (1, 1, 2, 2), 'VALID')

    y = pool(bn(conv(x, p['w1'], p['b1']), p['g1'], p['be1']))
    branches = []
    for sub in _C3_SUBSETS:
        w, b = {3: (p['w3_3'], p['b3_3']), 4: (p['w3_4'], p['b3_4']),
                6: (p['w3_6'], p['b3_6'])}[len(sub)]
        branches.append(conv(y[:, np.asarray(sub)], w, b))
    y = jnp.concatenate(branches, axis=1)
    y = pool(bn(y, p['g3'], p['be3']))
    y = conv(y, p['w5'], p['b5']).reshape(x.shape[0], -1)
    y = jnp.dot(y, p['w6'].T, precision=hi) + p['b6']
    y = jnp.dot(y, p['w7'].T, precision=hi) + p['b7']
    return jax.nn.sigmoid(y)


# ----------------------------- main -------------------------------------------

if __name__ == "__main__":
    key = jax.random.PRNGKey(0)
    kx, kinit = jax.random.split(key)

    # LeNet-5 requires 32x32 spatial input so conv5 sees exactly 5x5; batch=2, 3 channels.
    x = jax.random.normal(kx, (2, 3, 32, 32), jnp.float32)
    params = init_params(kinit)
    kparams = prepare_kernel_params(params, n=x.shape[0])

    fwd = jax.jit(lenet5_forward)
    out = jax.block_until_ready(fwd(x, kparams))

    assert out.shape == (2, 10), out.shape
    assert bool(jnp.all(jnp.isfinite(out)))

    ref = jax.block_until_ready(lenet5_reference(x, params))
    err = float(jnp.max(jnp.abs(out - ref)))
    assert err < 5e-3, f"max abs error vs reference: {err}"
    print("KERNEL_OK")
</pallas_src>

<mosaic_0001>
module attributes {stable_mosaic.version = 11 : i64} {
  func.func @_lenet5_kernel(%arg0: memref<64x96xf32, #tpu.memory_space<vmem>>, %arg1: memref<5x96x84xf32, #tpu.memory_space<vmem>>, %arg2: memref<5x96x84xf32, #tpu.memory_space<vmem>>, %arg3: memref<84x84xf32, #tpu.memory_space<vmem>>, %arg4: memref<2x84xf32, #tpu.memory_space<vmem>>, %arg5: memref<56x56xf32, #tpu.memory_space<vmem>>, %arg6: memref<5x84x80xf32, #tpu.memory_space<vmem>>, %arg7: memref<5x84x80xf32, #tpu.memory_space<vmem>>, %arg8: memref<80x80xf32, #tpu.memory_space<vmem>>, %arg9: memref<2x80xf32, #tpu.memory_space<vmem>>, %arg10: memref<20x20xf32, #tpu.memory_space<vmem>>, %arg11: memref<5x80x10xf32, #tpu.memory_space<vmem>>, %arg12: memref<1x10xf32, #tpu.memory_space<vmem>>, %arg13: memref<2x10xf32, #tpu.memory_space<vmem>>) attributes {dimension_semantics = [], scalar_prefetch = 0 : i64, scratch_operands = 0 : i64, tpu.core_type = #tpu.core_type<tc>} {
    %c0 = arith.constant 0 : index
    %c0_0 = arith.constant 0 : index
    %0 = vector.load %arg0[%c0, %c0_0] : memref<64x96xf32, #tpu.memory_space<vmem>>, vector<64x96xf32>
    %1 = vector.extract_strided_slice %0 {offsets = [0, 0], sizes = [28, 96], strides = [1, 1]} : vector<64x96xf32> to vector<28x96xf32>
    %2 = vector.extract_strided_slice %0 {offsets = [32, 0], sizes = [28, 96], strides = [1, 1]} : vector<64x96xf32> to vector<28x96xf32>
    %3 = tpu.concatenate %1, %2 in 0 : vector<28x96xf32>, vector<28x96xf32> -> vector<56x96xf32>
    %c0_1 = arith.constant 0 : index
    %c0_2 = arith.constant 0 : index
    %c0_3 = arith.constant 0 : index
    %4 = vector.load %arg1[%c0_1, %c0_2, %c0_3] : memref<5x96x84xf32, #tpu.memory_space<vmem>>, vector<1x96x84xf32>
    %5 = vector.shape_cast %4 : vector<1x96x84xf32> to vector<96x84xf32>
    %cst = arith.constant dense<0.000000e+00> : vector<56x84xf32>
    %6 = tpu.matmul %3, %5, %cst {dimension_numbers = #tpu.dot_dimension_numbers<[1], [0], [0], [1], [0, 0, 1, 1], [], []>} : vector<56x96xf32>, vector<96x84xf32>, vector<56x84xf32> -> vector<56x84xf32>
    %c0_4 = arith.constant 0 : index
    %c0_5 = arith.constant 0 : index
    %c0_6 = arith.constant 0 : index
    %7 = vector.load %arg2[%c0_4, %c0_5, %c0_6] : memref<5x96x84xf32, #tpu.memory_space<vmem>>, vector<1x96x84xf32>
    %8 = vector.shape_cast %7 : vector<1x96x84xf32> to vector<96x84xf32>
    %cst_7 = arith.constant dense<0.000000e+00> : vector<56x84xf32>
    %9 = tpu.matmul %3, %8, %cst_7 {dimension_numbers = #tpu.dot_dimension_numbers<[1], [0], [0], [1], [0, 0, 1, 1], [], []>} : vector<56x96xf32>, vector<96x84xf32>, vector<56x84xf32> -> vector<56x84xf32>
    %10 = vector.extract_strided_slice %0 {offsets = [1, 0], sizes = [28, 96], strides = [1, 1]} : vector<64x96xf32> to vector<28x96xf32>
    %11 = vector.extract_strided_slice %0 {offsets = [33, 0], sizes = [28, 96], strides = [1, 1]} : vector<64x96xf32> to vector<28x96xf32>
    %12 = tpu.concatenate %10, %11 in 0 : vector<28x96xf32>, vector<28x96xf32> -> vector<56x96xf32>
    %c1 = arith.constant 1 : index
    %c0_8 = arith.constant 0 : index
    %c0_9 = arith.constant 0 : index
    %13 = vector.load %arg1[%c1, %c0_8, %c0_9] : memref<5x96x84xf32, #tpu.memory_space<vmem>>, vector<1x96x84xf32>
    %14 = vector.shape_cast %13 : vector<1x96x84xf32> to vector<96x84xf32>
    %cst_10 = arith.constant dense<0.000000e+00> : vector<56x84xf32>
    %15 = tpu.matmul %12, %14, %cst_10 {dimension_numbers = #tpu.dot_dimension_numbers<[1], [0], [0], [1], [0, 0, 1, 1], [], []>} : vector<56x96xf32>, vector<96x84xf32>, vector<56x84xf32> -> vector<56x84xf32>
    %c1_11 = arith.constant 1 : index
    %c0_12 = arith.constant 0 : index
    %c0_13 = arith.constant 0 : index
    %16 = vector.load %arg2[%c1_11, %c0_12, %c0_13] : memref<5x96x84xf32, #tpu.memory_space<vmem>>, vector<1x96x84xf32>
    %17 = vector.shape_cast %16 : vector<1x96x84xf32> to vector<96x84xf32>
    %cst_14 = arith.constant dense<0.000000e+00> : vector<56x84xf32>
    %18 = tpu.matmul %12, %17, %cst_14 {dimension_numbers = #tpu.dot_dimension_numbers<[1], [0], [0], [1], [0, 0, 1, 1], [], []>} : vector<56x96xf32>, vector<96x84xf32>, vector<56x84xf32> -> vector<56x84xf32>
    %19 = arith.addf %6, %15 : vector<56x84xf32>
    %20 = arith.addf %9, %18 : vector<56x84xf32>
    %21 = vector.extract_strided_slice %0 {offsets = [2, 0], sizes = [28, 96], strides = [1, 1]} : vector<64x96xf32> to vector<28x96xf32>
    %22 = vector.extract_strided_slice %0 {offsets = [34, 0], sizes = [28, 96], strides = [1, 1]} : vector<64x96xf32> to vector<28x96xf32>
    %23 = tpu.concatenate %21, %22 in 0 : vector<28x96xf32>, vector<28x96xf32> -> vector<56x96xf32>
    %c2 = arith.constant 2 : index
    %c0_15 = arith.constant 0 : index
    %c0_16 = arith.constant 0 : index
    %24 = vector.load %arg1[%c2, %c0_15, %c0_16] : memref<5x96x84xf32, #tpu.memory_space<vmem>>, vector<1x96x84xf32>
    %25 = vector.shape_cast %24 : vector<1x96x84xf32> to vector<96x84xf32>
    %cst_17 = arith.constant dense<0.000000e+00> : vector<56x84xf32>
    %26 = tpu.matmul %23, %25, %cst_17 {dimension_numbers = #tpu.dot_dimension_numbers<[1], [0], [0], [1], [0, 0, 1, 1], [], []>} : vector<56x96xf32>, vector<96x84xf32>, vector<56x84xf32> -> vector<56x84xf32>
    %c2_18 = arith.constant 2 : index
    %c0_19 = arith.constant 0 : index
    %c0_20 = arith.constant 0 : index
    %27 = vector.load %arg2[%c2_18, %c0_19, %c0_20] : memref<5x96x84xf32, #tpu.memory_space<vmem>>, vector<1x96x84xf32>
    %28 = vector.shape_cast %27 : vector<1x96x84xf32> to vector<96x84xf32>
    %cst_21 = arith.constant dense<0.000000e+00> : vector<56x84xf32>
    %29 = tpu.matmul %23, %28, %cst_21 {dimension_numbers = #tpu.dot_dimension_numbers<[1], [0], [0], [1], [0, 0, 1, 1], [], []>} : vector<56x96xf32>, vector<96x84xf32>, vector<56x84xf32> -> vector<56x84xf32>
    %30 = arith.addf %19, %26 : vector<56x84xf32>
    %31 = arith.addf %20, %29 : vector<56x84xf32>
    %32 = vector.extract_strided_slice %0 {offsets = [3, 0], sizes = [28, 96], strides = [1, 1]} : vector<64x96xf32> to vector<28x96xf32>
    %33 = vector.extract_strided_slice %0 {offsets = [35, 0], sizes = [28, 96], strides = [1, 1]} : vector<64x96xf32> to vector<28x96xf32>
    %34 = tpu.concatenate %32, %33 in 0 : vector<28x96xf32>, vector<28x96xf32> -> vector<56x96xf32>
    %c3 = arith.constant 3 : index
    %c0_22 = arith.constant 0 : index
    %c0_23 = arith.constant 0 : index
    %35 = vector.load %arg1[%c3, %c0_22, %c0_23] : memref<5x96x84xf32, #tpu.memory_space<vmem>>, vector<1x96x84xf32>
    %36 = vector.shape_cast %35 : vector<1x96x84xf32> to vector<96x84xf32>
    %cst_24 = arith.constant dense<0.000000e+00> : vector<56x84xf32>
    %37 = tpu.matmul %34, %36, %cst_24 {dimension_numbers = #tpu.dot_dimension_numbers<[1], [0], [0], [1], [0, 0, 1, 1], [], []>} : vector<56x96xf32>, vector<96x84xf32>, vector<56x84xf32> -> vector<56x84xf32>
    %c3_25 = arith.constant 3 : index
    %c0_26 = arith.constant 0 : index
    %c0_27 = arith.constant 0 : index
    %38 = vector.load %arg2[%c3_25, %c0_26, %c0_27] : memref<5x96x84xf32, #tpu.memory_space<vmem>>, vector<1x96x84xf32>
    %39 = vector.shape_cast %38 : vector<1x96x84xf32> to vector<96x84xf32>
    %cst_28 = arith.constant dense<0.000000e+00> : vector<56x84xf32>
    %40 = tpu.matmul %34, %39, %cst_28 {dimension_numbers = #tpu.dot_dimension_numbers<[1], [0], [0], [1], [0, 0, 1, 1], [], []>} : vector<56x96xf32>, vector<96x84xf32>, vector<56x84xf32> -> vector<56x84xf32>
    %41 = arith.addf %30, %37 : vector<56x84xf32>
    %42 = arith.addf %31, %40 : vector<56x84xf32>
    %43 = vector.extract_strided_slice %0 {offsets = [4, 0], sizes = [28, 96], strides = [1, 1]} : vector<64x96xf32> to vector<28x96xf32>
    %44 = vector.extract_strided_slice %0 {offsets = [36, 0], sizes = [28, 96], strides = [1, 1]} : vector<64x96xf32> to vector<28x96xf32>
    %45 = tpu.concatenate %43, %44 in 0 : vector<28x96xf32>, vector<28x96xf32> -> vector<56x96xf32>
    %c4 = arith.constant 4 : index
    %c0_29 = arith.constant 0 : index
    %c0_30 = arith.constant 0 : index
    %46 = vector.load %arg1[%c4, %c0_29, %c0_30] : memref<5x96x84xf32, #tpu.memory_space<vmem>>, vector<1x96x84xf32>
    %47 = vector.shape_cast %46 : vector<1x96x84xf32> to vector<96x84xf32>
    %cst_31 = arith.constant dense<0.000000e+00> : vector<56x84xf32>
    %48 = tpu.matmul %45, %47, %cst_31 {dimension_numbers = #tpu.dot_dimension_numbers<[1], [0], [0], [1], [0, 0, 1, 1], [], []>} : vector<56x96xf32>, vector<96x84xf32>, vector<56x84xf32> -> vector<56x84xf32>
    %c4_32 = arith.constant 4 : index
    %c0_33 = arith.constant 0 : index
    %c0_34 = arith.constant 0 : index
    %49 = vector.load %arg2[%c4_32, %c0_33, %c0_34] : memref<5x96x84xf32, #tpu.memory_space<vmem>>, vector<1x96x84xf32>
    %50 = vector.shape_cast %49 : vector<1x96x84xf32> to vector<96x84xf32>
    %cst_35 = arith.constant dense<0.000000e+00> : vector<56x84xf32>
    %51 = tpu.matmul %45, %50, %cst_35 {dimension_numbers = #tpu.dot_dimension_numbers<[1], [0], [0], [1], [0, 0, 1, 1], [], []>} : vector<56x96xf32>, vector<96x84xf32>, vector<56x84xf32> -> vector<56x84xf32>
    %52 = arith.addf %41, %48 : vector<56x84xf32>
    %53 = arith.addf %42, %51 : vector<56x84xf32>
    %cst_36 = arith.constant dense<0.000000e+00> : vector<84xf32>
    %54 = vector.multi_reduction <add>, %52, %cst_36 [0] : vector<56x84xf32> to vector<84xf32>
    %55 = vector.shape_cast %54 : vector<84xf32> to vector<1x84xf32>
    %cst_37 = arith.constant dense<0.000000e+00> : vector<84xf32>
    %56 = vector.multi_reduction <add>, %53, %cst_37 [0] : vector<56x84xf32> to vector<84xf32>
    %57 = vector.shape_cast %56 : vector<84xf32> to vector<1x84xf32>
    %58 = arith.addf %55, %57 : vector<1x84xf32>
    %59 = arith.mulf %52, %52 : vector<56x84xf32>
    %cst_38 = arith.constant dense<0.000000e+00> : vector<84xf32>
    %60 = vector.multi_reduction <add>, %59, %cst_38 [0] : vector<56x84xf32> to vector<84xf32>
    %61 = vector.shape_cast %60 : vector<84xf32> to vector<1x84xf32>
    %62 = arith.mulf %53, %53 : vector<56x84xf32>
    %cst_39 = arith.constant dense<0.000000e+00> : vector<84xf32>
    %63 = vector.multi_reduction <add>, %62, %cst_39 [0] : vector<56x84xf32> to vector<84xf32>
    %64 = vector.shape_cast %63 : vector<84xf32> to vector<1x84xf32>
    %65 = arith.addf %61, %64 : vector<1x84xf32>
    %66 = tpu.concatenate %58, %65 in 0 : vector<1x84xf32>, vector<1x84xf32> -> vector<2x84xf32>
    %c0_40 = arith.constant 0 : index
    %c0_41 = arith.constant 0 : index
    %67 = vector.load %arg3[%c0_40, %c0_41] : memref<84x84xf32, #tpu.memory_space<vmem>>, vector<84x84xf32>
    %cst_42 = arith.constant dense<0.000000e+00> : vector<2x84xf32>
    %68 = tpu.matmul %66, %67, %cst_42 {dimension_numbers = #tpu.dot_dimension_numbers<[1], [0], [0], [1], [0, 0, 1, 1], [], []>} : vector<2x84xf32>, vector<84x84xf32>, vector<2x84xf32> -> vector<2x84xf32>
    %69 = vector.extract_strided_slice %68 {offsets = [0, 0], sizes = [1, 84], strides = [1, 1]} : vector<2x84xf32> to vector<1x84xf32>
    %70 = vector.extract_strided_slice %68 {offsets = [1, 0], sizes = [1, 84], strides = [1, 1]} : vector<2x84xf32> to vector<1x84xf32>
    %71 = arith.mulf %69, %69 : vector<1x84xf32>
    %72 = arith.subf %70, %71 : vector<1x84xf32>
    %cst_43 = arith.constant 0.000000e+00 : f32
    %73 = vector.broadcast %cst_43 : f32 to vector<1x84xf32>
    %74 = arith.maximumf %72, %73 : vector<1x84xf32>
    %c0_44 = arith.constant 0 : index
    %c0_45 = arith.constant 0 : index
    %75 = vector.load %arg4[%c0_44, %c0_45] : memref<2x84xf32, #tpu.memory_space<vmem>>, vector<2x84xf32>
    %76 = vector.extract_strided_slice %75 {offsets = [0, 0], sizes = [1, 84], strides = [1, 1]} : vector<2x84xf32> to vector<1x84xf32>
    %cst_46 = arith.constant 9.99999974E-6 : f32
    %77 = vector.broadcast %cst_46 : f32 to vector<1x84xf32>
    %78 = arith.addf %74, %77 : vector<1x84xf32>
    %79 = math.rsqrt %78 : vector<1x84xf32>
    %80 = arith.mulf %76, %79 : vector<1x84xf32>
    %81 = vector.extract_strided_slice %75 {offsets = [1, 0], sizes = [1, 84], strides = [1, 1]} : vector<2x84xf32> to vector<1x84xf32>
    %82 = arith.mulf %69, %80 : vector<1x84xf32>
    %83 = arith.subf %81, %82 : vector<1x84xf32>
    %84 = vector.broadcast %80 : vector<1x84xf32> to vector<56x84xf32>
    %85 = arith.mulf %52, %84 : vector<56x84xf32>
    %86 = vector.broadcast %83 : vector<1x84xf32> to vector<56x84xf32>
    %87 = arith.addf %85, %86 : vector<56x84xf32>
    %88 = vector.broadcast %80 : vector<1x84xf32> to vector<56x84xf32>
    %89 = arith.mulf %53, %88 : vector<56x84xf32>
    %90 = vector.broadcast %83 : vector<1x84xf32> to vector<56x84xf32>
    %91 = arith.addf %89, %90 : vector<56x84xf32>
    %92 = arith.maximumf %87, %91 : vector<56x84xf32>
    %c0_47 = arith.constant 0 : index
    %c0_48 = arith.constant 0 : index
    %93 = vector.load %arg5[%c0_47, %c0_48] : memref<56x56xf32, #tpu.memory_space<vmem>>, vector<56x56xf32>
    %cst_49 = arith.constant dense<0.000000e+00> : vector<56x84xf32>
    %94 = tpu.matmul %93, %92, %cst_49 {dimension_numbers = #tpu.dot_dimension_numbers<[1], [0], [0], [1], [0, 0, 1, 1], [], []>} : vector<56x56xf32>, vector<56x84xf32>, vector<56x84xf32> -> vector<56x84xf32>
    %95 = vector.extract_strided_slice %94 {offsets = [0, 0], sizes = [28, 84], strides = [1, 1]} : vector<56x84xf32> to vector<28x84xf32>
    %96 = vector.extract_strided_slice %94 {offsets = [28, 0], sizes = [28, 84], strides = [1, 1]} : vector<56x84xf32> to vector<28x84xf32>
    %97 = arith.maximumf %95, %96 : vector<28x84xf32>
    %98 = vector.extract_strided_slice %97 {offsets = [0, 0], sizes = [10, 84], strides = [1, 1]} : vector<28x84xf32> to vector<10x84xf32>
    %99 = vector.extract_strided_slice %97 {offsets = [14, 0], sizes = [10, 84], strides = [1, 1]} : vector<28x84xf32> to vector<10x84xf32>
    %100 = tpu.concatenate %98, %99 in 0 : vector<10x84xf32>, vector<10x84xf32> -> vector<20x84xf32>
    %c0_50 = arith.constant 0 : index
    %c0_51 = arith.constant 0 : index
    %c0_52 = arith.constant 0 : index
    %101 = vector.load %arg6[%c0_50, %c0_51, %c0_52] : memref<5x84x80xf32, #tpu.memory_space<vmem>>, vector<1x84x80xf32>
    %102 = vector.shape_cast %101 : vector<1x84x80xf32> to vector<84x80xf32>
    %cst_53 = arith.constant dense<0.000000e+00> : vector<20x80xf32>
    %103 = tpu.matmul %100, %102, %cst_53 {dimension_numbers = #tpu.dot_dimension_numbers<[1], [0], [0], [1], [0, 0, 1, 1], [], []>} : vector<20x84xf32>, vector<84x80xf32>, vector<20x80xf32> -> vector<20x80xf32>
    %c0_54 = arith.constant 0 : index
    %c0_55 = arith.constant 0 : index
    %c0_56 = arith.constant 0 : index
    %104 = vector.load %arg7[%c0_54, %c0_55, %c0_56] : memref<5x84x80xf32, #tpu.memory_space<vmem>>, vector<1x84x80xf32>
    %105 = vector.shape_cast %104 : vector<1x84x80xf32> to vector<84x80xf32>
    %cst_57 = arith.constant dense<0.000000e+00> : vector<20x80xf32>
    %106 = tpu.matmul %100, %105, %cst_57 {dimension_numbers = #tpu.dot_dimension_numbers<[1], [0], [0], [1], [0, 0, 1, 1], [], []>} : vector<20x84xf32>, vector<84x80xf32>, vector<20x80xf32> -> vector<20x80xf32>
    %107 = vector.extract_strided_slice %97 {offsets = [1, 0], sizes = [10, 84], strides = [1, 1]} : vector<28x84xf32> to vector<10x84xf32>
    %108 = vector.extract_strided_slice %97 {offsets = [15, 0], sizes = [10, 84], strides = [1, 1]} : vector<28x84xf32> to vector<10x84xf32>
    %109 = tpu.concatenate %107, %108 in 0 : vector<10x84xf32>, vector<10x84xf32> -> vector<20x84xf32>
    %c1_58 = arith.constant 1 : index
    %c0_59 = arith.constant 0 : index
    %c0_60 = arith.constant 0 : index
    %110 = vector.load %arg6[%c1_58, %c0_59, %c0_60] : memref<5x84x80xf32, #tpu.memory_space<vmem>>, vector<1x84x80xf32>
    %111 = vector.shape_cast %110 : vector<1x84x80xf32> to vector<84x80xf32>
    %cst_61 = arith.constant dense<0.000000e+00> : vector<20x80xf32>
    %112 = tpu.matmul %109, %111, %cst_61 {dimension_numbers = #tpu.dot_dimension_numbers<[1], [0], [0], [1], [0, 0, 1, 1], [], []>} : vector<20x84xf32>, vector<84x80xf32>, vector<20x80xf32> -> vector<20x80xf32>
    %c1_62 = arith.constant 1 : index
    %c0_63 = arith.constant 0 : index
    %c0_64 = arith.constant 0 : index
    %113 = vector.load %arg7[%c1_62, %c0_63, %c0_64] : memref<5x84x80xf32, #tpu.memory_space<vmem>>, vector<1x84x80xf32>
    %114 = vector.shape_cast %113 : vector<1x84x80xf32> to vector<84x80xf32>
    %cst_65 = arith.constant dense<0.000000e+00> : vector<20x80xf32>
    %115 = tpu.matmul %109, %114, %cst_65 {dimension_numbers = #tpu.dot_dimension_numbers<[1], [0], [0], [1], [0, 0, 1, 1], [], []>} : vector<20x84xf32>, vector<84x80xf32>, vector<20x80xf32> -> vector<20x80xf32>
    %116 = arith.addf %103, %112 : vector<20x80xf32>
    %117 = arith.addf %106, %115 : vector<20x80xf32>
    %118 = vector.extract_strided_slice %97 {offsets = [2, 0], sizes = [10, 84], strides = [1, 1]} : vector<28x84xf32> to vector<10x84xf32>
    %119 = vector.extract_strided_slice %97 {offsets = [16, 0], sizes = [10, 84], strides = [1, 1]} : vector<28x84xf32> to vector<10x84xf32>
    %120 = tpu.concatenate %118, %119 in 0 : vector<10x84xf32>, vector<10x84xf32> -> vector<20x84xf32>
    %c2_66 = arith.constant 2 : index
    %c0_67 = arith.constant 0 : index
    %c0_68 = arith.constant 0 : index
    %121 = vector.load %arg6[%c2_66, %c0_67, %c0_68] : memref<5x84x80xf32, #tpu.memory_space<vmem>>, vector<1x84x80xf32>
    %122 = vector.shape_cast %121 : vector<1x84x80xf32> to vector<84x80xf32>
    %cst_69 = arith.constant dense<0.000000e+00> : vector<20x80xf32>
    %123 = tpu.matmul %120, %122, %cst_69 {dimension_numbers = #tpu.dot_dimension_numbers<[1], [0], [0], [1], [0, 0, 1, 1], [], []>} : vector<20x84xf32>, vector<84x80xf32>, vector<20x80xf32> -> vector<20x80xf32>
    %c2_70 = arith.constant 2 : index
    %c0_71 = arith.constant 0 : index
    %c0_72 = arith.constant 0 : index
    %124 = vector.load %arg7[%c2_70, %c0_71, %c0_72] : memref<5x84x80xf32, #tpu.memory_space<vmem>>, vector<1x84x80xf32>
    %125 = vector.shape_cast %124 : vector<1x84x80xf32> to vector<84x80xf32>
    %cst_73 = arith.constant dense<0.000000e+00> : vector<20x80xf32>
    %126 = tpu.matmul %120, %125, %cst_73 {dimension_numbers = #tpu.dot_dimension_numbers<[1], [0], [0], [1], [0, 0, 1, 1], [], []>} : vector<20x84xf32>, vector<84x80xf32>, vector<20x80xf32> -> vector<20x80xf32>
    %127 = arith.addf %116, %123 : vector<20x80xf32>
    %128 = arith.addf %117, %126 : vector<20x80xf32>
    %129 = vector.extract_strided_slice %97 {offsets = [3, 0], sizes = [10, 84], strides = [1, 1]} : vector<28x84xf32> to vector<10x84xf32>
    %130 = vector.extract_strided_slice %97 {offsets = [17, 0], sizes = [10, 84], strides = [1, 1]} : vector<28x84xf32> to vector<10x84xf32>
    %131 = tpu.concatenate %129, %130 in 0 : vector<10x84xf32>, vector<10x84xf32> -> vector<20x84xf32>
    %c3_74 = arith.constant 3 : index
    %c0_75 = arith.constant 0 : index
    %c0_76 = arith.constant 0 : index
    %132 = vector.load %arg6[%c3_74, %c0_75, %c0_76] : memref<5x84x80xf32, #tpu.memory_space<vmem>>, vector<1x84x80xf32>
    %133 = vector.shape_cast %132 : vector<1x84x80xf32> to vector<84x80xf32>
    %cst_77 = arith.constant dense<0.000000e+00> : vector<20x80xf32>
    %134 = tpu.matmul %131, %133, %cst_77 {dimension_numbers = #tpu.dot_dimension_numbers<[1], [0], [0], [1], [0, 0, 1, 1], [], []>} : vector<20x84xf32>, vector<84x80xf32>, vector<20x80xf32> -> vector<20x80xf32>
    %c3_78 = arith.constant 3 : index
    %c0_79 = arith.constant 0 : index
    %c0_80 = arith.constant 0 : index
    %135 = vector.load %arg7[%c3_78, %c0_79, %c0_80] : memref<5x84x80xf32, #tpu.memory_space<vmem>>, vector<1x84x80xf32>
    %136 = vector.shape_cast %135 : vector<1x84x80xf32> to vector<84x80xf32>
    %cst_81 = arith.constant dense<0.000000e+00> : vector<20x80xf32>
    %137 = tpu.matmul %131, %136, %cst_81 {dimension_numbers = #tpu.dot_dimension_numbers<[1], [0], [0], [1], [0, 0, 1, 1], [], []>} : vector<20x84xf32>, vector<84x80xf32>, vector<20x80xf32> -> vector<20x80xf32>
    %138 = arith.addf %127, %134 : vector<20x80xf32>
    %139 = arith.addf %128, %137 : vector<20x80xf32>
    %140 = vector.extract_strided_slice %97 {offsets = [4, 0], sizes = [10, 84], strides = [1, 1]} : vector<28x84xf32> to vector<10x84xf32>
    %141 = vector.extract_strided_slice %97 {offsets = [18, 0], sizes = [10, 84], strides = [1, 1]} : vector<28x84xf32> to vector<10x84xf32>
    %142 = tpu.concatenate %140, %141 in 0 : vector<10x84xf32>, vector<10x84xf32> -> vector<20x84xf32>
    %c4_82 = arith.constant 4 : index
    %c0_83 = arith.constant 0 : index
    %c0_84 = arith.constant 0 : index
    %143 = vector.load %arg6[%c4_82, %c0_83, %c0_84] : memref<5x84x80xf32, #tpu.memory_space<vmem>>, vector<1x84x80xf32>
    %144 = vector.shape_cast %143 : vector<1x84x80xf32> to vector<84x80xf32>
    %cst_85 = arith.constant dense<0.000000e+00> : vector<20x80xf32>
    %145 = tpu.matmul %142, %144, %cst_85 {dimension_numbers = #tpu.dot_dimension_numbers<[1], [0], [0], [1], [0, 0, 1, 1], [], []>} : vector<20x84xf32>, vector<84x80xf32>, vector<20x80xf32> -> vector<20x80xf32>
    %c4_86 = arith.constant 4 : index
    %c0_87 = arith.constant 0 : index
    %c0_88 = arith.constant 0 : index
    %146 = vector.load %arg7[%c4_86, %c0_87, %c0_88] : memref<5x84x80xf32, #tpu.memory_space<vmem>>, vector<1x84x80xf32>
    %147 = vector.shape_cast %146 : vector<1x84x80xf32> to vector<84x80xf32>
    %cst_89 = arith.constant dense<0.000000e+00> : vector<20x80xf32>
    %148 = tpu.matmul %142, %147, %cst_89 {dimension_numbers = #tpu.dot_dimension_numbers<[1], [0], [0], [1], [0, 0, 1, 1], [], []>} : vector<20x84xf32>, vector<84x80xf32>, vector<20x80xf32> -> vector<20x80xf32>
    %149 = arith.addf %138, %145 : vector<20x80xf32>
    %150 = arith.addf %139, %148 : vector<20x80xf32>
    %cst_90 = arith.constant dense<0.000000e+00> : vector<80xf32>
    %151 = vector.multi_reduction <add>, %149, %cst_90 [0] : vector<20x80xf32> to vector<80xf32>
    %152 = vector.shape_cast %151 : vector<80xf32> to vector<1x80xf32>
    %cst_91 = arith.constant dense<0.000000e+00> : vector<80xf32>
    %153 = vector.multi_reduction <add>, %150, %cst_91 [0] : vector<20x80xf32> to vector<80xf32>
    %154 = vector.shape_cast %153 : vector<80xf32> to vector<1x80xf32>
    %155 = arith.addf %152, %154 : vector<1x80xf32>
    %156 = arith.mulf %149, %149 : vector<20x80xf32>
    %cst_92 = arith.constant dense<0.000000e+00> : vector<80xf32>
    %157 = vector.multi_reduction <add>, %156, %cst_92 [0] : vector<20x80xf32> to vector<80xf32>
    %158 = vector.shape_cast %157 : vector<80xf32> to vector<1x80xf32>
    %159 = arith.mulf %150, %150 : vector<20x80xf32>
    %cst_93 = arith.constant dense<0.000000e+00> : vector<80xf32>
    %160 = vector.multi_reduction <add>, %159, %cst_93 [0] : vector<20x80xf32> to vector<80xf32>
    %161 = vector.shape_cast %160 : vector<80xf32> to vector<1x80xf32>
    %162 = arith.addf %158, %161 : vector<1x80xf32>
    %163 = tpu.concatenate %155, %162 in 0 : vector<1x80xf32>, vector<1x80xf32> -> vector<2x80xf32>
    %c0_94 = arith.constant 0 : index
    %c0_95 = arith.constant 0 : index
    %164 = vector.load %arg8[%c0_94, %c0_95] : memref<80x80xf32, #tpu.memory_space<vmem>>, vector<80x80xf32>
    %cst_96 = arith.constant dense<0.000000e+00> : vector<2x80xf32>
    %165 = tpu.matmul %163, %164, %cst_96 {dimension_numbers = #tpu.dot_dimension_numbers<[1], [0], [0], [1], [0, 0, 1, 1], [], []>} : vector<2x80xf32>, vector<80x80xf32>, vector<2x80xf32> -> vector<2x80xf32>
    %166 = vector.extract_strided_slice %165 {offsets = [0, 0], sizes = [1, 80], strides = [1, 1]} : vector<2x80xf32> to vector<1x80xf32>
    %167 = vector.extract_strided_slice %165 {offsets = [1, 0], sizes = [1, 80], strides = [1, 1]} : vector<2x80xf32> to vector<1x80xf32>
    %168 = arith.mulf %166, %166 : vector<1x80xf32>
    %169 = arith.subf %167, %168 : vector<1x80xf32>
    %cst_97 = arith.constant 0.000000e+00 : f32
    %170 = vector.broadcast %cst_97 : f32 to vector<1x80xf32>
    %171 = arith.maximumf %169, %170 : vector<1x80xf32>
    %c0_98 = arith.constant 0 : index
    %c0_99 = arith.constant 0 : index
    %172 = vector.load %arg9[%c0_98, %c0_99] : memref<2x80xf32, #tpu.memory_space<vmem>>, vector<2x80xf32>
    %173 = vector.extract_strided_slice %172 {offsets = [0, 0], sizes = [1, 80], strides = [1, 1]} : vector<2x80xf32> to vector<1x80xf32>
    %cst_100 = arith.constant 9.99999974E-6 : f32
    %174 = vector.broadcast %cst_100 : f32 to vector<1x80xf32>
    %175 = arith.addf %171, %174 : vector<1x80xf32>
    %176 = math.rsqrt %175 : vector<1x80xf32>
    %177 = arith.mulf %173, %176 : vector<1x80xf32>
    %178 = vector.extract_strided_slice %172 {offsets = [1, 0], sizes = [1, 80], strides = [1, 1]} : vector<2x80xf32> to vector<1x80xf32>
    %179 = arith.mulf %166, %177 : vector<1x80xf32>
    %180 = arith.subf %178, %179 : vector<1x80xf32>
    %181 = vector.broadcast %177 : vector<1x80xf32> to vector<20x80xf32>
    %182 = arith.mulf %149, %181 : vector<20x80xf32>
    %183 = vector.broadcast %180 : vector<1x80xf32> to vector<20x80xf32>
    %184 = arith.addf %182, %183 : vector<20x80xf32>
    %185 = vector.broadcast %177 : vector<1x80xf32> to vector<20x80xf32>
    %186 = arith.mulf %150, %185 : vector<20x80xf32>
    %187 = vector.broadcast %180 : vector<1x80xf32> to vector<20x80xf32>
    %188 = arith.addf %186, %187 : vector<20x80xf32>
    %189 = arith.maximumf %184, %188 : vector<20x80xf32>
    %c0_101 = arith.constant 0 : index
    %c0_102 = arith.constant 0 : index
    %190 = vector.load %arg10[%c0_101, %c0_102] : memref<20x20xf32, #tpu.memory_space<vmem>>, vector<20x20xf32>
    %cst_103 = arith.constant dense<0.000000e+00> : vector<20x80xf32>
    %191 = tpu.matmul %190, %189, %cst_103 {dimension_numbers = #tpu.dot_dimension_numbers<[1], [0], [0], [1], [0, 0, 1, 1], [], []>} : vector<20x20xf32>, vector<20x80xf32>, vector<20x80xf32> -> vector<20x80xf32>
    %192 = vector.extract_strided_slice %191 {offsets = [0, 0], sizes = [10, 80], strides = [1, 1]} : vector<20x80xf32> to vector<10x80xf32>
    %193 = vector.extract_strided_slice %191 {offsets = [10, 0], sizes = [10, 80], strides = [1, 1]} : vector<20x80xf32> to vector<10x80xf32>
    %194 = arith.maximumf %192, %193 : vector<10x80xf32>
    %c0_104 = arith.constant 0 : index
    %c0_105 = arith.constant 0 : index
    %195 = vector.load %arg12[%c0_104, %c0_105] : memref<1x10xf32, #tpu.memory_space<vmem>>, vector<1x10xf32>
    %196 = vector.extract_strided_slice %194 {offsets = [0, 0], sizes = [1, 80], strides = [1, 1]} : vector<10x80xf32> to vector<1x80xf32>
    %197 = vector.extract_strided_slice %194 {offsets = [5, 0], sizes = [1, 80], strides = [1, 1]} : vector<10x80xf32> to vector<1x80xf32>
    %198 = tpu.concatenate %196, %197 in 0 : vector<1x80xf32>, vector<1x80xf32> -> vector<2x80xf32>
    %c0_106 = arith.constant 0 : index
    %c0_107 = arith.constant 0 : index
    %c0_108 = arith.constant 0 : index
    %199 = vector.load %arg11[%c0_106, %c0_107, %c0_108] : memref<5x80x10xf32, #tpu.memory_space<vmem>>, vector<1x80x10xf32>
    %200 = vector.shape_cast %199 : vector<1x80x10xf32> to vector<80x10xf32>
    %cst_109 = arith.constant dense<0.000000e+00> : vector<2x10xf32>
    %201 = tpu.matmul %198, %200, %cst_109 {dimension_numbers = #tpu.dot_dimension_numbers<[1], [0], [0], [1], [0, 0, 1, 1], [], []>} : vector<2x80xf32>, vector<80x10xf32>, vector<2x10xf32> -> vector<2x10xf32>
    %202 = vector.broadcast %195 : vector<1x10xf32> to vector<2x10xf32>
    %203 = arith.addf %202, %201 : vector<2x10xf32>
    %204 = vector.extract_strided_slice %194 {offsets = [1, 0], sizes = [1, 80], strides = [1, 1]} : vector<10x80xf32> to vector<1x80xf32>
    %205 = vector.extract_strided_slice %194 {offsets = [6, 0], sizes = [1, 80], strides = [1, 1]} : vector<10x80xf32> to vector<1x80xf32>
    %206 = tpu.concatenate %204, %205 in 0 : vector<1x80xf32>, vector<1x80xf32> -> vector<2x80xf32>
    %c1_110 = arith.constant 1 : index
    %c0_111 = arith.constant 0 : index
    %c0_112 = arith.constant 0 : index
    %207 = vector.load %arg11[%c1_110, %c0_111, %c0_112] : memref<5x80x10xf32, #tpu.memory_space<vmem>>, vector<1x80x10xf32>
    %208 = vector.shape_cast %207 : vector<1x80x10xf32> to vector<80x10xf32>
    %cst_113 = arith.constant dense<0.000000e+00> : vector<2x10xf32>
    %209 = tpu.matmul %206, %208, %cst_113 {dimension_numbers = #tpu.dot_dimension_numbers<[1], [0], [0], [1], [0, 0, 1, 1], [], []>} : vector<2x80xf32>, vector<80x10xf32>, vector<2x10xf32> -> vector<2x10xf32>
    %210 = arith.addf %203, %209 : vector<2x10xf32>
    %211 = vector.extract_strided_slice %194 {offsets = [2, 0], sizes = [1, 80], strides = [1, 1]} : vector<10x80xf32> to vector<1x80xf32>
    %212 = vector.extract_strided_slice %194 {offsets = [7, 0], sizes = [1, 80], strides = [1, 1]} : vector<10x80xf32> to vector<1x80xf32>
    %213 = tpu.concatenate %211, %212 in 0 : vector<1x80xf32>, vector<1x80xf32> -> vector<2x80xf32>
    %c2_114 = arith.constant 2 : index
    %c0_115 = arith.constant 0 : index
    %c0_116 = arith.constant 0 : index
    %214 = vector.load %arg11[%c2_114, %c0_115, %c0_116] : memref<5x80x10xf32, #tpu.memory_space<vmem>>, vector<1x80x10xf32>
    %215 = vector.shape_cast %214 : vector<1x80x10xf32> to vector<80x10xf32>
    %cst_117 = arith.constant dense<0.000000e+00> : vector<2x10xf32>
    %216 = tpu.matmul %213, %215, %cst_117 {dimension_numbers = #tpu.dot_dimension_numbers<[1], [0], [0], [1], [0, 0, 1, 1], [], []>} : vector<2x80xf32>, vector<80x10xf32>, vector<2x10xf32> -> vector<2x10xf32>
    %217 = arith.addf %210, %216 : vector<2x10xf32>
    %218 = vector.extract_strided_slice %194 {offsets = [3, 0], sizes = [1, 80], strides = [1, 1]} : vector<10x80xf32> to vector<1x80xf32>
    %219 = vector.extract_strided_slice %194 {offsets = [8, 0], sizes = [1, 80], strides = [1, 1]} : vector<10x80xf32> to vector<1x80xf32>
    %220 = tpu.concatenate %218, %219 in 0 : vector<1x80xf32>, vector<1x80xf32> -> vector<2x80xf32>
    %c3_118 = arith.constant 3 : index
    %c0_119 = arith.constant 0 : index
    %c0_120 = arith.constant 0 : index
    %221 = vector.load %arg11[%c3_118, %c0_119, %c0_120] : memref<5x80x10xf32, #tpu.memory_space<vmem>>, vector<1x80x10xf32>
    %222 = vector.shape_cast %221 : vector<1x80x10xf32> to vector<80x10xf32>
    %cst_121 = arith.constant dense<0.000000e+00> : vector<2x10xf32>
    %223 = tpu.matmul %220, %222, %cst_121 {dimension_numbers = #tpu.dot_dimension_numbers<[1], [0], [0], [1], [0, 0, 1, 1], [], []>} : vector<2x80xf32>, vector<80x10xf32>, vector<2x10xf32> -> vector<2x10xf32>
    %224 = arith.addf %217, %223 : vector<2x10xf32>
    %225 = vector.extract_strided_slice %194 {offsets = [4, 0], sizes = [1, 80], strides = [1, 1]} : vector<10x80xf32> to vector<1x80xf32>
    %226 = vector.extract_strided_slice %194 {offsets = [9, 0], sizes = [1, 80], strides = [1, 1]} : vector<10x80xf32> to vector<1x80xf32>
    %227 = tpu.concatenate %225, %226 in 0 : vector<1x80xf32>, vector<1x80xf32> -> vector<2x80xf32>
    %c4_122 = arith.constant 4 : index
    %c0_123 = arith.constant 0 : index
    %c0_124 = arith.constant 0 : index
    %228 = vector.load %arg11[%c4_122, %c0_123, %c0_124] : memref<5x80x10xf32, #tpu.memory_space<vmem>>, vector<1x80x10xf32>
    %229 = vector.shape_cast %228 : vector<1x80x10xf32> to vector<80x10xf32>
    %cst_125 = arith.constant dense<0.000000e+00> : vector<2x10xf32>
    %230 = tpu.matmul %227, %229, %cst_125 {dimension_numbers = #tpu.dot_dimension_numbers<[1], [0], [0], [1], [0, 0, 1, 1], [], []>} : vector<2x80xf32>, vector<80x10xf32>, vector<2x10xf32> -> vector<2x10xf32>
    %231 = arith.addf %224, %230 : vector<2x10xf32>
    %232 = arith.negf %231 : vector<2x10xf32>
    %233 = math.exp %232 : vector<2x10xf32>
    %cst_126 = arith.constant 1.000000e+00 : f32
    %234 = vector.broadcast %cst_126 : f32 to vector<2x10xf32>
    %235 = arith.addf %234, %233 : vector<2x10xf32>
    %236 = arith.divf %234, %235 : vector<2x10xf32>
    %c0_127 = arith.constant 0 : index
    %c0_128 = arith.constant 0 : index
    %237 = vector.load %arg13[%c0_127, %c0_128] : memref<2x10xf32, #tpu.memory_space<vmem>>, vector<2x10xf32>
    tpu.vector_store %arg13[%c0_127, %c0_128], %236 {strides = array<i32>} : memref<2x10xf32, #tpu.memory_space<vmem>>, vector<2x10xf32>,
    return
  }
}

</mosaic_0001>

<bundles_post_ra>
// kernel: lenet5_forward.1
= control target key start
LH: loop header
LB: loop body
LE: loop exit
PB: predicated region body
PF: predicated region fallthrough
CT: control target
= control target key end

     0   :  { %v5363_v2 = vmov 0.0   ;;  %vm571_vm0 = vcmask 1045504   ;;  %vm845_vm1 = vcmask 1044480   ;;  %vm57_vm2 = vcmask 1043456   ;;  %s7579_s0 = inlined_call_operand.vmem [shape: f32[64,96], index: 0, kind: input, shape index: {}]   ;;  %s7580_s1 = inlined_call_operand.vmem [shape: f32[5,96,84], index: 1, kind: input, shape index: {}]   ;;  %s7581_s2 = inlined_call_operand.vmem [shape: f32[5,96,84], index: 2, kind: input, shape index: {}]   ;;  %s7582_s3 = inlined_call_operand.vmem [shape: f32[84,84], index: 3, kind: input, shape index: {}]   ;;  %s7583_s4 = inlined_call_operand.vmem [shape: f32[2,84], index: 4, kind: input, shape index: {}]   ;;  %s7584_s5 = inlined_call_operand.vmem [shape: f32[56,56], index: 5, kind: input, shape index: {}]   ;;  %s7585_s6 = inlined_call_operand.vmem [shape: f32[5,84,80], index: 6, kind: input, shape index: {}]   ;;  %s7586_s7 = inlined_call_operand.vmem [shape: f32[5,84,80], index: 7, kind: input, shape index: {}]   ;;  %s7587_s8 = inlined_call_operand.vmem [shape: f32[80,80], index: 8, kind: input, shape index: {}]   ;;  %s7588_s9 = inlined_call_operand.vmem [shape: f32[2,80], index: 9, kind: input, shape index: {}]   ;;  %s7589_s10 = inlined_call_operand.vmem [shape: f32[20,20], index: 10, kind: input, shape index: {}]   ;;  %s7590_s11 = inlined_call_operand.vmem [shape: f32[5,80,10], index: 11, kind: input, shape index: {}]   ;;  %s7591_s12 = inlined_call_operand.vmem [shape: f32[1,10], index: 12, kind: input, shape index: {}]   ;;  %s7592_s13 = inlined_call_operand.hbm [shape: f32[2,10], index: 13, kind: output, shape index: {}]  }
   0x1   :  { %v3585_v0 = vld [vmem:[%s7580_s1 + $0xb8] sm:$0xff]  ;;  %4357 = vmatprep.subr.mxu0 %v5363_v2  ;;  %4402 = vmatprep.subr.mxu1 %v5363_v2  ;;  %v3584_v3 = vld [vmem:[%s7580_s1 + $0xb0] sm:$0xff]  ;;  %v3583_v5 = vld [vmem:[%s7580_s1 + $0xa8] sm:$0xff]  ;;  %vm95_vm3 = vcmask 1046528   ;;  %vm127_vm4 = vcmask 785408   ;;  %vm5364_vm5 = vmmov 0  }
   0x2   :  { %v3604_v1 = vld [vmem:[%s7581_s2 + $0xb8] sm:$0xff]  ;;  %v3603_v4 = vld [vmem:[%s7581_s2 + $0xb0] sm:$0xff]  ;;  %4358 = vmatpush3.msra.mxu0 %v3585_v0  ;;  %v3602_v6 = vld [vmem:[%s7581_s2 + $0xa8] sm:$0xff]  ;;  %4381 = vmatprep.mubr.msk.f32.mxu0 %vm5364_vm5, %v5363_v2  ;;  %vm104_vm6 = vcmask 1042432  }
   0x3   :  { %4403 = vmatpush3.msra.mxu1 %v3604_v1  ;;  %4359 = vmatprep.subr.mxu0 %v5363_v2  ;;  %v3582_v7 = vld [vmem:[%s7580_s1 + $0xa0] sm:$0xff]  ;;  %v3581_v9 = vld [vmem:[%s7580_s1 + $0x98] sm:$0xff]  ;;  %v3580_v11 = vld [vmem:[%s7580_s1 + $0x90] sm:$0xff] }
   0x4   :  { %4404 = vmatprep.subr.mxu1 %v5363_v2  ;;  %4360 = vmatpush3.msra.mxu0 %v3584_v3  ;;  %v3601_v8 = vld [vmem:[%s7581_s2 + $0xa0] sm:$0xff]  ;;  %v3600_v10 = vld [vmem:[%s7581_s2 + $0x98] sm:$0xff]  ;;  %v3599_v12 = vld [vmem:[%s7581_s2 + $0x90] sm:$0xff] }
   0x5   :  { %4405 = vmatpush3.msra.mxu1 %v3603_v4  ;;  %4361 = vmatprep.subr.mxu0 %v5363_v2  ;;  %v5485_v13 = vld [vmem:[%s7579_s0] sm:$0xff]  ;;  %v5490_v14 = vld [vmem:[%s7579_s0 + $0x8] sm:$0xff]  ;;  %v5495_v15 = vld [vmem:[%s7579_s0 + $0x10] sm:$0xff] }
   0x6   :  { %4406 = vmatprep.subr.mxu1 %v5363_v2  ;;  %4362 = vmatpush3.msra.mxu0 %v3583_v5  ;;  %v5500_v16 = vld [vmem:[%s7579_s0 + $0x18] sm:$0xff]  ;;  %v572_v17 = vrot.slane %v5485_v13, 2  ;;  %v573_v18 = vrot.slane %v5490_v14, 2  ;;  %v575_v19 = vrot.slane %v5495_v15, 2  ;;  %v3579_v20 = vld [vmem:[%s7580_s1 + $0x88] sm:$0xff]  ;;  %v3578_v25 = vld [vmem:[%s7580_s1 + $0x80] sm:$0xff] }
   0x7   :  { %4407 = vmatpush3.msra.mxu1 %v3602_v6  ;;  %4363 = vmatprep.subr.mxu0 %v5363_v2  ;;  %v3598_v21 = vld [vmem:[%s7581_s2 + $0x88] sm:$0xff]  ;;  %v577_v22 = vrot.slane %v5500_v16, 2  ;;  %v3597_v26 = vld [vmem:[%s7581_s2 + $0x80] sm:$0xff]  ;;  %v846_v29 = vrot.slane %v5485_v13, 3  ;;  %v3577_v31 = vld [vmem:[%s7580_s1 + $0x78] sm:$0xff]  ;;  %v847_v33 = vrot.slane %v5490_v14, 3 }
   0x8   :  { %4408 = vmatprep.subr.mxu1 %v5363_v2  ;;  %4364 = vmatpush3.msra.mxu0 %v3582_v7  ;;  %v5515_v23 = vsel %vm571_vm0, %v572_v17, %v573_v18  ;;  %v5518_v24 = vsel %vm571_vm0, %v573_v18, %v575_v19  ;;  %v5531_v27 = vld [vmem:[%s7579_s0 + $0x20] sm:$0xff]  ;;  %v3596_v32 = vld [vmem:[%s7581_s2 + $0x78] sm:$0xff]  ;;  %v3576_v34 = vld [vmem:[%s7580_s1 + $0x70] sm:$0xff]  ;;  %v96_v40 = vrot.slane %v5485_v13, 1  ;;  %v97_v41 = vrot.slane %v5490_v14, 1 }
   0x9   :  { %4409 = vmatpush3.msra.mxu1 %v3601_v8  ;;  %4365 = vmatprep.subr.mxu0 %v5363_v2  ;;  %v5534_v28 = vsel %vm571_vm0, %v575_v19, %v577_v22  ;;  %v581_v30 = vrot.slane %v5531_v27, 6  ;;  %v3595_v35 = vld [vmem:[%s7581_s2 + $0x70] sm:$0xff]  ;;  %v5561_v37 = vsel %vm845_vm1, %v846_v29, %v847_v33  ;;  %v3575_v38 = vld [vmem:[%s7580_s1 + $0x68] sm:$0xff]  ;;  %v849_v42 = vrot.slane %v5495_v15, 3  ;;  %v3574_v44 = vld [vmem:[%s7580_s1 + $0x60] sm:$0xff] }
   0xa   :  { %4410 = vmatprep.subr.mxu1 %v5363_v2  ;;  %4366 = vmatpush3.msra.mxu0 %v3581_v9  ;;  %v3594_v39 = vld [vmem:[%s7581_s2 + $0x68] sm:$0xff]  ;;  %v851_v43 = vrot.slane %v5500_v16, 3  ;;  %v3593_v47 = vld [vmem:[%s7581_s2 + $0x60] sm:$0xff]  ;;  %v98_v48 = vsel %vm95_vm3, %v96_v40, %v97_v41  ;;  %v99_v49 = vrot.slane %v5495_v15, 1  ;;  %v855_v50 = vrot.slane %v5531_v27, 7  ;;  %v78_v52 = vld [vmem:[%s7580_s1 + $0x58] sm:$0xff] }
   0xb   :  { %4411 = vmatpush3.msra.mxu1 %v3600_v10  ;;  %4367 = vmatprep.subr.mxu0 %v5363_v2  ;;  %v5558_v36 = vsel %vm57_vm2, %v577_v22, %v581_v30  ;;  %v5581_v45 = vsel %vm845_vm1, %v847_v33, %v849_v42  ;;  %v90_v53 = vld [vmem:[%s7581_s2 + $0x58] sm:$0xff]  ;;  %v101_v55 = vrot.slane %v5500_v16, 1  ;;  %v77_v56 = vld [vmem:[%s7580_s1 + $0x50] sm:$0xff]  ;;  %v76_v59 = vld [vmem:[%s7580_s1 + $0x48] sm:$0xff]  ;;  %v105_v61 = vrot.slane %v5531_v27, 5 }
   0xc   :  { %4412 = vmatprep.subr.mxu1 %v5363_v2  ;;  %4368 = vmatpush3.msra.mxu0 %v3580_v11  ;;  %v5584_v46 = vsel %vm845_vm1, %v849_v42, %v851_v43  ;;  %v5601_v51 = vsel %vm57_vm2, %v851_v43, %v855_v50  ;;  %v100_v54 = vsel %vm95_vm3, %v97_v41, %v99_v49  ;;  %v89_v57 = vld [vmem:[%s7581_s2 + $0x50] sm:$0xff]  ;;  %v88_v60 = vld [vmem:[%s7581_s2 + $0x48] sm:$0xff]  ;;  %v75_v62 = vld [vmem:[%s7580_s1 + $0x40] sm:$0xff] }
   0xd   :  { %4413 = vmatpush3.msra.mxu1 %v3599_v12  ;;  %4369 = vmatprep.subr.mxu0 %v5363_v2  ;;  %v102_v58 = vsel %vm95_vm3, %v99_v49, %v101_v55  ;;  %v87_v63 = vld [vmem:[%s7581_s2 + $0x40] sm:$0xff]  ;;  %v5654_v0 = vld [vmem:[%s7579_s0 + $0x28] sm:$0xff]  ;;  %v113_v1 = vsel %vm57_vm2, %v101_v55, %v105_v61  ;;  %v74_v3 = vld [vmem:[%s7580_s1 + $0x38] sm:$0xff] }
   0xe   :  { %4414 = vmatprep.subr.mxu1 %v5363_v2  ;;  %4370 = vmatpush3.msra.mxu0 %v3579_v20  ;;  %v86_v4 = vld [vmem:[%s7581_s2 + $0x38] sm:$0xff]  ;;  %v106_v5 = vrot.slane %v5654_v0, 5 }
   0xf   :  { %4415 = vmatpush3.msra.mxu1 %v3598_v21  ;;  %4371 = vmatprep.subr.mxu0 %v5363_v2 }
  0x10   :  { %4416 = vmatprep.subr.mxu1 %v5363_v2  ;;  %4372 = vmatpush3.msra.mxu0 %v3578_v25 }
  0x11   :  { %4417 = vmatpush3.msra.mxu1 %v3597_v26  ;;  %4373 = vmatprep.subr.mxu0 %v5363_v2 }
  0x12   :  { %4418 = vmatprep.subr.mxu1 %v5363_v2  ;;  %4374 = vmatpush3.msra.mxu0 %v3577_v31 }
  0x13   :  { %4419 = vmatpush3.msra.mxu1 %v3596_v32  ;;  %4375 = vmatprep.subr.mxu0 %v5363_v2 }
  0x14   :  { %4420 = vmatprep.subr.mxu1 %v5363_v2  ;;  %4376 = vmatpush3.msra.mxu0 %v3576_v34 }
  0x15   :  { %4421 = vmatpush3.msra.mxu1 %v3595_v35  ;;  %4377 = vmatprep.subr.mxu0 %v5363_v2 }
  0x16   :  { %4422 = vmatprep.subr.mxu1 %v5363_v2  ;;  %4378 = vmatpush3.msra.mxu0 %v3575_v38 }
  0x17   :  { %4423 = vmatpush3.msra.mxu1 %v3594_v39  ;;  %4379 = vmatprep.subr.mxu0 %v5363_v2 }
  0x18   :  { %4424 = vmatprep.subr.mxu1 %v5363_v2  ;;  %4380 = vmatpush3.msra.mxu0 %v3574_v44 }
  0x19   :  { %4425 = vmatpush3.msra.mxu1 %v3593_v47  ;;  %4426 = vmatprep.mubr.msk.f32.mxu1 %vm5364_vm5, %v5363_v2 }
  0x1a   :  { %4382 = vmatmul.mubr.msk.f32.vlgmr.msra.gmra.mxu0 %vm127_vm4, %v98_v48  ;;  %4427 = vmatmul.mubr.msk.f32.vlgmr.msra.gmra.mxu1 %vm127_vm4, %v98_v48 }
  0x1b   :  { %4384 = vmatprep.mubr.msk.f32.mxu0 %vm5364_vm5, %v5363_v2  ;;  %4429 = vmatprep.mubr.msk.f32.mxu1 %vm5364_vm5, %v5363_v2 }
  0x1c   :  { %4447 = vmatprep.subr.mxu0 %v5363_v2  ;;  %4492 = vmatprep.subr.mxu1 %v5363_v2 }
  0x1d   :  { %4448 = vmatpush3.msra.mxu0 %v78_v52  ;;  %4493 = vmatpush3.msra.mxu1 %v90_v53 }
  0x1e   :  { %4385 = vmatmul.mubr.msk.f32.gmra.mxu0 %vm127_vm4, %v100_v54  ;;  %4430 = vmatmul.mubr.msk.f32.gmra.mxu1 %vm127_vm4, %v100_v54 }
  0x1f   :  { %4449 = vmatprep.subr.mxu0 %v5363_v2  ;;  %4494 = vmatprep.subr.mxu1 %v5363_v2 }
  0x20   :  { %4387 = vmatprep.mubr.msk.f32.mxu0 %vm5364_vm5, %v5363_v2  ;;  %4432 = vmatprep.mubr.msk.f32.mxu1 %vm5364_vm5, %v5363_v2 }
  0x21   :  { %4450 = vmatpush3.msra.mxu0 %v77_v56  ;;  %4495 = vmatpush3.msra.mxu1 %v89_v57 }
  0x22   :  { %4388 = vmatmul.mubr.msk.f32.gmra.mxu0 %vm127_vm4, %v102_v58  ;;  %4433 = vmatmul.mubr.msk.f32.gmra.mxu1 %vm127_vm4, %v102_v58 }
  0x23   :  { %4451 = vmatprep.subr.mxu0 %v5363_v2  ;;  %4496 = vmatprep.subr.mxu1 %v5363_v2 }
  0x24   :  { %4452 = vmatpush3.msra.mxu0 %v76_v59  ;;  %4497 = vmatpush3.msra.mxu1 %v88_v60 }
  0x25   :  { %4453 = vmatprep.subr.mxu0 %v5363_v2  ;;  %4498 = vmatprep.subr.mxu1 %v5363_v2 }
  0x26   :  { %4390 = vmatprep.mubr.msk.f32.mxu0 %vm5364_vm5, %v5363_v2  ;;  %4435 = vmatprep.mubr.msk.f32.mxu1 %vm5364_vm5, %v5363_v2 }
  0x27   :  { %4454 = vmatpush3.msra.mxu0 %v75_v62  ;;  %4499 = vmatpush3.msra.mxu1 %v87_v63 }
  0x28   :  { %4391 = vmatmul.mubr.msk.f32.gmra.mxu0 %vm127_vm4, %v113_v1  ;;  %4436 = vmatmul.mubr.msk.f32.gmra.mxu1 %vm127_vm4, %v113_v1 }
  0x29   :  { %18 = vsyncpa [#allocation3], 0  ;;  %4455 = vmatprep.subr.mxu0 %v5363_v2  ;;  %4500 = vmatprep.subr.mxu1 %v5363_v2  ;;  %v73_v6 = vld [vmem:[%s7580_s1 + $0x30] sm:$0xff]  ;;  %v107_v9 = vsel %vm104_vm6, %v105_v61, %v106_v5  ;;  %v72_v10 = vld [vmem:[%s7580_s1 + $0x28] sm:$0xff]  ;;  %v1119_v17 = vrot.slane %v5485_v13, 4  ;;  %v1120_v18 = vrot.slane %v5490_v14, 4 }
  0x2a   :  { %4456 = vmatpush3.msra.mxu0 %v74_v3  ;;  %4501 = vmatpush3.msra.mxu1 %v86_v4  ;;  %v85_v7 = vld [vmem:[%s7581_s2 + $0x30] sm:$0xff]  ;;  %v84_v11 = vld [vmem:[%s7581_s2 + $0x28] sm:$0xff]  ;;  %v71_v19 = vld [vmem:[%s7580_s1 + $0x20] sm:$0xff]  ;;  %v1122_v32 = vrot.slane %v5495_v15, 4  ;;  %v1124_v39 = vrot.slane %v5500_v16, 4  ;;  %v58_v54 = vrot.slane %v5531_v27, 4 }
  0x2b   :  { %v5683_v8 = vld [vmem:[%s7579_s0 + $0x30] sm:$0xff]  ;;  %4457 = vmatprep.subr.mxu0 %v5363_v2  ;;  %4502 = vmatprep.subr.mxu1 %v5363_v2  ;;  %v83_v20 = vld [vmem:[%s7581_s2 + $0x20] sm:$0xff]  ;;  %v5714_v21 = vld [vmem:[%s7579_s0 + $0x38] sm:$0xff]  ;;  %v5720_v25 = vsel %vm57_vm2, %v1119_v17, %v1120_v18  ;;  %v59_v59 = vrot.slane %v5654_v0, 4  ;;  %vm580_vm7 = vcmask 1041408   ;;  %vm854_vm8 = vcmask 1040384  }
  0x2c   :  { %4393 = vmatprep.mubr.msk.f32.mxu0 %vm5364_vm5, %v5363_v2  ;;  %4438 = vmatprep.mubr.msk.f32.mxu1 %vm5364_vm5, %v5363_v2  ;;  %v108_v12 = vrot.slane %v5683_v8, 5  ;;  %v70_v26 = vld [vmem:[%s7580_s1 + $0x18] sm:$0xff]  ;;  %v110_v31 = vrot.slane %v5714_v21, 5  ;;  %v5739_v33 = vsel %vm57_vm2, %v1120_v18, %v1122_v32  ;;  %v69_v34 = vld [vmem:[%s7580_s1 + $0x10] sm:$0xff]  ;;  %v68_v40 = vld [vmem:[%s7580_s1 + $0x8] sm:$0xff]  ;;  %v5762_v42 = vsel %vm57_vm2, %v1122_v32, %v1124_v39 }
  0x2d   :  { %4458 = vmatpush3.msra.mxu0 %v73_v6  ;;  %4503 = vmatpush3.msra.mxu1 %v85_v7  ;;  %v82_v29 = vld [vmem:[%s7581_s2 + $0x18] sm:$0xff]  ;;  %v81_v35 = vld [vmem:[%s7581_s2 + $0x10] sm:$0xff]  ;;  %v80_v41 = vld [vmem:[%s7581_s2 + $0x8] sm:$0xff]  ;;  %v5773_v44 = vsel %vm57_vm2, %v1124_v39, %v5531_v27  ;;  %v60_v61 = vsel %vm57_vm2, %v58_v54, %v59_v59  ;;  %v61_v1 = vrot.slane %v5683_v8, 4  ;;  %v858_v27 = vrot.slane %v5683_v8, 7 }
  0x2e   :  { %4394 = vmatmul.mubr.msk.f32.gmra.mxu0 %vm127_vm4, %v107_v9  ;;  %4439 = vmatmul.mubr.msk.f32.gmra.mxu1 %vm127_vm4, %v107_v9  ;;  %v109_v22 = vsel %vm104_vm6, %v106_v5, %v108_v12  ;;  %v111_v38 = vsel %vm104_vm6, %v108_v12, %v110_v31  ;;  %v67_v43 = vld [vmem:[%s7580_s1] sm:$0xff]  ;;  %v3637_v48 = vld [vmem:[%s7580_s1 + $0x118] sm:$0xff]  ;;  %v3655_v52 = vld [vmem:[%s7581_s2 + $0x110] sm:$0xff]  ;;  %v63_v9 = vrot.slane %v5714_v21, 4  ;;  %vm1383_vm9 = vcmask 687104  }
  0x2f   :  { %4459 = vmatprep.subr.mxu0 %v5363_v2  ;;  %4504 = vmatprep.subr.mxu1 %v5363_v2  ;;  %v79_v47 = vld [vmem:[%s7581_s2] sm:$0xff]  ;;  %v3656_v49 = vld [vmem:[%s7581_s2 + $0x118] sm:$0xff]  ;;  %v3654_v53 = vld [vmem:[%s7581_s2 + $0x108] sm:$0xff]  ;;  %v62_v5 = vsel %vm57_vm2, %v59_v59, %v61_v1  ;;  %vm1632_vm10 = vcmask 457728   ;;  %vm2816_vm11 = vcmask 654336   ;;  %vm2820_vm12 = vcmask 650240  }
  0x30   :  { %4460 = vmatpush3.msra.mxu0 %v72_v10  ;;  %4505 = vmatpush3.msra.mxu1 %v84_v11  ;;  %v3634_v55 = vld [vmem:[%s7580_s1 + $0x100] sm:$0xff]  ;;  %v3633_v57 = vld [vmem:[%s7580_s1 + $0xf8] sm:$0xff]  ;;  %v3651_v60 = vld [vmem:[%s7581_s2 + $0xf0] sm:$0xff]  ;;  %v64_v12 = vsel %vm57_vm2, %v61_v1, %v63_v9  ;;  %vm2998_vm13 = vcmask 162816   ;;  %vm3558_vm14 = vcmask 74752  }
  0x31   :  { %4461 = vmatprep.subr.mxu0 %v5363_v2  ;;  %4506 = vmatprep.subr.mxu1 %v5363_v2  ;;  %v3653_v56 = vld [vmem:[%s7581_s2 + $0x100] sm:$0xff]  ;;  %v3652_v58 = vld [vmem:[%s7581_s2 + $0xf8] sm:$0xff]  ;;  %v3631_v62 = vld [vmem:[%s7580_s1 + $0xe8] sm:$0xff] }
  0x32   :  { %4396 = vmatprep.mubr.msk.f32.mxu0 %vm5364_vm5, %v5363_v2  ;;  %4441 = vmatprep.mubr.msk.f32.mxu1 %vm5364_vm5, %v5363_v2  ;;  %v3650_v63 = vld [vmem:[%s7581_s2 + $0xe8] sm:$0xff]  ;;  %v3630_v3 = vld [vmem:[%s7580_s1 + $0xe0] sm:$0xff]  ;;  %v3629_v6 = vld [vmem:[%s7580_s1 + $0xd8] sm:$0xff] }
  0x33   :  { %4462 = vmatpush3.msra.mxu0 %v71_v19  ;;  %4507 = vmatpush3.msra.mxu1 %v83_v20  ;;  %v3649_v4 = vld [vmem:[%s7581_s2 + $0xe0] sm:$0xff]  ;;  %v3648_v7 = vld [vmem:[%s7581_s2 + $0xd8] sm:$0xff]  ;;  %v3628_v10 = vld [vmem:[%s7580_s1 + $0xd0] sm:$0xff] }
  0x34   :  { %4397 = vmatmul.mubr.msk.f32.gmra.mxu0 %vm127_vm4, %v109_v22  ;;  %4442 = vmatmul.mubr.msk.f32.gmra.mxu1 %vm127_vm4, %v109_v22  ;;  %v3647_v11 = vld [vmem:[%s7581_s2 + $0xd0] sm:$0xff]  ;;  %v3627_v17 = vld [vmem:[%s7580_s1 + $0xc8] sm:$0xff]  ;;  %v3626_v19 = vld [vmem:[%s7580_s1 + $0xc0] sm:$0xff] }
  0x35   :  { %4463 = vmatprep.subr.mxu0 %v5363_v2  ;;  %4508 = vmatprep.subr.mxu1 %v5363_v2  ;;  %v3646_v18 = vld [vmem:[%s7581_s2 + $0xc8] sm:$0xff]  ;;  %v3645_v20 = vld [vmem:[%s7581_s2 + $0xc0] sm:$0xff]  ;;  %v3675_v22 = vld [vmem:[%s7580_s1 + $0x178] sm:$0xff] }
  0x36   :  { %4464 = vmatpush3.msra.mxu0 %v70_v26  ;;  %4509 = vmatpush3.msra.mxu1 %v82_v29  ;;  %v3694_v26 = vld [vmem:[%s7581_s2 + $0x178] sm:$0xff]  ;;  %v3693_v29 = vld [vmem:[%s7581_s2 + $0x170] sm:$0xff]  ;;  %v3692_v31 = vld [vmem:[%s7581_s2 + $0x168] sm:$0xff] }
  0x37   :  { %4465 = vmatprep.subr.mxu0 %v5363_v2  ;;  %4510 = vmatprep.subr.mxu1 %v5363_v2  ;;  %v3672_v32 = vld [vmem:[%s7580_s1 + $0x160] sm:$0xff]  ;;  %v3670_v39 = vld [vmem:[%s7580_s1 + $0x150] sm:$0xff]  ;;  %v3713_v59 = vld [vmem:[%s7580_s1 + $0x1d8] sm:$0xff] }
  0x38   :  { %4399 = vmatprep.mubr.msk.f32.mxu0 %vm5364_vm5, %v5363_v2  ;;  %4444 = vmatprep.mubr.msk.f32.mxu1 %vm5364_vm5, %v5363_v2  ;;  %v3728_v1 = vld [vmem:[%s7581_s2 + $0x1b8] sm:$0xff]  ;;  %v3725_v9 = vld [vmem:[%s7581_s2 + $0x1a0] sm:$0xff] }
  0x39   :  { %4466 = vmatpush3.msra.mxu0 %v69_v34  ;;  %4511 = vmatpush3.msra.mxu1 %v81_v35  ;;  %v3691_v34 = vld [vmem:[%s7581_s2 + $0x160] sm:$0xff]  ;;  %v3690_v35 = vld [vmem:[%s7581_s2 + $0x158] sm:$0xff] }
  0x3a   :  { %4400 = vmatmul.mubr.msk.f32.gmra.mxu0 %vm127_vm4, %v111_v38  ;;  %4445 = vmatmul.mubr.msk.f32.gmra.mxu1 %vm127_vm4, %v111_v38  ;;  %v582_v38 = vrot.slane %v5654_v0, 6 }
  0x3b   :  { %4467 = vmatprep.subr.mxu0 %v5363_v2  ;;  %4512 = vmatprep.subr.mxu1 %v5363_v2 }
  0x3c   :  { %4468 = vmatpush3.msra.mxu0 %v68_v40  ;;  %4513 = vmatpush3.msra.mxu1 %v80_v41  ;;  %v3689_v40 = vld [vmem:[%s7581_s2 + $0x150] sm:$0xff]  ;;  %v3669_v41 = vld [vmem:[%s7580_s1 + $0x148] sm:$0xff] }
  0x3d   :  { %4469 = vmatprep.subr.mxu0 %v5363_v2  ;;  %4514 = vmatprep.subr.mxu1 %v5363_v2 }
  0x3e   :  { %4470 = vmatpush3.msra.mxu0 %v67_v43  ;;  %4471 = vmatprep.mubr.msk.f32.mxu0 %vm5364_vm5, %v5363_v2  ;;  %v3688_v43 = vld [vmem:[%s7581_s2 + $0x148] sm:$0xff] }
  0x3f   :  { %4515 = vmatpush3.msra.mxu1 %v79_v47  ;;  %4516 = vmatprep.mubr.msk.f32.mxu1 %vm5364_vm5, %v5363_v2  ;;  %v584_v47 = vrot.slane %v5683_v8, 6 }
  0x40   :  { %4472 = vmatmul.mubr.msk.f32.vlgmr.msra.gmra.mxu0 %vm127_vm4, %v5485_v13  ;;  %4517 = vmatmul.mubr.msk.f32.vlgmr.msra.gmra.mxu1 %vm127_vm4, %v5485_v13  ;;  %v3636_v13 = vld [vmem:[%s7580_s1 + $0x110] sm:$0xff] }
  0x41   :  { %4474 = vmatprep.mubr.msk.f32.mxu0 %vm5364_vm5, %v5363_v2  ;;  %4519 = vmatprep.mubr.msk.f32.mxu1 %vm5364_vm5, %v5363_v2 }
  0x42   :  { %4537 = vmatprep.subr.mxu0 %v5363_v2  ;;  %4582 = vmatprep.subr.mxu1 %v5363_v2 }
  0x43   :  { %4538 = vmatpush3.msra.mxu0 %v3637_v48  ;;  %4583 = vmatpush3.msra.mxu1 %v3656_v49  ;;  %v3687_v48 = vld [vmem:[%s7581_s2 + $0x140] sm:$0xff]  ;;  %v585_v49 = vsel %vm580_vm7, %v582_v38, %v584_v47 }
  0x44   :  { %4475 = vmatmul.mubr.msk.f32.gmra.mxu0 %vm127_vm4, %v5490_v14  ;;  %4520 = vmatmul.mubr.msk.f32.gmra.mxu1 %vm127_vm4, %v5490_v14  ;;  %v3635_v14 = vld [vmem:[%s7580_s1 + $0x108] sm:$0xff] }
  0x45   :  { %4539 = vmatprep.subr.mxu0 %v5363_v2  ;;  %4584 = vmatprep.subr.mxu1 %v5363_v2 }
  0x46   :  { %4477 = vmatprep.mubr.msk.f32.mxu0 %vm5364_vm5, %v5363_v2  ;;  %4522 = vmatprep.mubr.msk.f32.mxu1 %vm5364_vm5, %v5363_v2 }
  0x47   :  { %4540 = vmatpush3.msra.mxu0 %v3636_v13  ;;  %4585 = vmatpush3.msra.mxu1 %v3655_v52  ;;  %v3667_v13 = vld [vmem:[%s7580_s1 + $0x138] sm:$0xff] }
  0x48   :  { %4478 = vmatmul.mubr.msk.f32.gmra.mxu0 %vm127_vm4, %v5495_v15  ;;  %4523 = vmatmul.mubr.msk.f32.gmra.mxu1 %vm127_vm4, %v5495_v15  ;;  %v66_v15 = vsel %vm57_vm2, %v5500_v16, %v58_v54  ;;  %v3632_v16 = vld [vmem:[%s7580_s1 + $0xf0] sm:$0xff]  ;;  %v3686_v52 = vld [vmem:[%s7581_s2 + $0x138] sm:$0xff] }
  0x49   :  { %4541 = vmatprep.subr.mxu0 %v5363_v2  ;;  %4586 = vmatprep.subr.mxu1 %v5363_v2  ;;  %v3685_v54 = vld [vmem:[%s7581_s2 + $0x130] sm:$0xff] }
  0x4a   :  { %4542 = vmatpush3.msra.mxu0 %v3635_v14  ;;  %4587 = vmatpush3.msra.mxu1 %v3654_v53  ;;  %v586_v14 = vrot.slane %v5714_v21, 6  ;;  %v3666_v53 = vld [vmem:[%s7580_s1 + $0x130] sm:$0xff] }
  0x4b   :  { %4543 = vmatprep.subr.mxu0 %v5363_v2  ;;  %4588 = vmatprep.subr.mxu1 %v5363_v2 }
  0x4c   :  { %4480 = vmatprep.mubr.msk.f32.mxu0 %vm5364_vm5, %v5363_v2  ;;  %4525 = vmatprep.mubr.msk.f32.mxu1 %vm5364_vm5, %v5363_v2 }
  0x4d   :  { %4544 = vmatpush3.msra.mxu0 %v3634_v55  ;;  %4589 = vmatpush3.msra.mxu1 %v3653_v56  ;;  %v587_v55 = vsel %vm580_vm7, %v584_v47, %v586_v14  ;;  %v3665_v56 = vld [vmem:[%s7580_s1 + $0x128] sm:$0xff] }
  0x4e   :  { %4481 = vmatmul.mubr.msk.f32.gmra.mxu0 %vm127_vm4, %v66_v15  ;;  %4526 = vmatmul.mubr.msk.f32.gmra.mxu1 %vm127_vm4, %v66_v15  ;;  %v3684_v15 = vld [vmem:[%s7581_s2 + $0x128] sm:$0xff] }
  0x4f   :  { %4545 = vmatprep.subr.mxu0 %v5363_v2  ;;  %4590 = vmatprep.subr.mxu1 %v5363_v2 }
  0x50   :  { %4546 = vmatpush3.msra.mxu0 %v3633_v57  ;;  %4591 = vmatpush3.msra.mxu1 %v3652_v58  ;;  %v3664_v57 = vld [vmem:[%s7580_s1 + $0x120] sm:$0xff] }
  0x51   :  { %4547 = vmatprep.subr.mxu0 %v5363_v2  ;;  %4592 = vmatprep.subr.mxu1 %v5363_v2  ;;  %v3683_v58 = vld [vmem:[%s7581_s2 + $0x120] sm:$0xff] }
  0x52   :  { %4483 = vmatprep.mubr.msk.f32.mxu0 %vm5364_vm5, %v5363_v2  ;;  %4528 = vmatprep.mubr.msk.f32.mxu1 %vm5364_vm5, %v5363_v2 }
  0x53   :  { %4548 = vmatpush3.msra.mxu0 %v3632_v16  ;;  %4593 = vmatpush3.msra.mxu1 %v3651_v60  ;;  %v3732_v16 = vld [vmem:[%s7581_s2 + $0x1d8] sm:$0xff]  ;;  %v3731_v60 = vld [vmem:[%s7581_s2 + $0x1d0] sm:$0xff] }
  0x54   :  { %4484 = vmatmul.mubr.msk.f32.gmra.mxu0 %vm127_vm4, %v60_v61  ;;  %4529 = vmatmul.mubr.msk.f32.gmra.mxu1 %vm127_vm4, %v60_v61  ;;  %v3730_v61 = vld [vmem:[%s7581_s2 + $0x1c8] sm:$0xff] }
  0x55   :  { %4549 = vmatprep.subr.mxu0 %v5363_v2  ;;  %4594 = vmatprep.subr.mxu1 %v5363_v2 }
  0x56   :  { %4550 = vmatpush3.msra.mxu0 %v3631_v62  ;;  %4595 = vmatpush3.msra.mxu1 %v3650_v63  ;;  %v3710_v62 = vld [vmem:[%s7580_s1 + $0x1c0] sm:$0xff] }
  0x57   :  { %4551 = vmatprep.subr.mxu0 %v5363_v2  ;;  %4596 = vmatprep.subr.mxu1 %v5363_v2  ;;  %v3729_v63 = vld [vmem:[%s7581_s2 + $0x1c0] sm:$0xff] }
  0x58   :  { %4486 = vmatprep.mubr.msk.f32.mxu0 %vm5364_vm5, %v5363_v2  ;;  %4531 = vmatprep.mubr.msk.f32.mxu1 %vm5364_vm5, %v5363_v2 }
  0x59   :  { %4552 = vmatpush3.msra.mxu0 %v3630_v3  ;;  %4597 = vmatpush3.msra.mxu1 %v3649_v4  ;;  %v856_v3 = vrot.slane %v5654_v0, 7  ;;  %v3708_v4 = vld [vmem:[%s7580_s1 + $0x1b0] sm:$0xff] }
  0x5a   :  { %4487 = vmatmul.mubr.msk.f32.gmra.mxu0 %vm127_vm4, %v62_v5  ;;  %4532 = vmatmul.mubr.msk.f32.gmra.mxu1 %vm127_vm4, %v62_v5  ;;  %v3727_v5 = vld [vmem:[%s7581_s2 + $0x1b0] sm:$0xff] }
  0x5b   :  { %4553 = vmatprep.subr.mxu0 %v5363_v2  ;;  %4598 = vmatprep.subr.mxu1 %v5363_v2 }
  0x5c   :  { %4554 = vmatpush3.msra.mxu0 %v3629_v6  ;;  %4599 = vmatpush3.msra.mxu1 %v3648_v7  ;;  %v3707_v6 = vld [vmem:[%s7580_s1 + $0x1a8] sm:$0xff] }
  0x5d   :  { %4555 = vmatprep.subr.mxu0 %v5363_v2  ;;  %4600 = vmatprep.subr.mxu1 %v5363_v2  ;;  %v3726_v7 = vld [vmem:[%s7581_s2 + $0x1a8] sm:$0xff] }
  0x5e   :  { %4489 = vmatprep.mubr.msk.f32.mxu0 %vm5364_vm5, %v5363_v2  ;;  %4534 = vmatprep.mubr.msk.f32.mxu1 %vm5364_vm5, %v5363_v2 }
  0x5f   :  { %4556 = vmatpush3.msra.mxu0 %v3628_v10  ;;  %4601 = vmatpush3.msra.mxu1 %v3647_v11  ;;  %v859_v10 = vsel %vm854_vm8, %v856_v3, %v858_v27  ;;  %v3705_v11 = vld [vmem:[%s7580_s1 + $0x198] sm:$0xff] }
  0x60   :  { %4490 = vmatmul.mubr.msk.f32.gmra.mxu0 %vm127_vm4, %v64_v12  ;;  %4535 = vmatmul.mubr.msk.f32.gmra.mxu1 %vm127_vm4, %v64_v12  ;;  %v3724_v12 = vld [vmem:[%s7581_s2 + $0x198] sm:$0xff] }
  0x61   :  { %4557 = vmatprep.subr.mxu0 %v5363_v2  ;;  %4602 = vmatprep.subr.mxu1 %v5363_v2 }
  0x62   :  { %4558 = vmatpush3.msra.mxu0 %v3627_v17  ;;  %4603 = vmatpush3.msra.mxu1 %v3646_v18  ;;  %v860_v17 = vrot.slane %v5714_v21, 7  ;;  %v3704_v18 = vld [vmem:[%s7580_s1 + $0x190] sm:$0xff] }
  0x63   :  { %4559 = vmatprep.subr.mxu0 %v5363_v2  ;;  %4604 = vmatprep.subr.mxu1 %v5363_v2 }
  0x64   :  { %4560 = vmatpush3.msra.mxu0 %v3626_v19  ;;  %4561 = vmatprep.mubr.msk.f32.mxu0 %vm5364_vm5, %v5363_v2  ;;  %v3723_v19 = vld [vmem:[%s7581_s2 + $0x190] sm:$0xff] }
  0x65   :  { %4605 = vmatpush3.msra.mxu1 %v3645_v20  ;;  %4606 = vmatprep.mubr.msk.f32.mxu1 %vm5364_vm5, %v5363_v2  ;;  %v861_v20 = vsel %vm854_vm8, %v858_v27, %v860_v17  ;;  %v1484_v17 = vld [vmem:[%s7582_s3 + $0x38] sm:$0xff] }
  0x66   :  { %4562 = vmatmul.mubr.msk.f32.vlgmr.msra.gmra.mxu0 %vm127_vm4, %v5515_v23  ;;  %4607 = vmatmul.mubr.msk.f32.vlgmr.msra.gmra.mxu1 %vm127_vm4, %v5515_v23  ;;  %v3674_v23 = vld [vmem:[%s7580_s1 + $0x170] sm:$0xff] }
  0x67   :  { %4564 = vmatprep.mubr.msk.f32.mxu0 %vm5364_vm5, %v5363_v2  ;;  %4609 = vmatprep.mubr.msk.f32.mxu1 %vm5364_vm5, %v5363_v2 }
  0x68   :  { %4627 = vmatprep.subr.mxu0 %v5363_v2  ;;  %4672 = vmatprep.subr.mxu1 %v5363_v2 }
  0x69   :  { %4628 = vmatpush3.msra.mxu0 %v3675_v22  ;;  %4673 = vmatpush3.msra.mxu1 %v3694_v26  ;;  %v3703_v22 = vld [vmem:[%s7580_s1 + $0x188] sm:$0xff] }
  0x6a   :  { %4565 = vmatmul.mubr.msk.f32.gmra.mxu0 %vm127_vm4, %v5518_v24  ;;  %4610 = vmatmul.mubr.msk.f32.gmra.mxu1 %vm127_vm4, %v5518_v24  ;;  %v3673_v24 = vld [vmem:[%s7580_s1 + $0x168] sm:$0xff] }
  0x6b   :  { %4629 = vmatprep.subr.mxu0 %v5363_v2  ;;  %4674 = vmatprep.subr.mxu1 %v5363_v2  ;;  %v3722_v26 = vld [vmem:[%s7581_s2 + $0x188] sm:$0xff] }
  0x6c   :  { %4567 = vmatprep.mubr.msk.f32.mxu0 %vm5364_vm5, %v5363_v2  ;;  %4612 = vmatprep.mubr.msk.f32.mxu1 %vm5364_vm5, %v5363_v2 }
  0x6d   :  { %4630 = vmatpush3.msra.mxu0 %v3674_v23  ;;  %4675 = vmatpush3.msra.mxu1 %v3693_v29  ;;  %v3702_v23 = vld [vmem:[%s7580_s1 + $0x180] sm:$0xff] }
  0x6e   :  { %4568 = vmatmul.mubr.msk.f32.gmra.mxu0 %vm127_vm4, %v5534_v28  ;;  %4613 = vmatmul.mubr.msk.f32.gmra.mxu1 %vm127_vm4, %v5534_v28  ;;  %v3671_v28 = vld [vmem:[%s7580_s1 + $0x158] sm:$0xff]  ;;  %v3721_v29 = vld [vmem:[%s7581_s2 + $0x180] sm:$0xff] }
  0x6f   :  { %4631 = vmatprep.subr.mxu0 %v5363_v2  ;;  %4676 = vmatprep.subr.mxu1 %v5363_v2 }
  0x70   :  { %4632 = vmatpush3.msra.mxu0 %v3673_v24  ;;  %4677 = vmatpush3.msra.mxu1 %v3692_v31 }
  0x71   :  { %4633 = vmatprep.subr.mxu0 %v5363_v2  ;;  %4678 = vmatprep.subr.mxu1 %v5363_v2 }
  0x72   :  { %4570 = vmatprep.mubr.msk.f32.mxu0 %vm5364_vm5, %v5363_v2  ;;  %4615 = vmatprep.mubr.msk.f32.mxu1 %vm5364_vm5, %v5363_v2 }
  0x73   :  { %4634 = vmatpush3.msra.mxu0 %v3672_v32  ;;  %4679 = vmatpush3.msra.mxu1 %v3691_v34 }
  0x74   :  { %4571 = vmatmul.mubr.msk.f32.gmra.mxu0 %vm127_vm4, %v5558_v36  ;;  %4616 = vmatmul.mubr.msk.f32.gmra.mxu1 %vm127_vm4, %v5558_v36  ;;  %v583_v36 = vsel %vm580_vm7, %v581_v30, %v582_v38  ;;  %v3668_v30 = vld [vmem:[%s7580_s1 + $0x140] sm:$0xff] }
  0x75   :  { %4635 = vmatprep.subr.mxu0 %v5363_v2  ;;  %4680 = vmatprep.subr.mxu1 %v5363_v2 }
  0x76   :  { %4636 = vmatpush3.msra.mxu0 %v3671_v28  ;;  %4681 = vmatpush3.msra.mxu1 %v3690_v35 }
  0x77   :  { %4637 = vmatprep.subr.mxu0 %v5363_v2  ;;  %4682 = vmatprep.subr.mxu1 %v5363_v2 }
  0x78   :  { %4573 = vmatprep.mubr.msk.f32.mxu0 %vm5364_vm5, %v5363_v2  ;;  %4618 = vmatprep.mubr.msk.f32.mxu1 %vm5364_vm5, %v5363_v2 }
  0x79   :  { %4638 = vmatpush3.msra.mxu0 %v3670_v39  ;;  %4683 = vmatpush3.msra.mxu1 %v3689_v40 }
  0x7a   :  { %4574 = vmatmul.mubr.msk.f32.gmra.mxu0 %vm127_vm4, %v583_v36  ;;  %4619 = vmatmul.mubr.msk.f32.gmra.mxu1 %vm127_vm4, %v583_v36 }
  0x7b   :  { %4639 = vmatprep.subr.mxu0 %v5363_v2  ;;  %4684 = vmatprep.subr.mxu1 %v5363_v2 }
  0x7c   :  { %4640 = vmatpush3.msra.mxu0 %v3669_v41  ;;  %4685 = vmatpush3.msra.mxu1 %v3688_v43 }
  0x7d   :  { %4641 = vmatprep.subr.mxu0 %v5363_v2  ;;  %4686 = vmatprep.subr.mxu1 %v5363_v2 }
  0x7e   :  { %4576 = vmatprep.mubr.msk.f32.mxu0 %vm5364_vm5, %v5363_v2  ;;  %4621 = vmatprep.mubr.msk.f32.mxu1 %vm5364_vm5, %v5363_v2 }
  0x7f   :  { %4642 = vmatpush3.msra.mxu0 %v3668_v30  ;;  %4687 = vmatpush3.msra.mxu1 %v3687_v48 }
  0x80   :  { %4577 = vmatmul.mubr.msk.f32.gmra.mxu0 %vm127_vm4, %v585_v49  ;;  %4622 = vmatmul.mubr.msk.f32.gmra.mxu1 %vm127_vm4, %v585_v49 }
  0x81   :  { %4643 = vmatprep.subr.mxu0 %v5363_v2  ;;  %4688 = vmatprep.subr.mxu1 %v5363_v2 }
  0x82   :  { %4644 = vmatpush3.msra.mxu0 %v3667_v13  ;;  %4689 = vmatpush3.msra.mxu1 %v3686_v52 }
  0x83   :  { %4645 = vmatprep.subr.mxu0 %v5363_v2  ;;  %4690 = vmatprep.subr.mxu1 %v5363_v2 }
  0x84   :  { %4579 = vmatprep.mubr.msk.f32.mxu0 %vm5364_vm5, %v5363_v2  ;;  %4624 = vmatprep.mubr.msk.f32.mxu1 %vm5364_vm5, %v5363_v2 }
  0x85   :  { %4646 = vmatpush3.msra.mxu0 %v3666_v53  ;;  %4691 = vmatpush3.msra.mxu1 %v3685_v54 }
  0x86   :  { %4580 = vmatmul.mubr.msk.f32.gmra.mxu0 %vm127_vm4, %v587_v55  ;;  %4625 = vmatmul.mubr.msk.f32.gmra.mxu1 %vm127_vm4, %v587_v55 }
  0x87   :  { %4647 = vmatprep.subr.mxu0 %v5363_v2  ;;  %4692 = vmatprep.subr.mxu1 %v5363_v2 }
  0x88   :  { %4648 = vmatpush3.msra.mxu0 %v3665_v56  ;;  %4693 = vmatpush3.msra.mxu1 %v3684_v15 }
  0x89   :  { %4649 = vmatprep.subr.mxu0 %v5363_v2  ;;  %4694 = vmatprep.subr.mxu1 %v5363_v2 }
  0x8a   :  { %4650 = vmatpush3.msra.mxu0 %v3664_v57  ;;  %4651 = vmatprep.mubr.msk.f32.mxu0 %vm5364_vm5, %v5363_v2 }
  0x8b   :  { %4695 = vmatpush3.msra.mxu1 %v3683_v58  ;;  %4696 = vmatprep.mubr.msk.f32.mxu1 %vm5364_vm5, %v5363_v2 }
  0x8c   :  { %4652 = vmatmul.mubr.msk.f32.vlgmr.msra.gmra.mxu0 %vm127_vm4, %v5561_v37  ;;  %4697 = vmatmul.mubr.msk.f32.vlgmr.msra.gmra.mxu1 %vm127_vm4, %v5561_v37  ;;  %v3712_v37 = vld [vmem:[%s7580_s1 + $0x1d0] sm:$0xff] }
  0x8d   :  { %4654 = vmatprep.mubr.msk.f32.mxu0 %vm5364_vm5, %v5363_v2  ;;  %4699 = vmatprep.mubr.msk.f32.mxu1 %vm5364_vm5, %v5363_v2 }
  0x8e   :  { %4717 = vmatprep.subr.mxu0 %v5363_v2  ;;  %4762 = vmatprep.subr.mxu1 %v5363_v2 }
  0x8f   :  { %4718 = vmatpush3.msra.mxu0 %v3713_v59  ;;  %4763 = vmatpush3.msra.mxu1 %v3732_v16 }
  0x90   :  { %4655 = vmatmul.mubr.msk.f32.gmra.mxu0 %vm127_vm4, %v5581_v45  ;;  %4700 = vmatmul.mubr.msk.f32.gmra.mxu1 %vm127_vm4, %v5581_v45  ;;  %v3711_v45 = vld [vmem:[%s7580_s1 + $0x1c8] sm:$0xff] }
  0x91   :  { %4719 = vmatprep.subr.mxu0 %v5363_v2  ;;  %4764 = vmatprep.subr.mxu1 %v5363_v2 }
  0x92   :  { %4657 = vmatprep.mubr.msk.f32.mxu0 %vm5364_vm5, %v5363_v2  ;;  %4702 = vmatprep.mubr.msk.f32.mxu1 %vm5364_vm5, %v5363_v2 }
  0x93   :  { %4720 = vmatpush3.msra.mxu0 %v3712_v37  ;;  %4765 = vmatpush3.msra.mxu1 %v3731_v60 }
  0x94   :  { %4658 = vmatmul.mubr.msk.f32.gmra.mxu0 %vm127_vm4, %v5584_v46  ;;  %4703 = vmatmul.mubr.msk.f32.gmra.mxu1 %vm127_vm4, %v5584_v46  ;;  %v3709_v46 = vld [vmem:[%s7580_s1 + $0x1b8] sm:$0xff] }
  0x95   :  { %4721 = vmatprep.subr.mxu0 %v5363_v2  ;;  %4766 = vmatprep.subr.mxu1 %v5363_v2 }
  0x96   :  { %4722 = vmatpush3.msra.mxu0 %v3711_v45  ;;  %4767 = vmatpush3.msra.mxu1 %v3730_v61 }
  0x97   :  { %4723 = vmatprep.subr.mxu0 %v5363_v2  ;;  %4768 = vmatprep.subr.mxu1 %v5363_v2 }
  0x98   :  { %4660 = vmatprep.mubr.msk.f32.mxu0 %vm5364_vm5, %v5363_v2  ;;  %4705 = vmatprep.mubr.msk.f32.mxu1 %vm5364_vm5, %v5363_v2 }
  0x99   :  { %4724 = vmatpush3.msra.mxu0 %v3710_v62  ;;  %4769 = vmatpush3.msra.mxu1 %v3729_v63 }
  0x9a   :  { %4661 = vmatmul.mubr.msk.f32.gmra.mxu0 %vm127_vm4, %v5601_v51  ;;  %4706 = vmatmul.mubr.msk.f32.gmra.mxu1 %vm127_vm4, %v5601_v51  ;;  %v857_v51 = vsel %vm854_vm8, %v855_v50, %v856_v3  ;;  %v3706_v50 = vld [vmem:[%s7580_s1 + $0x1a0] sm:$0xff]  ;;  %s5365_s1 = smov [#allocation2]  }
  0x9b   :  { %4725 = vmatprep.subr.mxu0 %v5363_v2  ;;  %4770 = vmatprep.subr.mxu1 %v5363_v2  ;;  %s3566_s2 = sshll.u32 %s5365_s1, 4  ;;  %s3567_s2 = int_to_ptr.vmem [resolvable:$true] %s3566_s2 }
  0x9c   :  { %4726 = vmatpush3.msra.mxu0 %v3709_v46  ;;  %4771 = vmatpush3.msra.mxu1 %v3728_v1  ;;  %p5346_p1 = scmp.lt.s32.totalorder %s3567_s2, %s3567_s2 }
  0x9d   :  { %4727 = vmatprep.subr.mxu0 %v5363_v2  ;;  %4772 = vmatprep.subr.mxu1 %v5363_v2 }
  0x9e   :  { %4663 = vmatprep.mubr.msk.f32.mxu0 %vm5364_vm5, %v5363_v2  ;;  %4708 = vmatprep.mubr.msk.f32.mxu1 %vm5364_vm5, %v5363_v2 }
  0x9f   :  { %4728 = vmatpush3.msra.mxu0 %v3708_v4  ;;  %4773 = vmatpush3.msra.mxu1 %v3727_v5 }
  0xa0   :  { %4664 = vmatmul.mubr.msk.f32.gmra.mxu0 %vm127_vm4, %v857_v51  ;;  %4709 = vmatmul.mubr.msk.f32.gmra.mxu1 %vm127_vm4, %v857_v51  ;;  %v1487_v51 = vld [vmem:[%s7582_s3 + $0x50] sm:$0xf] }
  0xa1   :  { %4729 = vmatprep.subr.mxu0 %v5363_v2  ;;  %4774 = vmatprep.subr.mxu1 %v5363_v2 }
  0xa2   :  { %4730 = vmatpush3.msra.mxu0 %v3707_v6  ;;  %4775 = vmatpush3.msra.mxu1 %v3726_v7  ;;  %v1486_v6 = vld [vmem:[%s7582_s3 + $0x48] sm:$0xff] }
  0xa3   :  { %4731 = vmatprep.subr.mxu0 %v5363_v2  ;;  %4776 = vmatprep.subr.mxu1 %v5363_v2 }
  0xa4   :  { %4666 = vmatprep.mubr.msk.f32.mxu0 %vm5364_vm5, %v5363_v2  ;;  %4711 = vmatprep.mubr.msk.f32.mxu1 %vm5364_vm5, %v5363_v2 }
  0xa5   :  { %4732 = vmatpush3.msra.mxu0 %v3706_v50  ;;  %4777 = vmatpush3.msra.mxu1 %v3725_v9 }
  0xa6   :  { %4667 = vmatmul.mubr.msk.f32.gmra.mxu0 %vm127_vm4, %v859_v10  ;;  %4712 = vmatmul.mubr.msk.f32.gmra.mxu1 %vm127_vm4, %v859_v10  ;;  %v1485_v10 = vld [vmem:[%s7582_s3 + $0x40] sm:$0xff] }
  0xa7   :  { %4733 = vmatprep.subr.mxu0 %v5363_v2  ;;  %4778 = vmatprep.subr.mxu1 %v5363_v2 }
  0xa8   :  { %4734 = vmatpush3.msra.mxu0 %v3705_v11  ;;  %4779 = vmatpush3.msra.mxu1 %v3724_v12 }
  0xa9   :  { %4735 = vmatprep.subr.mxu0 %v5363_v2  ;;  %4780 = vmatprep.subr.mxu1 %v5363_v2 }
  0xaa   :  { %4669 = vmatprep.mubr.msk.f32.mxu0 %vm5364_vm5, %v5363_v2  ;;  %4714 = vmatprep.mubr.msk.f32.mxu1 %vm5364_vm5, %v5363_v2 }
  0xab   :  { %4736 = vmatpush3.msra.mxu0 %v3704_v18  ;;  %4781 = vmatpush3.msra.mxu1 %v3723_v19  ;;  %v1483_v18 = vld [vmem:[%s7582_s3 + $0x30] sm:$0xff] }
  0xac   :  { %4670 = vmatmul.mubr.msk.f32.gmra.mxu0 %vm127_vm4, %v861_v20  ;;  %4715 = vmatmul.mubr.msk.f32.gmra.mxu1 %vm127_vm4, %v861_v20 }
  0xad   :  { %4737 = vmatprep.subr.mxu0 %v5363_v2  ;;  %4782 = vmatprep.subr.mxu1 %v5363_v2 }
  0xae   :  { %4738 = vmatpush3.msra.mxu0 %v3703_v22  ;;  %4783 = vmatpush3.msra.mxu1 %v3722_v26 }
  0xaf   :  { %4739 = vmatprep.subr.mxu0 %v5363_v2  ;;  %4784 = vmatprep.subr.mxu1 %v5363_v2 }
  0xb0   :  { %4740 = vmatpush3.msra.mxu0 %v3702_v23  ;;  %4741 = vmatprep.mubr.msk.f32.mxu0 %vm5364_vm5, %v5363_v2  ;;  %v1482_v23 = vld [vmem:[%s7582_s3 + $0x28] sm:$0xff] }
  0xb1   :  { %4785 = vmatpush3.msra.mxu1 %v3721_v29  ;;  %4786 = vmatprep.mubr.msk.f32.mxu1 %vm5364_vm5, %v5363_v2 }
  0xb2   :  { %4742 = vmatmul.mubr.msk.f32.vlgmr.msra.gmra.mxu0 %vm127_vm4, %v5720_v25  ;;  %4787 = vmatmul.mubr.msk.f32.vlgmr.msra.gmra.mxu1 %vm127_vm4, %v5720_v25 }
  0xb3   :  { %4744 = vmatprep.mubr.msk.f32.mxu0 %vm5364_vm5, %v5363_v2  ;;  %4789 = vmatprep.mubr.msk.f32.mxu1 %vm5364_vm5, %v5363_v2 }
  0xb4   :  { %4807 = vmatprep.subr.mxu0 %v5363_v2  ;;  %4832 = vmatprep.subr.mxu1 %v5363_v2 }
  0xb5   :  { %4808 = vmatpush3.msk.msra.mxu0 %vm57_vm2, %v1487_v51 }
  0xb6   :  { %4745 = vmatmul.mubr.msk.f32.gmra.mxu0 %vm127_vm4, %v5739_v33  ;;  %4790 = vmatmul.mubr.msk.f32.gmra.mxu1 %vm127_vm4, %v5739_v33 }
  0xb7   :  { %4747 = vmatprep.mubr.msk.f32.mxu0 %vm5364_vm5, %v5363_v2  ;;  %4792 = vmatprep.mubr.msk.f32.mxu1 %vm5364_vm5, %v5363_v2 }
  0xb8   :  { %4809 = vmatprep.subr.mxu0 %v5363_v2 }
  0xb9   :  { %4810 = vmatpush3.msra.mxu0 %v1486_v6 }
  0xba   :  { %4748 = vmatmul.mubr.msk.f32.gmra.mxu0 %vm127_vm4, %v5762_v42  ;;  %4793 = vmatmul.mubr.msk.f32.gmra.mxu1 %vm127_vm4, %v5762_v42 }
  0xbb   :  { %4750 = vmatprep.mubr.msk.f32.mxu0 %vm5364_vm5, %v5363_v2  ;;  %4795 = vmatprep.mubr.msk.f32.mxu1 %vm5364_vm5, %v5363_v2 }
  0xbc   :  { %4811 = vmatprep.subr.mxu0 %v5363_v2 }
  0xbd   :  { %4812 = vmatpush3.msra.mxu0 %v1485_v10 }
  0xbe   :  { %4751 = vmatmul.mubr.msk.f32.gmra.mxu0 %vm127_vm4, %v5773_v44  ;;  %4796 = vmatmul.mubr.msk.f32.gmra.mxu1 %vm127_vm4, %v5773_v44 }
  0xbf   :  { %4753 = vmatprep.mubr.msk.f32.mxu0 %vm5364_vm5, %v5363_v2  ;;  %4798 = vmatprep.mubr.msk.f32.mxu1 %vm5364_vm5, %v5363_v2 }
  0xc0   :  { %4813 = vmatprep.subr.mxu0 %v5363_v2 }
  0xc1   :  { %4814 = vmatpush3.msra.mxu0 %v1484_v17 }
  0xc2   :  { %4754 = vmatmul.mubr.msk.f32.gmra.mxu0 %vm127_vm4, %v5654_v0  ;;  %4799 = vmatmul.mubr.msk.f32.gmra.mxu1 %vm127_vm4, %v5654_v0 }
  0xc3   :  { %4756 = vmatprep.mubr.msk.f32.mxu0 %vm5364_vm5, %v5363_v2  ;;  %4801 = vmatprep.mubr.msk.f32.mxu1 %vm5364_vm5, %v5363_v2 }
  0xc4   :  { %4815 = vmatprep.subr.mxu0 %v5363_v2 }
  0xc5   :  { %4816 = vmatpush3.msra.mxu0 %v1483_v18 }
  0xc6   :  { %4757 = vmatmul.mubr.msk.f32.gmra.mxu0 %vm127_vm4, %v5683_v8  ;;  %4802 = vmatmul.mubr.msk.f32.gmra.mxu1 %vm127_vm4, %v5683_v8 }
  0xc7   :  { %4759 = vmatprep.mubr.msk.f32.mxu0 %vm5364_vm5, %v5363_v2  ;;  %4804 = vmatprep.mubr.msk.f32.mxu1 %vm5364_vm5, %v5363_v2 }
  0xc8   :  { %4817 = vmatprep.subr.mxu0 %v5363_v2 }
  0xc9   :  { %4818 = vmatpush3.msra.mxu0 %v1482_v23 }
  0xca   :  { %4760 = vmatmul.mubr.msk.f32.gmra.mxu0 %vm127_vm4, %v5714_v21  ;;  %4805 = vmatmul.mubr.msk.f32.gmra.mxu1 %vm127_vm4, %v5714_v21 }
  0xcb   :  { %4829 = vmatprep.mubr.msk.f32.mxu0 %vm5364_vm5, %v5363_v2  ;;  %4846 = vmatprep.mubr.msk.f32.mxu1 %vm5364_vm5, %v5363_v2 }
  0xcc   :  { %4819 = vmatprep.subr.mxu0 %v5363_v2 }
  0xda   :  { %v209_v0 = vpop.f32.mrf.mxu0  ;;  %v322_v8 = vpop.f32.mrf.mxu1 }
  0xdc   :  { %v4383_v25 = vpop.f32.mrf.mxu0  ;;  %v4428_v33 = vpop.f32.mrf.mxu1 }
  0xdd   :  { %v1480_v25 = vld [vmem:[%s7582_s3 + $0x18] sm:$0xff] }
  0xde   :  { %v214_v42 = vpop.f32.mrf.mxu0  ;;  %v327_v44 = vpop.f32.mrf.mxu1 }
  0xe0   :  { %v4386_v24 = vpop.f32.mrf.mxu0  ;;  %v4431_v31 = vpop.f32.mrf.mxu1 }
  0xe1   :  { %v1479_v31 = vld [vmem:[%s7582_s3 + $0x10] sm:$0xff] }
  0xe2   :  { %v219_v32 = vpop.f32.mrf.mxu0  ;;  %v332_v34 = vpop.f32.mrf.mxu1 }
  0xe4   :  { %v4389_v28 = vpop.f32.mrf.mxu0  ;;  %v4434_v35 = vpop.f32.mrf.mxu1 }
  0xe5   :  { %v1478_v28 = vld [vmem:[%s7582_s3 + $0x8] sm:$0xff]  ;;  %v1477_v35 = vld [vmem:[%s7582_s3] sm:$0xff] }
  0xe8   :  { %v224_v38 = vpop.f32.mrf.mxu0  ;;  %v337_v21 = vpop.f32.mrf.mxu1 }
  0xea   :  { %v4392_v39 = vpop.f32.mrf.mxu0  ;;  %v4437_v40 = vpop.f32.mrf.mxu1 }
  0xee   :  { %v229_v36 = vpop.f32.mrf.mxu0  ;;  %v342_v41 = vpop.f32.mrf.mxu1 }
  0xf0   :  { %v4395_v43 = vpop.f32.mrf.mxu0  ;;  %v4440_v47 = vpop.f32.mrf.mxu1 }
  0xf4   :  { %v6303_v30 = vpop.f32.mrf.mxu0  ;;  %v6305_v48 = vpop.f32.mrf.mxu1 }
  0xf6   :  { %v4398_v49 = vpop.f32.mrf.mxu0  ;;  %v4443_v13 = vpop.f32.mrf.mxu1 }
  0xfa   :  { %v6307_v52 = vpop.f32.mrf.mxu0  ;;  %v6309_v14 = vpop.f32.mrf.mxu1 }
  0xfc   :  { %v4401_v53 = vpop.f32.mrf.mxu0  ;;  %v4446_v54 = vpop.f32.mrf.mxu1 }
 0x100   :  { %v437_v55 = vpop.f32.mrf.mxu0  ;;  %v537_v56 = vpop.f32.mrf.mxu1 }
 0x101   :  { %v6311_v15 = vadd.f32 %v437_v55, %v209_v0  ;;  %v6313_v57 = vadd.f32 %v537_v56, %v322_v8  ;;  %v1481_v8 = vld [vmem:[%s7582_s3 + $0x20] sm:$0xff]  ;;  %s5341_s3 = scalar_lea.vmem %s3567_s2, 32 }
 0x102   :  { %v4473_v58 = vpop.f32.mrf.mxu0  ;;  %v4518_v59 = vpop.f32.mrf.mxu1  ;;  %4820 = vmatpush3.msra.mxu0 %v1481_v8  ;;  %p5342_p0 = scmp.ne.s32.totalorder %s3567_s2, %s5341_s3  ;;  %p5347_p2 = scmp.lt.s32.totalorder %s5341_s3, %s5341_s3 }
 0x103   :  { %4821 = vmatprep.subr.mxu0 %v5363_v2 }
 0x104   :  { %v442_v16 = vpop.f32.mrf.mxu0  ;;  %v542_v37 = vpop.f32.mrf.mxu1  ;;  %4822 = vmatpush3.msra.mxu0 %v1480_v25  ;;  %p5348_p3 = por %p5347_p2, %p5346_p1 }
 0x105   :  { %v6315_v60 = vadd.f32 %v442_v16, %v214_v42  ;;  %v6317_v45 = vadd.f32 %v542_v37, %v327_v44  ;;  %4823 = vmatprep.subr.mxu0 %v5363_v2 }
 0x106   :  { %v4476_v61 = vpop.f32.mrf.mxu0  ;;  %v4521_v62 = vpop.f32.mrf.mxu1  ;;  %4824 = vmatpush3.msra.mxu0 %v1479_v31  ;;  %p5349_p4 = pnand %p5348_p3, %p5342_p0 }
 0x107   :  { %4825 = vmatprep.subr.mxu0 %v5363_v2 }
 0x108   :  { %v447_v63 = vpop.f32.mrf.mxu0  ;;  %v547_v46 = vpop.f32.mrf.mxu1  ;;  %4826 = vmatpush3.msra.mxu0 %v1478_v28 }
 0x109   :  { %v6319_v1 = vadd.f32 %v447_v63, %v219_v32  ;;  %v6321_v3 = vadd.f32 %v547_v46, %v332_v34  ;;  %4827 = vmatprep.subr.mxu0 %v5363_v2 }
 0x10a   :  { %v4479_v4 = vpop.f32.mrf.mxu0  ;;  %v4524_v5 = vpop.f32.mrf.mxu1  ;;  %4828 = vmatpush3.msra.mxu0 %v1477_v35 }
 0x10b   :  { %4867 = vmatprep.subr.mxu0 %v5363_v2 }
 0x10e   :  { %v452_v7 = vpop.f32.mrf.mxu0  ;;  %v552_v27 = vpop.f32.mrf.mxu1 }
 0x10f   :  { %v6331_v50 = vadd.f32 %v452_v7, %v224_v38  ;;  %v6333_v9 = vadd.f32 %v552_v27, %v337_v21 }
 0x110   :  { %v4482_v11 = vpop.f32.mrf.mxu0  ;;  %v4527_v12 = vpop.f32.mrf.mxu1 }
 0x114   :  { %v457_v19 = vpop.f32.mrf.mxu0  ;;  %v557_v20 = vpop.f32.mrf.mxu1 }
 0x115   :  { %v458_v22 = vadd.f32 %v457_v19, %v229_v36  ;;  %v558_v26 = vadd.f32 %v557_v20, %v342_v41 }
 0x116   :  { %v4485_v29 = vpop.f32.mrf.mxu0  ;;  %v4530_v0 = vpop.f32.mrf.mxu1 }
 0x11a   :  { %v462_v33 = vpop.f32.mrf.mxu0  ;;  %v562_v42 = vpop.f32.mrf.mxu1 }
 0x11b   :  { %v463_v44 = vadd.f32 %v462_v33, %v6303_v30  ;;  %v563_v24 = vadd.f32 %v562_v42, %v6305_v48 }
 0x11c   :  { %v4488_v32 = vpop.f32.mrf.mxu0  ;;  %v4533_v34 = vpop.f32.mrf.mxu1 }
 0x120   :  { %v467_v38 = vpop.f32.mrf.mxu0  ;;  %v567_v21 = vpop.f32.mrf.mxu1 }
 0x121   :  { %v468_v39 = vadd.f32 %v467_v38, %v6307_v52  ;;  %v568_v40 = vadd.f32 %v567_v21, %v6309_v14 }
 0x122   :  { %v4491_v36 = vpop.f32.mrf.mxu0  ;;  %v4536_v41 = vpop.f32.mrf.mxu1 }
 0x126   :  { %v684_v43 = vpop.f32.mrf.mxu0  ;;  %v797_v47 = vpop.f32.mrf.mxu1 }
 0x127   :  { %v6377_v30 = vadd.f32 %v684_v43, %v6311_v15  ;;  %v6380_v48 = vadd.f32 %v797_v47, %v6313_v57 }
 0x128   :  { %v4563_v49 = vpop.f32.mrf.mxu0  ;;  %v4608_v13 = vpop.f32.mrf.mxu1 }
 0x12a   :  { %v689_v53 = vpop.f32.mrf.mxu0  ;;  %v802_v54 = vpop.f32.mrf.mxu1 }
 0x12b   :  { %v6383_v52 = vadd.f32 %v689_v53, %v6315_v60  ;;  %v6386_v14 = vadd.f32 %v802_v54, %v6317_v45 }
 0x12c   :  { %v4566_v55 = vpop.f32.mrf.mxu0  ;;  %v4611_v56 = vpop.f32.mrf.mxu1 }
 0x12e   :  { %v694_v58 = vpop.f32.mrf.mxu0  ;;  %v807_v59 = vpop.f32.mrf.mxu1 }
 0x12f   :  { %v6389_v15 = vadd.f32 %v694_v58, %v6319_v1  ;;  %v6392_v57 = vadd.f32 %v807_v59, %v6321_v3 }
 0x130   :  { %v4569_v16 = vpop.f32.mrf.mxu0  ;;  %v4614_v37 = vpop.f32.mrf.mxu1 }
 0x134   :  { %v699_v61 = vpop.f32.mrf.mxu0  ;;  %v812_v62 = vpop.f32.mrf.mxu1 }
 0x135   :  { %v6395_v60 = vadd.f32 %v699_v61, %v6331_v50  ;;  %v6398_v45 = vadd.f32 %v812_v62, %v6333_v9 }
 0x136   :  { %v4572_v63 = vpop.f32.mrf.mxu0  ;;  %v4617_v46 = vpop.f32.mrf.mxu1 }
 0x13a   :  { %v704_v4 = vpop.f32.mrf.mxu0  ;;  %v817_v5 = vpop.f32.mrf.mxu1 }
 0x13b   :  { %v6400_v51 = vadd.f32 %v704_v4, %v458_v22  ;;  %v6402_v1 = vadd.f32 %v817_v5, %v558_v26 }
 0x13c   :  { %v4575_v3 = vpop.f32.mrf.mxu0  ;;  %v4620_v6 = vpop.f32.mrf.mxu1 }
 0x140   :  { %v709_v7 = vpop.f32.mrf.mxu0  ;;  %v822_v27 = vpop.f32.mrf.mxu1 }
 0x141   :  { %v6404_v10 = vadd.f32 %v709_v7, %v463_v44  ;;  %v6406_v11 = vadd.f32 %v822_v27, %v563_v24 }
 0x142   :  { %v4578_v50 = vpop.f32.mrf.mxu0  ;;  %v4623_v12 = vpop.f32.mrf.mxu1 }
 0x146   :  { %v714_v9 = vpop.f32.mrf.mxu0  ;;  %v827_v17 = vpop.f32.mrf.mxu1 }
 0x147   :  { %v6408_v18 = vadd.f32 %v714_v9, %v468_v39  ;;  %v6410_v19 = vadd.f32 %v827_v17, %v568_v40 }
 0x148   :  { %v4581_v20 = vpop.f32.mrf.mxu0  ;;  %v4626_v22 = vpop.f32.mrf.mxu1 }
 0x14c   :  { %v958_v26 = vpop.f32.mrf.mxu0  ;;  %v1071_v23 = vpop.f32.mrf.mxu1 }
 0x14d   :  { %v1105_v37 = vadd.f32 %v958_v26, %v6377_v30  ;;  %v1112_v61 = vadd.f32 %v1071_v23, %v6380_v48 }
 0x14e   :  { %v4653_v29 = vpop.f32.mrf.mxu0  ;;  %v4698_v0 = vpop.f32.mrf.mxu1 }
 0x150   :  { %v963_v8 = vpop.f32.mrf.mxu0  ;;  %v1076_v25 = vpop.f32.mrf.mxu1 }
 0x151   :  { %v1106_v46 = vadd.f32 %v963_v8, %v6383_v52  ;;  %v1113_v4 = vadd.f32 %v1076_v25, %v6386_v14 }
 0x152   :  { %v4656_v33 = vpop.f32.mrf.mxu0  ;;  %v4701_v42 = vpop.f32.mrf.mxu1 }
 0x154   :  { %v968_v44 = vpop.f32.mrf.mxu0  ;;  %v1081_v24 = vpop.f32.mrf.mxu1 }
 0x155   :  { %v1107_v27 = vadd.f32 %v968_v44, %v6389_v15  ;;  %v1114_v50 = vadd.f32 %v1081_v24, %v6392_v57 }
 0x156   :  { %v4659_v31 = vpop.f32.mrf.mxu0  ;;  %v4704_v32 = vpop.f32.mrf.mxu1 }
 0x15a   :  { %v973_v34 = vpop.f32.mrf.mxu0  ;;  %v1086_v28 = vpop.f32.mrf.mxu1 }
 0x15b   :  { %v1108_v52 = vadd.f32 %v973_v34, %v6395_v60  ;;  %v1115_v14 = vadd.f32 %v1086_v28, %v6398_v45 }
 0x15c   :  { %v4662_v35 = vpop.f32.mrf.mxu0  ;;  %v4707_v38 = vpop.f32.mrf.mxu1 }
 0x160   :  { %v978_v21 = vpop.f32.mrf.mxu0  ;;  %v1091_v39 = vpop.f32.mrf.mxu1 }
 0x161   :  { %v1109_v22 = vadd.f32 %v978_v21, %v6400_v51  ;;  %v1116_v15 = vadd.f32 %v1091_v39, %v6402_v1 }
 0x162   :  { %v4665_v40 = vpop.f32.mrf.mxu0  ;;  %v4710_v36 = vpop.f32.mrf.mxu1 }
 0x166   :  { %v983_v41 = vpop.f32.mrf.mxu0  ;;  %v1096_v43 = vpop.f32.mrf.mxu1 }
 0x167   :  { %v1110_v60 = vadd.f32 %v983_v41, %v6404_v10  ;;  %v1117_v45 = vadd.f32 %v1096_v43, %v6406_v11 }
 0x168   :  { %v4668_v47 = vpop.f32.mrf.mxu0  ;;  %v4713_v49 = vpop.f32.mrf.mxu1 }
 0x16c   :  { %v988_v13 = vpop.f32.mrf.mxu0  ;;  %v1101_v53 = vpop.f32.mrf.mxu1 }
 0x16d   :  { %v6445_v1 = vadd.f32 %v988_v13, %v6408_v18  ;;  %v6448_v8 = vadd.f32 %v1101_v53, %v6410_v19 }
 0x16e   :  { %v4671_v54 = vpop.f32.mrf.mxu0  ;;  %v4716_v55 = vpop.f32.mrf.mxu1 }
 0x172   :  { %v1222_v56 = vpop.f32.mrf.mxu0  ;;  %v1335_v58 = vpop.f32.mrf.mxu1 }
 0x173   :  { %v6416_v5 = vadd.f32 %v1222_v56, %v1105_v37  ;;  %v6418_v3 = vadd.f32 %v1335_v58, %v1112_v61 }
 0x174   :  { %v4743_v59 = vpop.f32.mrf.mxu0  ;;  %v4788_v16 = vpop.f32.mrf.mxu1 }
 0x175   :  { %v1423_v57 = vmul.f32 %v6416_v5, %v6416_v5  ;;  %v1449_v26 = vmul.f32 %v6418_v3, %v6418_v3  ;;  %v1384_v19 = vsel %vm1383_vm9, %v6416_v5, 0.0  ;;  %v1403_v32 = vsel %vm1383_vm9, %v6418_v3, 0.0 }
 0x176   :  { %v1227_v62 = vpop.f32.mrf.mxu0  ;;  %v1340_v63 = vpop.f32.mrf.mxu1 }
 0x177   :  { %v6422_v12 = vadd.f32 %v1227_v62, %v1106_v46  ;;  %v6424_v30 = vadd.f32 %v1340_v63, %v1113_v4  ;;  %v1430_v31 = vsel %vm1383_vm9, %v1423_v57, 0.0  ;;  %v1456_v34 = vsel %vm1383_vm9, %v1449_v26, 0.0 }
 0x178   :  { %v4746_v6 = vpop.f32.mrf.mxu0  ;;  %v4791_v7 = vpop.f32.mrf.mxu1 }
 0x179   :  { %v1424_v0 = vmul.f32 %v6422_v12, %v6422_v12  ;;  %v1450_v51 = vmul.f32 %v6424_v30, %v6424_v30  ;;  %v1385_v25 = vsel %vm1383_vm9, %v6422_v12, 0.0  ;;  %v1404_v10 = vsel %vm1383_vm9, %v6424_v30, 0.0 }
 0x17a   :  { %v1232_v48 = vpop.f32.mrf.mxu0  ;;  %v1345_v9 = vpop.f32.mrf.mxu1  ;;  %v1386_v36 = vadd.f32 %v1385_v25, %v1384_v19  ;;  %v1405_v41 = vadd.f32 %v1404_v10, %v1403_v32 }
 0x17b   :  { %v6428_v17 = vadd.f32 %v1232_v48, %v1107_v27  ;;  %v6430_v20 = vadd.f32 %v1345_v9, %v1114_v50  ;;  %v1431_v38 = vsel %vm1383_vm9, %v1424_v0, 0.0  ;;  %v1457_v21 = vsel %vm1383_vm9, %v1450_v51, 0.0 }
 0x17c   :  { %v4749_v23 = vpop.f32.mrf.mxu0  ;;  %v4794_v29 = vpop.f32.mrf.mxu1  ;;  %v1432_v58 = vadd.f32 %v1431_v38, %v1430_v31  ;;  %v1458_v59 = vadd.f32 %v1457_v21, %v1456_v34 }
 0x17d   :  { %v1425_v42 = vmul.f32 %v6428_v17, %v6428_v17  ;;  %v1451_v44 = vmul.f32 %v6430_v20, %v6430_v20  ;;  %v1387_v39 = vsel %vm1383_vm9, %v6428_v17, 0.0  ;;  %v1406_v40 = vsel %vm1383_vm9, %v6430_v20, 0.0 }
 0x17e   :  { %v1237_v33 = vpop.f32.mrf.mxu0  ;;  %v1350_v11 = vpop.f32.mrf.mxu1  ;;  %v1388_v16 = vadd.f32 %v1387_v39, %v1386_v36  ;;  %v1407_v37 = vadd.f32 %v1406_v40, %v1405_v41 }
 0x17f   :  { %v6458_v24 = vadd.f32 %v1237_v33, %v1108_v52  ;;  %v6460_v18 = vadd.f32 %v1350_v11, %v1115_v14  ;;  %v1433_v53 = vsel %vm1383_vm9, %v1425_v42, 0.0  ;;  %v1459_v54 = vsel %vm1383_vm9, %v1451_v44, 0.0 }
 0x180   :  { %v4752_v28 = vpop.f32.mrf.mxu0  ;;  %v4797_v35 = vpop.f32.mrf.mxu1  ;;  %v1434_v7 = vadd.f32 %v1433_v53, %v1432_v58  ;;  %v1460_v27 = vadd.f32 %v1459_v54, %v1458_v59 }
 0x181   :  { %v1426_v43 = vmul.f32 %v6458_v24, %v6458_v24  ;;  %v1452_v47 = vmul.f32 %v6460_v18, %v6460_v18  ;;  %v1389_v63 = vsel %vm1383_vm9, %v6458_v24, 0.0  ;;  %v1408_v46 = vsel %vm1383_vm9, %v6460_v18, 0.0 }
 0x182   :  { %v1242_v49 = vpop.f32.mrf.mxu0  ;;  %v1355_v13 = vpop.f32.mrf.mxu1  ;;  %v1390_v26 = vadd.f32 %v1389_v63, %v1388_v16  ;;  %v1409_v23 = vadd.f32 %v1408_v46, %v1407_v37 }
 0x183   :  { %v6480_v55 = vadd.f32 %v1242_v49, %v1109_v22  ;;  %v6482_v56 = vadd.f32 %v1355_v13, %v1116_v15  ;;  %v1435_v50 = vsel %vm1383_vm9, %v1426_v43, 0.0  ;;  %v1461_v48 = vsel %vm1383_vm9, %v1452_v47, 0.0 }
 0x184   :  { %v4755_v61 = vpop.f32.mrf.mxu0  ;;  %v4800_v62 = vpop.f32.mrf.mxu1  ;;  %v1436_v11 = vadd.f32 %v1435_v50, %v1434_v7  ;;  %v1462_v42 = vadd.f32 %v1461_v48, %v1460_v27 }
 0x185   :  { %v1427_v4 = vmul.f32 %v6480_v55, %v6480_v55  ;;  %v1453_v6 = vmul.f32 %v6482_v56, %v6482_v56  ;;  %v1391_v14 = vsel %vm1383_vm9, %v6480_v55, 0.0  ;;  %v1410_v22 = vsel %vm1383_vm9, %v6482_v56, 0.0 }
 0x186   :  { %v1247_v9 = vpop.f32.mrf.mxu0  ;;  %v1360_v52 = vpop.f32.mrf.mxu1  ;;  %v1392_v44 = vadd.f32 %v1391_v14, %v1390_v26  ;;  %v1411_v19 = vadd.f32 %v1410_v22, %v1409_v23 }
 0x187   :  { %v6498_v15 = vadd.f32 %v1247_v9, %v1110_v60  ;;  %v6500_v57 = vadd.f32 %v1360_v52, %v1117_v45  ;;  %v1437_v29 = vsel %vm1383_vm9, %v1427_v4, 0.0  ;;  %v1463_v0 = vsel %vm1383_vm9, %v1453_v6, 0.0 }
 0x188   :  { %v4758_v51 = vpop.f32.mrf.mxu0  ;;  %v4803_v25 = vpop.f32.mrf.mxu1  ;;  %v1438_v21 = vadd.f32 %v1437_v29, %v1436_v11  ;;  %v1464_v39 = vadd.f32 %v1463_v0, %v1462_v42 }
 0x189   :  { %v1393_v10 = vsel %vm1383_vm9, %v6498_v15, 0.0  ;;  %v1428_v33 = vmul.f32 %v6498_v15, %v6498_v15  ;;  %v1412_v60 = vsel %vm1383_vm9, %v6500_v57, 0.0  ;;  %v1454_v45 = vmul.f32 %v6500_v57, %v6500_v57 }
 0x18a   :  { %v1252_v31 = vpop.f32.mrf.mxu0  ;;  %v1365_v32 = vpop.f32.mrf.mxu1  ;;  %v1394_v40 = vadd.f32 %v1393_v10, %v1392_v44  ;;  %v1413_v36 = vadd.f32 %v1412_v60, %v1411_v19 }
 0x18b   :  { %v1439_v34 = vsel %vm1383_vm9, %v1428_v33, 0.0  ;;  %v1465_v28 = vsel %vm1383_vm9, %v1454_v45, 0.0  ;;  %v6515_v35 = vadd.f32 %v1252_v31, %v6445_v1  ;;  %v6518_v38 = vadd.f32 %v1365_v32, %v6448_v8 }
 0x18c   :  { %v4761_v41 = vpop.f32.mrf.mxu0  ;;  %v4806_v43 = vpop.f32.mrf.mxu1  ;;  %v1440_v8 = vadd.f32 %v1439_v34, %v1438_v21  ;;  %v1466_v53 = vadd.f32 %v1465_v28, %v1464_v39 }
 0x18d   :  { %v1395_v47 = vsel %vm1383_vm9, %v6515_v35, 0.0  ;;  %v1429_v49 = vmul.f32 %v6515_v35, %v6515_v35  ;;  %v1414_v13 = vsel %vm1383_vm9, %v6518_v38, 0.0  ;;  %v1455_v1 = vmul.f32 %v6518_v38, %v6518_v38 }
 0x18e   :  { %v1396_v54 = vadd.f32 %v1395_v47, %v1394_v40  ;;  %v1415_v58 = vadd.f32 %v1414_v13, %v1413_v36  ;;  %v1582_v36 = vlaneseq  ;;  %v1570_v47 = vld [vmem:[%s7583_s4] sm:$0x3] }
 0x18f   :  { %v1441_v59 = vsel %vm1383_vm9, %v1429_v49, 0.0  ;;  %v1467_v16 = vsel %vm1383_vm9, %v1455_v1, 0.0 }
 0x190   :  { %v1397_v37 = vrot.slane %v1396_v54, 4  ;;  %v1442_v61 = vadd.f32 %v1441_v59, %v1440_v8  ;;  %v1416_v62 = vrot.slane %v1415_v58, 4  ;;  %v1468_v63 = vadd.f32 %v1467_v16, %v1466_v53 }
 0x191   :  { %v6534_v41 = vshrl.u32 %v1582_v36, 7  ;;  %v3755_v36 = vld [vmem:[%s7585_s6 + $0x88] sm:$0xff] }
 0x192   :  { %v1398_v46 = vadd.f32 %v1397_v37, %v1396_v54  ;;  %v1443_v4 = vrot.slane %v1442_v61, 4  ;;  %v1417_v6 = vadd.f32 %v1416_v62, %v1415_v58  ;;  %v1469_v7 = vrot.slane %v1468_v63, 4 }
 0x193   :  { %v1584_v13 = vsub.s32 0, %v6534_v41  ;;  %v1595_v58 = vsub.s32 1, %v6534_v41 }
 0x194   :  { %v1399_v27 = vrot.slane %v1398_v46, 2  ;;  %v1444_v50 = vadd.f32 %v1443_v4, %v1442_v61  ;;  %v1418_v48 = vrot.slane %v1417_v6, 2  ;;  %v1470_v9 = vadd.f32 %v1469_v7, %v1468_v63 }
 0x196   :  { %v1400_v52 = vadd.f32 %v1399_v27, %v1398_v46  ;;  %v1445_v14 = vrot.slane %v1444_v50, 2  ;;  %v1419_v22 = vadd.f32 %v1418_v48, %v1417_v6  ;;  %v1471_v26 = vrot.slane %v1470_v9, 2 }
 0x198   :  { %v1401_v23 = vrot.slane %v1400_v52, 1  ;;  %v1446_v29 = vadd.f32 %v1445_v14, %v1444_v50  ;;  %v1420_v0 = vrot.slane %v1419_v22, 1  ;;  %v1472_v51 = vadd.f32 %v1471_v26, %v1470_v9 }
 0x19a   :  { %v1402_v25 = vadd.f32 %v1401_v23, %v1400_v52  ;;  %v1447_v10 = vrot.slane %v1446_v29, 1  ;;  %v1421_v33 = vadd.f32 %v1420_v0, %v1419_v22  ;;  %v1473_v60 = vrot.slane %v1472_v51, 1 }
 0x19c   :  { %v1448_v45 = vadd.f32 %v1447_v10, %v1446_v29  ;;  %v1474_v11 = vadd.f32 %v1473_v60, %v1472_v51  ;;  %v1422_v42 = vadd.f32 %v1421_v33, %v1402_v25  ;;  %v1625_v33 = vld [vmem:[%s7584_s5] sm:$0xff]  ;;  %v1627_v60 = vld [vmem:[%s7584_s5 + $0x10] sm:$0xff] }
 0x19e   :  { %v1475_v44 = vadd.f32 %v1474_v11, %v1448_v45  ;;  %v1628_v45 = vld [vmem:[%s7584_s5 + $0x18] sm:$0xff]  ;;  %v1629_v11 = vld [vmem:[%s7584_s5 + $0x20] sm:$0xff] }
 0x1a0   :  { %v1476_v19 = vsel %vm854_vm8, %v1422_v42, %v1475_v44  ;;  %v1630_v42 = vld [vmem:[%s7584_s5 + $0x28] sm:$0xff]  ;;  %v1631_v44 = vld [vmem:[%s7584_s5 + $0x30] sm:$0xff] }
 0x1a1   :  { %4830 = vmatmul.mubr.msk.f32.vlgmr.msra.gmra.mxu0 %vm1383_vm9, %v1476_v19  ;;  %v3759_v19 = vld [vmem:[%s7585_s6 + $0xa8] sm:$0xf] }
 0x1a2   :  { %4889 = vmatprep.mubr.msk.f32.mxu0 %vm5364_vm5, %v5363_v2  ;;  %4868 = vmatpush3.msk.msra.mxu0 %vm57_vm2, %v3759_v19 }
 0x1a3   :  { %4869 = vmatprep.subr.mxu0 %v5363_v2 }
 0x261   :  { %v1560_v31 = vpop.f32.mrf.mxu0 }
 0x262   :  { %v1564_v32 = vmul.f32 %v1560_v31, %v1560_v31 }
 0x263   :  { %v4831_v34 = vpop.f32.mrf.mxu0 }
 0x264   :  { %v1566_v28 = vrot.slane %v1564_v32, 7  ;;  %v3758_v32 = vld [vmem:[%s7585_s6 + $0xa0] sm:$0xff] }
 0x265   :  { %v3773_v34 = vld [vmem:[%s7586_s7 + $0xa0] sm:$0xff]  ;;  %4870 = vmatpush3.msra.mxu0 %v3758_v32 }
 0x266   :  { %v1568_v21 = vsub.f32 %v1560_v31, %v1566_v28  ;;  %4871 = vmatprep.subr.mxu0 %v5363_v2  ;;  %v3757_v28 = vld [vmem:[%s7585_s6 + $0x98] sm:$0xff] }
 0x267   :  { %4872 = vmatpush3.msra.mxu0 %v3757_v28  ;;  %v1799_v28 = vld [vmem:[%s7586_s7 + $0x40] sm:$0xff] }
 0x268   :  { %v1569_v39 = vmax.f32 %v1568_v21, 0.0  ;;  %v3772_v21 = vld [vmem:[%s7586_s7 + $0x98] sm:$0xff]  ;;  %4873 = vmatprep.subr.mxu0 %v5363_v2 }
 0x26a   :  { %v1571_v40 = vadd.f32 1e-05, %v1569_v39  ;;  %v3756_v39 = vld [vmem:[%s7585_s6 + $0x90] sm:$0xff] }
 0x26b   :  { %4874 = vmatpush3.msra.mxu0 %v3756_v39 }
 0x26c   :  { %5333 = vrsqrt.f32 %v1571_v40  ;;  %v3771_v40 = vld [vmem:[%s7586_s7 + $0x90] sm:$0xff]  ;;  %4875 = vmatprep.subr.mxu0 %v5363_v2 }
 0x26d   :  { %4876 = vmatpush3.msra.mxu0 %v3755_v36 }
 0x26e   :  { %4877 = vmatprep.subr.mxu0 %v5363_v2 }
 0x279   :  { %v5334_v43 = vpop.eup %5333 }
 0x27a   :  { %v1574_v49 = vrot.slane %v5334_v43, 1  ;;  %v3770_v43 = vld [vmem:[%s7586_s7 + $0x88] sm:$0xff] }
 0x27c   :  { %v1576_v1 = vmul.f32 %v1574_v49, %v1570_v47  ;;  %v3769_v49 = vld [vmem:[%s7586_s7 + $0x80] sm:$0xff] }
 0x27e   :  { %v1577_v8 = vmul.f32 %v1576_v1, %v1560_v31  ;;  %v1585_v53 = vrot.slane %v1576_v1, %v1584_v13  ;;  %v3774_v31 = vld [vmem:[%s7586_s7 + $0xa8] sm:$0xf]  ;;  %v3753_v1 = vld [vmem:[%s7585_s6 + $0x78] sm:$0xff] }
 0x280   :  { %v1579_v54 = vrot.slane %v1577_v8, 7  ;;  %v1592_v16 = vmul.f32 %v1585_v53, %v6515_v35  ;;  %v1610_v61 = vmul.f32 %v1585_v53, %v6518_v38  ;;  %v1591_v62 = vmul.f32 %v1585_v53, %v6498_v15  ;;  %v3768_v8 = vld [vmem:[%s7586_s7 + $0x78] sm:$0xff] }
 0x281   :  { %v1609_v63 = vmul.f32 %v1585_v53, %v6500_v57  ;;  %v1590_v46 = vmul.f32 %v1585_v53, %v6480_v55  ;;  %v1608_v4 = vmul.f32 %v1585_v53, %v6482_v56  ;;  %v1589_v48 = vmul.f32 %v1585_v53, %v6458_v24 }
 0x282   :  { %v1581_v59 = vsub.f32 %v1570_v47, %v1579_v54  ;;  %v1607_v14 = vmul.f32 %v1585_v53, %v6460_v18  ;;  %v1588_v38 = vmul.f32 %v1585_v53, %v6428_v17  ;;  %v1606_v55 = vmul.f32 %v1585_v53, %v6430_v20  ;;  %v3754_v47 = vld [vmem:[%s7585_s6 + $0x80] sm:$0xff]  ;;  %v3767_v54 = vld [vmem:[%s7586_s7 + $0x70] sm:$0xff] }
 0x283   :  { %v1587_v56 = vmul.f32 %v1585_v53, %v6422_v12  ;;  %v1605_v29 = vmul.f32 %v1585_v53, %v6424_v30  ;;  %v1586_v17 = vmul.f32 %v1585_v53, %v6416_v5  ;;  %v1604_v20 = vmul.f32 %v1585_v53, %v6418_v3  ;;  %v1626_v3 = vld [vmem:[%s7584_s5 + $0x8] sm:$0xff]  ;;  %4878 = vmatpush3.msra.mxu0 %v3754_v47  ;;  %v3752_v53 = vld [vmem:[%s7585_s6 + $0x70] sm:$0xff]  ;;  %v1798_v47 = vld [vmem:[%s7586_s7 + $0x38] sm:$0xff] }
 0x284   :  { %v1596_v37 = vrot.slane %v1581_v59, %v1595_v58  ;;  %4879 = vmatprep.subr.mxu0 %v5363_v2  ;;  %v3751_v59 = vld [vmem:[%s7585_s6 + $0x68] sm:$0xff] }
 0x285   :  { %4880 = vmatpush3.msra.mxu0 %v3753_v1  ;;  %v1786_v1 = vld [vmem:[%s7585_s6 + $0x30] sm:$0xff] }
 0x286   :  { %v1603_v6 = vadd.f32 %v1596_v37, %v1592_v16  ;;  %v1617_v7 = vadd.f32 %v1610_v61, %v1596_v37  ;;  %v1602_v27 = vadd.f32 %v1596_v37, %v1591_v62  ;;  %v1616_v50 = vadd.f32 %v1609_v63, %v1596_v37  ;;  %4881 = vmatprep.subr.mxu0 %v5363_v2  ;;  %v3766_v16 = vld [vmem:[%s7586_s7 + $0x68] sm:$0xff]  ;;  %v3765_v61 = vld [vmem:[%s7586_s7 + $0x60] sm:$0xff]  ;;  %v3749_v62 = vld [vmem:[%s7585_s6 + $0x58] sm:$0xff] }
 0x287   :  { %v1601_v9 = vadd.f32 %v1596_v37, %v1590_v46  ;;  %v1615_v52 = vadd.f32 %v1608_v4, %v1596_v37  ;;  %v1600_v57 = vadd.f32 %v1596_v37, %v1589_v48  ;;  %v1614_v22 = vadd.f32 %v1607_v14, %v1596_v37  ;;  %4882 = vmatpush3.msra.mxu0 %v3752_v53  ;;  %v3764_v63 = vld [vmem:[%s7586_s7 + $0x58] sm:$0xff] }
 0x288   :  { %v1624_v35 = vmax.f32 %v1603_v6, %v1617_v7  ;;  %v1623_v15 = vmax.f32 %v1602_v27, %v1616_v50  ;;  %v1599_v24 = vadd.f32 %v1596_v37, %v1588_v38  ;;  %v1613_v23 = vadd.f32 %v1606_v55, %v1596_v37  ;;  %4883 = vmatprep.subr.mxu0 %v5363_v2 }
 0x289   :  { %v1622_v26 = vmax.f32 %v1601_v9, %v1615_v52  ;;  %v1621_v18 = vmax.f32 %v1600_v57, %v1614_v22  ;;  %v1598_v0 = vadd.f32 %v1596_v37, %v1587_v56  ;;  %v1612_v51 = vadd.f32 %v1605_v29, %v1596_v37  ;;  %4884 = vmatpush3.msra.mxu0 %v3751_v59  ;;  %v1796_v59 = vld [vmem:[%s7586_s7 + $0x28] sm:$0xff] }
 0x28a   :  { %4833 = vmatpush3.msra.mxu1 %v1624_v35  ;;  %v1620_v12 = vmax.f32 %v1599_v24, %v1613_v23  ;;  %v1597_v25 = vadd.f32 %v1596_v37, %v1586_v17  ;;  %v1611_v10 = vadd.f32 %v1604_v20, %v1596_v37  ;;  %4885 = vmatprep.subr.mxu0 %v5363_v2  ;;  %v3750_v37 = vld [vmem:[%s7585_s6 + $0x60] sm:$0xff] }
 0x28b   :  { %4834 = vmatprep.subr.mxu1 %v5363_v2  ;;  %v1619_v30 = vmax.f32 %v1598_v0, %v1612_v51  ;;  %4886 = vmatpush3.msra.mxu0 %v3750_v37  ;;  %v1795_v37 = vld [vmem:[%s7586_s7 + $0x20] sm:$0xff] }
 0x28c   :  { %4835 = vmatpush3.msra.mxu1 %v1623_v15  ;;  %v1618_v5 = vmax.f32 %v1597_v25, %v1611_v10  ;;  %4887 = vmatprep.subr.mxu0 %v5363_v2  ;;  %v1790_v25 = vld [vmem:[%s7585_s6 + $0x50] sm:$0xf] }
 0x28d   :  { %4836 = vmatprep.subr.mxu1 %v5363_v2  ;;  %4888 = vmatpush3.msra.mxu0 %v3749_v62  ;;  %v1801_v10 = vld [vmem:[%s7586_s7 + $0x50] sm:$0xf]  ;;  %v1794_v62 = vld [vmem:[%s7586_s7 + $0x18] sm:$0xff] }
 0x28e   :  { %4837 = vmatpush3.msra.mxu1 %v1622_v26  ;;  %4929 = vmatprep.subr.mxu0 %v5363_v2 }
 0x28f   :  { %4838 = vmatprep.subr.mxu1 %v5363_v2 }
 0x290   :  { %4839 = vmatpush3.msra.mxu1 %v1621_v18 }
 0x291   :  { %4840 = vmatprep.subr.mxu1 %v5363_v2 }
 0x292   :  { %4841 = vmatpush3.msra.mxu1 %v1620_v12 }
 0x293   :  { %4842 = vmatprep.subr.mxu1 %v5363_v2 }
 0x294   :  { %4843 = vmatpush3.msra.mxu1 %v1619_v30 }
 0x295   :  { %4844 = vmatprep.subr.mxu1 %v5363_v2 }
 0x296   :  { %4845 = vmatpush3.msra.mxu1 %v1618_v5 }
 0x297   :  { %4847 = vmatmul.mubr.msk.f32.vlgmr.msra.gmra.mxu1 %vm1632_vm10, %v1625_v33  ;;  %4898 = vmatprep.subr.mxu1 %v5363_v2 }
 0x298   :  { %4849 = vmatprep.mubr.msk.f32.mxu1 %vm5364_vm5, %v5363_v2  ;;  %4899 = vmatpush3.msk.msra.mxu1 %vm57_vm2, %v3774_v31 }
 0x299   :  { %4900 = vmatprep.subr.mxu1 %v5363_v2 }
 0x29a   :  { %4901 = vmatpush3.msra.mxu1 %v3773_v34  ;;  %v1788_v34 = vld [vmem:[%s7585_s6 + $0x40] sm:$0xff] }
 0x29b   :  { %4850 = vmatmul.mubr.msk.f32.gmra.mxu1 %vm1632_vm10, %v1626_v3  ;;  %4902 = vmatprep.subr.mxu1 %v5363_v2 }
 0x29c   :  { %4852 = vmatprep.mubr.msk.f32.mxu1 %vm5364_vm5, %v5363_v2  ;;  %4903 = vmatpush3.msra.mxu1 %v3772_v21 }
 0x29d   :  { %4904 = vmatprep.subr.mxu1 %v5363_v2 }
 0x29e   :  { %4905 = vmatpush3.msra.mxu1 %v3771_v40 }
 0x29f   :  { %4853 = vmatmul.mubr.msk.f32.gmra.mxu1 %vm1632_vm10, %v1627_v60  ;;  %4906 = vmatprep.subr.mxu1 %v5363_v2 }
 0x2a0   :  { %4855 = vmatprep.mubr.msk.f32.mxu1 %vm5364_vm5, %v5363_v2  ;;  %4907 = vmatpush3.msra.mxu1 %v3770_v43  ;;  %v1787_v43 = vld [vmem:[%s7585_s6 + $0x38] sm:$0xff] }
 0x2a1   :  { %4908 = vmatprep.subr.mxu1 %v5363_v2 }
 0x2a2   :  { %4909 = vmatpush3.msra.mxu1 %v3769_v49 }
 0x2a3   :  { %4856 = vmatmul.mubr.msk.f32.gmra.mxu1 %vm1632_vm10, %v1628_v45  ;;  %4910 = vmatprep.subr.mxu1 %v5363_v2  ;;  %v1789_v45 = vld [vmem:[%s7585_s6 + $0x48] sm:$0xff] }
 0x2a4   :  { %4858 = vmatprep.mubr.msk.f32.mxu1 %vm5364_vm5, %v5363_v2  ;;  %4911 = vmatpush3.msra.mxu1 %v3768_v8  ;;  %v1797_v8 = vld [vmem:[%s7586_s7 + $0x30] sm:$0xff] }
 0x2a5   :  { %4912 = vmatprep.subr.mxu1 %v5363_v2 }
 0x2a6   :  { %4913 = vmatpush3.msra.mxu1 %v3767_v54  ;;  %v1785_v54 = vld [vmem:[%s7585_s6 + $0x28] sm:$0xff] }
 0x2a7   :  { %4859 = vmatmul.mubr.msk.f32.gmra.mxu1 %vm1632_vm10, %v1629_v11  ;;  %4914 = vmatprep.subr.mxu1 %v5363_v2  ;;  %v1800_v11 = vld [vmem:[%s7586_s7 + $0x48] sm:$0xff] }
 0x2a8   :  { %4861 = vmatprep.mubr.msk.f32.mxu1 %vm5364_vm5, %v5363_v2  ;;  %4915 = vmatpush3.msra.mxu1 %v3766_v16  ;;  %v1784_v16 = vld [vmem:[%s7585_s6 + $0x20] sm:$0xff] }
 0x2a9   :  { %4916 = vmatprep.subr.mxu1 %v5363_v2 }
 0x2aa   :  { %4917 = vmatpush3.msra.mxu1 %v3765_v61  ;;  %v1783_v61 = vld [vmem:[%s7585_s6 + $0x18] sm:$0xff] }
 0x2ab   :  { %4862 = vmatmul.mubr.msk.f32.gmra.mxu1 %vm1632_vm10, %v1630_v42  ;;  %4918 = vmatprep.subr.mxu1 %v5363_v2 }
 0x2ac   :  { %4864 = vmatprep.mubr.msk.f32.mxu1 %vm5364_vm5, %v5363_v2  ;;  %4919 = vmatpush3.msra.mxu1 %v3764_v63  ;;  %v1782_v63 = vld [vmem:[%s7585_s6 + $0x10] sm:$0xff] }
 0x2ad   :  { %4960 = vmatprep.subr.mxu1 %v5363_v2 }
 0x2af   :  { %4865 = vmatmul.mubr.msk.f32.gmra.mxu1 %vm1632_vm10, %v1631_v44 }
 0x2b0   :  { %4920 = vmatprep.mubr.msk.f32.mxu1 %vm5364_vm5, %v5363_v2 }
 0x357   :  { %v1720_v46 = vpop.f32.mrf.mxu1 }
 0x359   :  { %v4848_v4 = vpop.f32.mrf.mxu1 }
 0x35a   :  { %v1781_v4 = vld [vmem:[%s7585_s6 + $0x8] sm:$0xff] }
 0x35b   :  { %v1725_v6 = vpop.f32.mrf.mxu1 }
 0x35d   :  { %v4851_v7 = vpop.f32.mrf.mxu1 }
 0x35e   :  { %v1780_v7 = vld [vmem:[%s7585_s6] sm:$0xff] }
 0x35f   :  { %v1730_v27 = vpop.f32.mrf.mxu1 }
 0x361   :  { %v4854_v50 = vpop.f32.mrf.mxu1 }
 0x363   :  { %v1735_v48 = vpop.f32.mrf.mxu1 }
 0x364   :  { %v1758_v52 = vrot.slane %v1735_v48, 4 }
 0x365   :  { %v4857_v35 = vpop.f32.mrf.mxu1 }
 0x366   :  { %v3812_v35 = vld [vmem:[%s7586_s7 + $0x100] sm:$0xf] }
 0x367   :  { %v1740_v9 = vpop.f32.mrf.mxu1 }
 0x368   :  { %v1759_v14 = vrot.slane %v1740_v9, 4  ;;  %v3796_v9 = vld [vmem:[%s7585_s6 + $0xf8] sm:$0xff] }
 0x369   :  { %v4860_v38 = vpop.f32.mrf.mxu1 }
 0x36a   :  { %v1760_v15 = vsel %vm57_vm2, %v1758_v52, %v1759_v14  ;;  %v3811_v52 = vld [vmem:[%s7586_s7 + $0xf8] sm:$0xff] }
 0x36b   :  { %v1745_v57 = vpop.f32.mrf.mxu1  ;;  %v6699_v55 = vmax.f32 %v1720_v46, %v1760_v15  ;;  %v1793_v46 = vld [vmem:[%s7586_s7 + $0x10] sm:$0xff] }
 0x36c   :  { %v1761_v22 = vrot.slane %v1745_v57, 4  ;;  %v3795_v15 = vld [vmem:[%s7585_s6 + $0xf0] sm:$0xff] }
 0x36d   :  { %v4863_v56 = vpop.f32.mrf.mxu1  ;;  %v1803_v17 = vrot.slane %v6699_v55, 1  ;;  %v2609_v20 = vrot.slane %v6699_v55, 4  ;;  %v2397_v30 = vrot.slane %v6699_v55, 3  ;;  %v3810_v57 = vld [vmem:[%s7586_s7 + $0xf0] sm:$0xff] }
 0x36e   :  { %v1762_v26 = vsel %vm57_vm2, %v1759_v14, %v1761_v22  ;;  %v3809_v56 = vld [vmem:[%s7586_s7 + $0xe8] sm:$0xff] }
 0x36f   :  { %v6702_v24 = vmax.f32 %v1725_v6, %v1762_v26  ;;  %v1750_v23 = vpop.f32.mrf.mxu1  ;;  %v1792_v6 = vld [vmem:[%s7586_s7 + $0x8] sm:$0xff]  ;;  %v3793_v26 = vld [vmem:[%s7585_s6 + $0xe0] sm:$0xff] }
 0x370   :  { %v1763_v29 = vrot.slane %v1750_v23, 4  ;;  %v3808_v23 = vld [vmem:[%s7586_s7 + $0xe0] sm:$0xff] }
 0x371   :  { %v1804_v18 = vrot.slane %v6702_v24, 1  ;;  %v4866_v0 = vpop.f32.mrf.mxu1  ;;  %v6707_v51 = vrot.slane %v6702_v24, 4  ;;  %v2398_v5 = vrot.slane %v6702_v24, 3  ;;  %v1808_v44 = vrot.slane %v6702_v24, 5 }
 0x372   :  { %v1764_v12 = vsel %vm57_vm2, %v1761_v22, %v1763_v29  ;;  %v6756_v39 = vmax.f32 %v1735_v48, %v1763_v29  ;;  %v3797_v48 = vld [vmem:[%s7585_s6 + $0x100] sm:$0xf]  ;;  %v3794_v22 = vld [vmem:[%s7585_s6 + $0xe8] sm:$0xff]  ;;  %v3792_v29 = vld [vmem:[%s7585_s6 + $0xd8] sm:$0xff] }
 0x373   :  { %v6719_v33 = vmax.f32 %v1730_v27, %v1764_v12  ;;  %v1805_v3 = vsel %vm95_vm3, %v1803_v17, %v1804_v18  ;;  %v6724_v60 = vsel %vm57_vm2, %v2609_v20, %v6707_v51  ;;  %v6735_v42 = vsel %vm845_vm1, %v2397_v30, %v2398_v5  ;;  %v1791_v27 = vld [vmem:[%s7586_s7] sm:$0xff]  ;;  %v3807_v17 = vld [vmem:[%s7586_s7 + $0xd8] sm:$0xff]  ;;  %v3806_v0 = vld [vmem:[%s7586_s7 + $0xd0] sm:$0xff] }
 0x374   :  { %4890 = vmatmul.mubr.msk.f32.vlgmr.msra.gmra.mxu0 %vm1383_vm9, %v1805_v3  ;;  %4921 = vmatmul.mubr.msk.f32.vlgmr.msra.gmra.mxu1 %vm1383_vm9, %v1805_v3  ;;  %v1811_v49 = vrot.slane %v6756_v39, 5  ;;  %v3805_v20 = vld [vmem:[%s7586_s7 + $0xc8] sm:$0xff]  ;;  %v3789_v12 = vld [vmem:[%s7585_s6 + $0xc0] sm:$0xff]  ;;  %v3803_v30 = vld [vmem:[%s7586_s7 + $0xb8] sm:$0xff]  ;;  %v2186_v3 = vrot.slane %v6702_v24, 2 }
 0x375   :  { %4930 = vmatpush3.msk.msra.mxu0 %vm57_vm2, %v1790_v25  ;;  %4961 = vmatpush3.msk.msra.mxu1 %vm57_vm2, %v1801_v10  ;;  %v1809_v19 = vrot.slane %v6719_v33, 5  ;;  %v2401_v31 = vrot.slane %v6719_v33, 7  ;;  %v6747_v32 = vsel %vm580_vm7, %v6707_v51, %v6719_v33  ;;  %v1776_v50 = vrot.slane %v6719_v33, 4  ;;  %v3804_v25 = vld [vmem:[%s7586_s7 + $0xc0] sm:$0xff]  ;;  %v3788_v10 = vld [vmem:[%s7585_s6 + $0xb8] sm:$0xff] }
 0x376   :  { %4931 = vmatprep.subr.mxu0 %v5363_v2  ;;  %4962 = vmatprep.subr.mxu1 %v5363_v2 }
 0x377   :  { %4932 = vmatpush3.msra.mxu0 %v1789_v45  ;;  %4963 = vmatpush3.msra.mxu1 %v1800_v11  ;;  %v1810_v21 = vsel %vm104_vm6, %v1808_v44, %v1809_v19  ;;  %v6768_v36 = vsel %vm580_vm7, %v2398_v5, %v2401_v31  ;;  %v1812_v53 = vsel %vm104_vm6, %v1809_v19, %v1811_v49  ;;  %v3787_v5 = vld [vmem:[%s7585_s6 + $0xb0] sm:$0xff]  ;;  %v2185_v11 = vrot.slane %v6699_v55, 2  ;;  %v3827_v44 = vld [vmem:[%s7585_s6 + $0x158] sm:$0xf]  ;;  %v3824_v49 = vld [vmem:[%s7585_s6 + $0x140] sm:$0xff] }
 0x378   :  { %4933 = vmatprep.subr.mxu0 %v5363_v2  ;;  %4964 = vmatprep.subr.mxu1 %v5363_v2  ;;  %v1814_v40 = vsel %vm580_vm7, %v1804_v18, %v1810_v21  ;;  %v1777_v14 = vsel %vm57_vm2, %v6707_v51, %v1776_v50  ;;  %v3791_v18 = vld [vmem:[%s7585_s6 + $0xd0] sm:$0xff]  ;;  %v3790_v51 = vld [vmem:[%s7585_s6 + $0xc8] sm:$0xff]  ;;  %v3842_v19 = vld [vmem:[%s7586_s7 + $0x158] sm:$0xf] }
 0x379   :  { %4892 = vmatprep.mubr.msk.f32.mxu0 %vm5364_vm5, %v5363_v2  ;;  %4923 = vmatprep.mubr.msk.f32.mxu1 %vm5364_vm5, %v5363_v2  ;;  %v1779_v38 = vsel %vm580_vm7, %v6702_v24, %v1777_v14  ;;  %v3802_v45 = vld [vmem:[%s7586_s7 + $0xb0] sm:$0xff]  ;;  %v2187_v24 = vsel %vm571_vm0, %v2185_v11, %v2186_v3  ;;  %v3870_v14 = vld [vmem:[%s7586_s7 + $0x1a0] sm:$0xff]  ;;  %v2876_v11 = vld [vmem:[%s7587_s8 + $0x28] sm:$0xff] }
 0x37a   :  { %4934 = vmatpush3.msra.mxu0 %v1788_v34  ;;  %4965 = vmatpush3.msra.mxu1 %v1799_v28  ;;  %v3826_v34 = vld [vmem:[%s7585_s6 + $0x150] sm:$0xff] }
 0x37b   :  { %4893 = vmatmul.mubr.msk.f32.gmra.mxu0 %vm1383_vm9, %v1814_v40  ;;  %4924 = vmatmul.mubr.msk.f32.gmra.mxu1 %vm1383_vm9, %v1814_v40  ;;  %v3841_v28 = vld [vmem:[%s7586_s7 + $0x150] sm:$0xff]  ;;  %v3825_v40 = vld [vmem:[%s7585_s6 + $0x148] sm:$0xff] }
 0x37c   :  { %4935 = vmatprep.subr.mxu0 %v5363_v2  ;;  %4966 = vmatprep.subr.mxu1 %v5363_v2 }
 0x37d   :  { %4936 = vmatpush3.msra.mxu0 %v1787_v43  ;;  %4967 = vmatpush3.msra.mxu1 %v1798_v47  ;;  %v3840_v43 = vld [vmem:[%s7586_s7 + $0x148] sm:$0xff]  ;;  %v2190_v47 = vrot.slane %v6756_v39, 6 }
 0x37e   :  { %4937 = vmatprep.subr.mxu0 %v5363_v2  ;;  %4968 = vmatprep.subr.mxu1 %v5363_v2 }
 0x37f   :  { %4895 = vmatprep.mubr.msk.f32.mxu0 %vm5364_vm5, %v5363_v2  ;;  %4926 = vmatprep.mubr.msk.f32.mxu1 %vm5364_vm5, %v5363_v2 }
 0x380   :  { %4938 = vmatpush3.msra.mxu0 %v1786_v1  ;;  %4969 = vmatpush3.msra.mxu1 %v1797_v8  ;;  %v3839_v1 = vld [vmem:[%s7586_s7 + $0x140] sm:$0xff] }
 0x381   :  { %4896 = vmatmul.mubr.msk.f32.gmra.mxu0 %vm1383_vm9, %v1812_v53  ;;  %4927 = vmatmul.mubr.msk.f32.gmra.mxu1 %vm1383_vm9, %v1812_v53  ;;  %v3823_v53 = vld [vmem:[%s7585_s6 + $0x138] sm:$0xff] }
 0x382   :  { %4939 = vmatprep.subr.mxu0 %v5363_v2  ;;  %4970 = vmatprep.subr.mxu1 %v5363_v2 }
 0x383   :  { %4940 = vmatpush3.msra.mxu0 %v1785_v54  ;;  %4971 = vmatpush3.msra.mxu1 %v1796_v59  ;;  %v3838_v54 = vld [vmem:[%s7586_s7 + $0x138] sm:$0xff]  ;;  %v3822_v59 = vld [vmem:[%s7585_s6 + $0x130] sm:$0xff] }
 0x384   :  { %4941 = vmatprep.subr.mxu0 %v5363_v2  ;;  %4972 = vmatprep.subr.mxu1 %v5363_v2 }
 0x385   :  { %4942 = vmatpush3.msra.mxu0 %v1784_v16  ;;  %4973 = vmatpush3.msra.mxu1 %v1795_v37  ;;  %v3837_v16 = vld [vmem:[%s7586_s7 + $0x130] sm:$0xff]  ;;  %v3821_v37 = vld [vmem:[%s7585_s6 + $0x128] sm:$0xff] }
 0x386   :  { %4943 = vmatprep.subr.mxu0 %v5363_v2  ;;  %4974 = vmatprep.subr.mxu1 %v5363_v2 }
 0x387   :  { %4944 = vmatpush3.msra.mxu0 %v1783_v61  ;;  %4975 = vmatpush3.msra.mxu1 %v1794_v62  ;;  %v3836_v61 = vld [vmem:[%s7586_s7 + $0x128] sm:$0xff]  ;;  %v3820_v62 = vld [vmem:[%s7585_s6 + $0x120] sm:$0xff] }
 0x388   :  { %4945 = vmatprep.subr.mxu0 %v5363_v2  ;;  %4976 = vmatprep.subr.mxu1 %v5363_v2 }
 0x389   :  { %4946 = vmatpush3.msra.mxu0 %v1782_v63  ;;  %4977 = vmatpush3.msra.mxu1 %v1793_v46  ;;  %v3835_v63 = vld [vmem:[%s7586_s7 + $0x120] sm:$0xff]  ;;  %v3819_v46 = vld [vmem:[%s7585_s6 + $0x118] sm:$0xff] }
 0x38a   :  { %4947 = vmatprep.subr.mxu0 %v5363_v2  ;;  %4978 = vmatprep.subr.mxu1 %v5363_v2 }
 0x38b   :  { %4948 = vmatpush3.msra.mxu0 %v1781_v4  ;;  %4979 = vmatpush3.msra.mxu1 %v1792_v6  ;;  %v3834_v4 = vld [vmem:[%s7586_s7 + $0x118] sm:$0xff]  ;;  %v3818_v6 = vld [vmem:[%s7585_s6 + $0x110] sm:$0xff] }
 0x38c   :  { %4949 = vmatprep.subr.mxu0 %v5363_v2  ;;  %4980 = vmatprep.subr.mxu1 %v5363_v2 }
 0x38d   :  { %4950 = vmatpush3.msra.mxu0 %v1780_v7  ;;  %4951 = vmatprep.mubr.msk.f32.mxu0 %vm5364_vm5, %v5363_v2  ;;  %v3833_v7 = vld [vmem:[%s7586_s7 + $0x110] sm:$0xff] }
 0x38e   :  { %4981 = vmatpush3.msra.mxu1 %v1791_v27  ;;  %4982 = vmatprep.mubr.msk.f32.mxu1 %vm5364_vm5, %v5363_v2  ;;  %v3817_v27 = vld [vmem:[%s7585_s6 + $0x108] sm:$0xff] }
 0x38f   :  { %4952 = vmatmul.mubr.msk.f32.vlgmr.msra.gmra.mxu0 %vm1383_vm9, %v6699_v55  ;;  %4983 = vmatmul.mubr.msk.f32.vlgmr.msra.gmra.mxu1 %vm1383_vm9, %v6699_v55  ;;  %v2189_v55 = vrot.slane %v6719_v33, 6  ;;  %v3852_v33 = vld [vmem:[%s7585_s6 + $0x188] sm:$0xff] }
 0x390   :  { %4991 = vmatprep.subr.mxu0 %v5363_v2  ;;  %5022 = vmatprep.subr.mxu1 %v5363_v2 }
 0x391   :  { %4992 = vmatpush3.msk.msra.mxu0 %vm57_vm2, %v3797_v48  ;;  %5023 = vmatpush3.msk.msra.mxu1 %vm57_vm2, %v3812_v35  ;;  %v2193_v21 = vsel %vm580_vm7, %v2186_v3, %v2189_v55  ;;  %v2191_v8 = vsel %vm580_vm7, %v2189_v55, %v2190_v47  ;;  %v3857_v48 = vld [vmem:[%s7585_s6 + $0x1b0] sm:$0xf] }
 0x392   :  { %4993 = vmatprep.subr.mxu0 %v5363_v2  ;;  %5024 = vmatprep.subr.mxu1 %v5363_v2  ;;  %v3872_v35 = vld [vmem:[%s7586_s7 + $0x1b0] sm:$0xf] }
 0x393   :  { %4954 = vmatprep.mubr.msk.f32.mxu0 %vm5364_vm5, %v5363_v2  ;;  %4985 = vmatprep.mubr.msk.f32.mxu1 %vm5364_vm5, %v5363_v2 }
 0x394   :  { %4994 = vmatpush3.msra.mxu0 %v3796_v9  ;;  %5025 = vmatpush3.msra.mxu1 %v3811_v52  ;;  %v3856_v9 = vld [vmem:[%s7585_s6 + $0x1a8] sm:$0xff] }
 0x395   :  { %4955 = vmatmul.mubr.msk.f32.gmra.mxu0 %vm1383_vm9, %v1779_v38  ;;  %4986 = vmatmul.mubr.msk.f32.gmra.mxu1 %vm1383_vm9, %v1779_v38  ;;  %v3871_v52 = vld [vmem:[%s7586_s7 + $0x1a8] sm:$0xff]  ;;  %v2402_v38 = vrot.slane %v6756_v39, 7 }
 0x396   :  { %4995 = vmatprep.subr.mxu0 %v5363_v2  ;;  %5026 = vmatprep.subr.mxu1 %v5363_v2 }
 0x397   :  { %4996 = vmatpush3.msra.mxu0 %v3795_v15  ;;  %5027 = vmatpush3.msra.mxu1 %v3810_v57  ;;  %v3854_v15 = vld [vmem:[%s7585_s6 + $0x198] sm:$0xff] }
 0x398   :  { %4997 = vmatprep.subr.mxu0 %v5363_v2  ;;  %5028 = vmatprep.subr.mxu1 %v5363_v2  ;;  %v3869_v57 = vld [vmem:[%s7586_s7 + $0x198] sm:$0xff] }
 0x399   :  { %4957 = vmatprep.mubr.msk.f32.mxu0 %vm5364_vm5, %v5363_v2  ;;  %4988 = vmatprep.mubr.msk.f32.mxu1 %vm5364_vm5, %v5363_v2 }
 0x39a   :  { %4998 = vmatpush3.msra.mxu0 %v3794_v22  ;;  %5029 = vmatpush3.msra.mxu1 %v3809_v56  ;;  %v3853_v22 = vld [vmem:[%s7585_s6 + $0x190] sm:$0xff] }
 0x39b   :  { %4958 = vmatmul.mubr.msk.f32.gmra.mxu0 %vm1383_vm9, %v1776_v50  ;;  %4989 = vmatmul.mubr.msk.f32.gmra.mxu1 %vm1383_vm9, %v1776_v50  ;;  %v3832_v50 = vld [vmem:[%s7586_s7 + $0x108] sm:$0xff]  ;;  %v3868_v56 = vld [vmem:[%s7586_s7 + $0x190] sm:$0xff] }
 0x39c   :  { %4999 = vmatprep.subr.mxu0 %v5363_v2  ;;  %5030 = vmatprep.subr.mxu1 %v5363_v2 }
 0x39d   :  { %5000 = vmatpush3.msra.mxu0 %v3793_v26  ;;  %5031 = vmatpush3.msra.mxu1 %v3808_v23  ;;  %v3851_v26 = vld [vmem:[%s7585_s6 + $0x180] sm:$0xff] }
 0x39e   :  { %5001 = vmatprep.subr.mxu0 %v5363_v2  ;;  %5032 = vmatprep.subr.mxu1 %v5363_v2  ;;  %v3866_v23 = vld [vmem:[%s7586_s7 + $0x180] sm:$0xff] }
 0x39f   :  { %5002 = vmatpush3.msra.mxu0 %v3792_v29  ;;  %5033 = vmatpush3.msra.mxu1 %v3807_v17  ;;  %v3850_v29 = vld [vmem:[%s7585_s6 + $0x178] sm:$0xff] }
 0x3a0   :  { %5003 = vmatprep.subr.mxu0 %v5363_v2  ;;  %5034 = vmatprep.subr.mxu1 %v5363_v2  ;;  %v3865_v17 = vld [vmem:[%s7586_s7 + $0x178] sm:$0xff] }
 0x3a1   :  { %5004 = vmatpush3.msra.mxu0 %v3791_v18  ;;  %5035 = vmatpush3.msra.mxu1 %v3806_v0  ;;  %v3849_v18 = vld [vmem:[%s7585_s6 + $0x170] sm:$0xff] }
 0x3a2   :  { %5005 = vmatprep.subr.mxu0 %v5363_v2  ;;  %5036 = vmatprep.subr.mxu1 %v5363_v2  ;;  %v3864_v0 = vld [vmem:[%s7586_s7 + $0x170] sm:$0xff] }
 0x3a3   :  { %5006 = vmatpush3.msra.mxu0 %v3790_v51  ;;  %5037 = vmatpush3.msra.mxu1 %v3805_v20  ;;  %v3848_v51 = vld [vmem:[%s7585_s6 + $0x168] sm:$0xff] }
 0x3a4   :  { %5007 = vmatprep.subr.mxu0 %v5363_v2  ;;  %5038 = vmatprep.subr.mxu1 %v5363_v2  ;;  %v3863_v20 = vld [vmem:[%s7586_s7 + $0x168] sm:$0xff] }
 0x3a5   :  { %5008 = vmatpush3.msra.mxu0 %v3789_v12  ;;  %5039 = vmatpush3.msra.mxu1 %v3804_v25  ;;  %v3847_v12 = vld [vmem:[%s7585_s6 + $0x160] sm:$0xff] }
 0x3a6   :  { %5009 = vmatprep.subr.mxu0 %v5363_v2  ;;  %5040 = vmatprep.subr.mxu1 %v5363_v2  ;;  %v3862_v25 = vld [vmem:[%s7586_s7 + $0x160] sm:$0xff] }
 0x3a7   :  { %5010 = vmatpush3.msra.mxu0 %v3788_v10  ;;  %5041 = vmatpush3.msra.mxu1 %v3803_v30 }
 0x3a8   :  { %5011 = vmatprep.subr.mxu0 %v5363_v2  ;;  %5042 = vmatprep.subr.mxu1 %v5363_v2 }
 0x3a9   :  { %5012 = vmatpush3.msra.mxu0 %v3787_v5  ;;  %5013 = vmatprep.mubr.msk.f32.mxu0 %vm5364_vm5, %v5363_v2  ;;  %v2877_v5 = vld [vmem:[%s7587_s8 + $0x30] sm:$0xff] }
 0x3aa   :  { %5043 = vmatpush3.msra.mxu1 %v3802_v45  ;;  %5044 = vmatprep.mubr.msk.f32.mxu1 %vm5364_vm5, %v5363_v2 }
 0x3ab   :  { %5014 = vmatmul.mubr.msk.f32.vlgmr.msra.gmra.mxu0 %vm1383_vm9, %v2187_v24  ;;  %5045 = vmatmul.mubr.msk.f32.vlgmr.msra.gmra.mxu1 %vm1383_vm9, %v2187_v24  ;;  %v2875_v24 = vld [vmem:[%s7587_s8 + $0x20] sm:$0xff] }
 0x3ac   :  { %5053 = vmatprep.subr.mxu0 %v5363_v2  ;;  %5084 = vmatprep.subr.mxu1 %v5363_v2 }
 0x3ad   :  { %5054 = vmatpush3.msk.msra.mxu0 %vm57_vm2, %v3827_v44  ;;  %5085 = vmatpush3.msk.msra.mxu1 %vm57_vm2, %v3842_v19  ;;  %v2874_v44 = vld [vmem:[%s7587_s8 + $0x18] sm:$0xff] }
 0x3ae   :  { %5055 = vmatprep.subr.mxu0 %v5363_v2  ;;  %5086 = vmatprep.subr.mxu1 %v5363_v2 }
 0x3af   :  { %5016 = vmatprep.mubr.msk.f32.mxu0 %vm5364_vm5, %v5363_v2  ;;  %5047 = vmatprep.mubr.msk.f32.mxu1 %vm5364_vm5, %v5363_v2 }
 0x3b0   :  { %5056 = vmatpush3.msra.mxu0 %v3826_v34  ;;  %5087 = vmatpush3.msra.mxu1 %v3841_v28  ;;  %v2873_v34 = vld [vmem:[%s7587_s8 + $0x10] sm:$0xff] }
 0x3b1   :  { %5017 = vmatmul.mubr.msk.f32.gmra.mxu0 %vm1383_vm9, %v2193_v21  ;;  %5048 = vmatmul.mubr.msk.f32.gmra.mxu1 %vm1383_vm9, %v2193_v21 }
 0x3b2   :  { %5057 = vmatprep.subr.mxu0 %v5363_v2  ;;  %5088 = vmatprep.subr.mxu1 %v5363_v2 }
 0x3b3   :  { %5058 = vmatpush3.msra.mxu0 %v3825_v40  ;;  %5089 = vmatpush3.msra.mxu1 %v3840_v43  ;;  %v2872_v40 = vld [vmem:[%s7587_s8 + $0x8] sm:$0xff]  ;;  %v2871_v43 = vld [vmem:[%s7587_s8] sm:$0xff] }
 0x3b4   :  { %5059 = vmatprep.subr.mxu0 %v5363_v2  ;;  %5090 = vmatprep.subr.mxu1 %v5363_v2 }
 0x3b5   :  { %5019 = vmatprep.mubr.msk.f32.mxu0 %vm5364_vm5, %v5363_v2  ;;  %5050 = vmatprep.mubr.msk.f32.mxu1 %vm5364_vm5, %v5363_v2 }
 0x3b6   :  { %5060 = vmatpush3.msra.mxu0 %v3824_v49  ;;  %5091 = vmatpush3.msra.mxu1 %v3839_v1 }
 0x3b7   :  { %5020 = vmatmul.mubr.msk.f32.gmra.mxu0 %vm1383_vm9, %v2191_v8  ;;  %5051 = vmatmul.mubr.msk.f32.gmra.mxu1 %vm1383_vm9, %v2191_v8 }
 0x3b8   :  { %5061 = vmatprep.subr.mxu0 %v5363_v2  ;;  %5092 = vmatprep.subr.mxu1 %v5363_v2 }
 0x3b9   :  { %5062 = vmatpush3.msra.mxu0 %v3823_v53  ;;  %5093 = vmatpush3.msra.mxu1 %v3838_v54 }
 0x3ba   :  { %5063 = vmatprep.subr.mxu0 %v5363_v2  ;;  %5094 = vmatprep.subr.mxu1 %v5363_v2 }
 0x3bb   :  { %5064 = vmatpush3.msra.mxu0 %v3822_v59  ;;  %5095 = vmatpush3.msra.mxu1 %v3837_v16 }
 0x3bc   :  { %5065 = vmatprep.subr.mxu0 %v5363_v2  ;;  %5096 = vmatprep.subr.mxu1 %v5363_v2 }
 0x3bd   :  { %5066 = vmatpush3.msra.mxu0 %v3821_v37  ;;  %5097 = vmatpush3.msra.mxu1 %v3836_v61 }
 0x3be   :  { %5067 = vmatprep.subr.mxu0 %v5363_v2  ;;  %5098 = vmatprep.subr.mxu1 %v5363_v2 }
 0x3bf   :  { %5068 = vmatpush3.msra.mxu0 %v3820_v62  ;;  %5099 = vmatpush3.msra.mxu1 %v3835_v63 }
 0x3c0   :  { %5069 = vmatprep.subr.mxu0 %v5363_v2  ;;  %5100 = vmatprep.subr.mxu1 %v5363_v2 }
 0x3c1   :  { %5070 = vmatpush3.msra.mxu0 %v3819_v46  ;;  %5101 = vmatpush3.msra.mxu1 %v3834_v4 }
 0x3c2   :  { %5071 = vmatprep.subr.mxu0 %v5363_v2  ;;  %5102 = vmatprep.subr.mxu1 %v5363_v2 }
 0x3c3   :  { %5072 = vmatpush3.msra.mxu0 %v3818_v6  ;;  %5103 = vmatpush3.msra.mxu1 %v3833_v7 }
 0x3c4   :  { %5073 = vmatprep.subr.mxu0 %v5363_v2  ;;  %5104 = vmatprep.subr.mxu1 %v5363_v2 }
 0x3c5   :  { %5074 = vmatpush3.msra.mxu0 %v3817_v27  ;;  %5075 = vmatprep.mubr.msk.f32.mxu0 %vm5364_vm5, %v5363_v2 }
 0x3c6   :  { %5105 = vmatpush3.msra.mxu1 %v3832_v50  ;;  %5106 = vmatprep.mubr.msk.f32.mxu1 %vm5364_vm5, %v5363_v2 }
 0x3c7   :  { %5076 = vmatmul.mubr.msk.f32.vlgmr.msra.gmra.mxu0 %vm1383_vm9, %v6735_v42  ;;  %5107 = vmatmul.mubr.msk.f32.vlgmr.msra.gmra.mxu1 %vm1383_vm9, %v6735_v42  ;;  %v3855_v42 = vld [vmem:[%s7585_s6 + $0x1a0] sm:$0xff] }
 0x3c8   :  { %5115 = vmatprep.subr.mxu0 %v5363_v2  ;;  %5146 = vmatprep.subr.mxu1 %v5363_v2 }
 0x3c9   :  { %5116 = vmatpush3.msk.msra.mxu0 %vm57_vm2, %v3857_v48  ;;  %5147 = vmatpush3.msk.msra.mxu1 %vm57_vm2, %v3872_v35 }
 0x3ca   :  { %5117 = vmatprep.subr.mxu0 %v5363_v2  ;;  %5148 = vmatprep.subr.mxu1 %v5363_v2 }
 0x3cb   :  { %5078 = vmatprep.mubr.msk.f32.mxu0 %vm5364_vm5, %v5363_v2  ;;  %5109 = vmatprep.mubr.msk.f32.mxu1 %vm5364_vm5, %v5363_v2 }
 0x3cc   :  { %5118 = vmatpush3.msra.mxu0 %v3856_v9  ;;  %5149 = vmatpush3.msra.mxu1 %v3871_v52 }
 0x3cd   :  { %5079 = vmatmul.mubr.msk.f32.gmra.mxu0 %vm1383_vm9, %v6768_v36  ;;  %5110 = vmatmul.mubr.msk.f32.gmra.mxu1 %vm1383_vm9, %v6768_v36  ;;  %v2403_v36 = vsel %vm854_vm8, %v2401_v31, %v2402_v38  ;;  %v3867_v31 = vld [vmem:[%s7586_s7 + $0x188] sm:$0xff] }
 0x3ce   :  { %5119 = vmatprep.subr.mxu0 %v5363_v2  ;;  %5150 = vmatprep.subr.mxu1 %v5363_v2 }
 0x3cf   :  { %5120 = vmatpush3.msra.mxu0 %v3855_v42  ;;  %5151 = vmatpush3.msra.mxu1 %v3870_v14 }
 0x3d0   :  { %5121 = vmatprep.subr.mxu0 %v5363_v2  ;;  %5152 = vmatprep.subr.mxu1 %v5363_v2 }
 0x3d1   :  { %5081 = vmatprep.mubr.msk.f32.mxu0 %vm5364_vm5, %v5363_v2  ;;  %5112 = vmatprep.mubr.msk.f32.mxu1 %vm5364_vm5, %v5363_v2 }
 0x3d2   :  { %5122 = vmatpush3.msra.mxu0 %v3854_v15  ;;  %5153 = vmatpush3.msra.mxu1 %v3869_v57 }
 0x3d3   :  { %5082 = vmatmul.mubr.msk.f32.gmra.mxu0 %vm1383_vm9, %v2403_v36  ;;  %5113 = vmatmul.mubr.msk.f32.gmra.mxu1 %vm1383_vm9, %v2403_v36 }
 0x3d4   :  { %5123 = vmatprep.subr.mxu0 %v5363_v2  ;;  %5154 = vmatprep.subr.mxu1 %v5363_v2 }
 0x3d5   :  { %5124 = vmatpush3.msra.mxu0 %v3853_v22  ;;  %5155 = vmatpush3.msra.mxu1 %v3868_v56 }
 0x3d6   :  { %5125 = vmatprep.subr.mxu0 %v5363_v2  ;;  %5156 = vmatprep.subr.mxu1 %v5363_v2 }
 0x3d7   :  { %5126 = vmatpush3.msra.mxu0 %v3852_v33  ;;  %5157 = vmatpush3.msra.mxu1 %v3867_v31 }
 0x3d8   :  { %5127 = vmatprep.subr.mxu0 %v5363_v2  ;;  %5158 = vmatprep.subr.mxu1 %v5363_v2 }
 0x3d9   :  { %5128 = vmatpush3.msra.mxu0 %v3851_v26  ;;  %5159 = vmatpush3.msra.mxu1 %v3866_v23 }
 0x3da   :  { %5129 = vmatprep.subr.mxu0 %v5363_v2  ;;  %5160 = vmatprep.subr.mxu1 %v5363_v2 }
 0x3db   :  { %5130 = vmatpush3.msra.mxu0 %v3850_v29  ;;  %5161 = vmatpush3.msra.mxu1 %v3865_v17 }
 0x3dc   :  { %5131 = vmatprep.subr.mxu0 %v5363_v2  ;;  %5162 = vmatprep.subr.mxu1 %v5363_v2 }
 0x3dd   :  { %5132 = vmatpush3.msra.mxu0 %v3849_v18  ;;  %5163 = vmatpush3.msra.mxu1 %v3864_v0 }
 0x3de   :  { %5133 = vmatprep.subr.mxu0 %v5363_v2  ;;  %5164 = vmatprep.subr.mxu1 %v5363_v2 }
 0x3df   :  { %5134 = vmatpush3.msra.mxu0 %v3848_v51  ;;  %5165 = vmatpush3.msra.mxu1 %v3863_v20 }
 0x3e0   :  { %5135 = vmatprep.subr.mxu0 %v5363_v2  ;;  %5166 = vmatprep.subr.mxu1 %v5363_v2 }
 0x3e1   :  { %5136 = vmatpush3.msra.mxu0 %v3847_v12  ;;  %5137 = vmatprep.mubr.msk.f32.mxu0 %vm5364_vm5, %v5363_v2 }
 0x3e2   :  { %5167 = vmatpush3.msra.mxu1 %v3862_v25  ;;  %5168 = vmatprep.mubr.msk.f32.mxu1 %vm5364_vm5, %v5363_v2 }
 0x3e3   :  { %5138 = vmatmul.mubr.msk.f32.vlgmr.msra.gmra.mxu0 %vm1383_vm9, %v6724_v60  ;;  %5169 = vmatmul.mubr.msk.f32.vlgmr.msra.gmra.mxu1 %vm1383_vm9, %v6724_v60  ;;  %v2880_v60 = vld [vmem:[%s7587_s8 + $0x48] sm:$0xff] }
 0x3e4   :  { %5140 = vmatprep.mubr.msk.f32.mxu0 %vm5364_vm5, %v5363_v2  ;;  %5171 = vmatprep.mubr.msk.f32.mxu1 %vm5364_vm5, %v5363_v2 }
 0x3e5   :  { %5177 = vmatprep.subr.mxu0 %v5363_v2  ;;  %5215 = vmatprep.subr.mxu1 %v5363_v2 }
 0x3e6   :  { %5178 = vmatpush3.msra.mxu0 %v2880_v60 }
 0x3e7   :  { %5141 = vmatmul.mubr.msk.f32.gmra.mxu0 %vm1383_vm9, %v6747_v32  ;;  %5172 = vmatmul.mubr.msk.f32.gmra.mxu1 %vm1383_vm9, %v6747_v32  ;;  %v2879_v32 = vld [vmem:[%s7587_s8 + $0x40] sm:$0xff] }
 0x3e8   :  { %5143 = vmatprep.mubr.msk.f32.mxu0 %vm5364_vm5, %v5363_v2  ;;  %5174 = vmatprep.mubr.msk.f32.mxu1 %vm5364_vm5, %v5363_v2 }
 0x3e9   :  { %5179 = vmatprep.subr.mxu0 %v5363_v2 }
 0x3ea   :  { %5180 = vmatpush3.msra.mxu0 %v2879_v32 }
 0x3eb   :  { %5144 = vmatmul.mubr.msk.f32.gmra.mxu0 %vm1383_vm9, %v6756_v39  ;;  %5175 = vmatmul.mubr.msk.f32.gmra.mxu1 %vm1383_vm9, %v6756_v39  ;;  %v2878_v39 = vld [vmem:[%s7587_s8 + $0x38] sm:$0xff] }
 0x3ec   :  { %5197 = vmatprep.mubr.msk.f32.mxu0 %vm5364_vm5, %v5363_v2  ;;  %5235 = vmatprep.mubr.msk.f32.mxu1 %vm5364_vm5, %v5363_v2 }
 0x3ed   :  { %5181 = vmatprep.subr.mxu0 %v5363_v2 }
 0x3ee   :  { %5182 = vmatpush3.msra.mxu0 %v2878_v39 }
 0x3ef   :  { %5183 = vmatprep.subr.mxu0 %v5363_v2 }
 0x3f0   :  { %5184 = vmatpush3.msra.mxu0 %v2877_v5 }
 0x3f1   :  { %5185 = vmatprep.subr.mxu0 %v5363_v2 }
 0x3f2   :  { %5186 = vmatpush3.msra.mxu0 %v2876_v11 }
 0x3f3   :  { %5187 = vmatprep.subr.mxu0 %v5363_v2 }
 0x3f4   :  { %5188 = vmatpush3.msra.mxu0 %v2875_v24 }
 0x3f5   :  { %5189 = vmatprep.subr.mxu0 %v5363_v2 }
 0x3f6   :  { %5190 = vmatpush3.msra.mxu0 %v2874_v44 }
 0x3f7   :  { %5191 = vmatprep.subr.mxu0 %v5363_v2 }
 0x3f8   :  { %5192 = vmatpush3.msra.mxu0 %v2873_v34 }
 0x3f9   :  { %5193 = vmatprep.subr.mxu0 %v5363_v2 }
 0x3fa   :  { %5194 = vmatpush3.msra.mxu0 %v2872_v40 }
 0x3fb   :  { %5195 = vmatprep.subr.mxu0 %v5363_v2 }
 0x3fc   :  { %5196 = vmatpush3.msra.mxu0 %v2871_v43 }
 0x3fd   :  { %5200 = vmatprep.subr.mxu0 %v5363_v2 }
 0x434   :  { %v1903_v10 = vpop.f32.mrf.mxu0  ;;  %v1998_v30 = vpop.f32.mrf.mxu1 }
 0x436   :  { %v4891_v3 = vpop.f32.mrf.mxu0  ;;  %v4922_v45 = vpop.f32.mrf.mxu1 }
 0x43b   :  { %v1908_v19 = vpop.f32.mrf.mxu0  ;;  %v2003_v55 = vpop.f32.mrf.mxu1 }
 0x43d   :  { %v4894_v28 = vpop.f32.mrf.mxu0  ;;  %v4925_v21 = vpop.f32.mrf.mxu1 }
 0x441   :  { %v1913_v47 = vpop.f32.mrf.mxu0  ;;  %v2008_v49 = vpop.f32.mrf.mxu1 }
 0x443   :  { %v4897_v1 = vpop.f32.mrf.mxu0  ;;  %v4928_v8 = vpop.f32.mrf.mxu1 }
 0x44f   :  { %v2088_v53 = vpop.f32.mrf.mxu0  ;;  %v2171_v54 = vpop.f32.mrf.mxu1 }
 0x450   :  { %v2089_v59 = vadd.f32 %v2088_v53, %v1903_v10  ;;  %v2172_v16 = vadd.f32 %v2171_v54, %v1998_v30 }
 0x451   :  { %v4953_v37 = vpop.f32.mrf.mxu0  ;;  %v4984_v61 = vpop.f32.mrf.mxu1 }
 0x455   :  { %v2093_v62 = vpop.f32.mrf.mxu0  ;;  %v2176_v63 = vpop.f32.mrf.mxu1 }
 0x456   :  { %v2094_v46 = vadd.f32 %v2093_v62, %v1908_v19  ;;  %v2177_v4 = vadd.f32 %v2176_v63, %v2003_v55 }
 0x457   :  { %v4956_v6 = vpop.f32.mrf.mxu0  ;;  %v4987_v7 = vpop.f32.mrf.mxu1 }
 0x45b   :  { %v2098_v27 = vpop.f32.mrf.mxu0  ;;  %v2181_v50 = vpop.f32.mrf.mxu1 }
 0x45c   :  { %v2099_v48 = vadd.f32 %v2098_v27, %v1913_v47  ;;  %v2182_v35 = vadd.f32 %v2181_v50, %v2008_v49 }
 0x45d   :  { %v4959_v9 = vpop.f32.mrf.mxu0  ;;  %v4990_v52 = vpop.f32.mrf.mxu1 }
 0x46b   :  { %v2282_v42 = vpop.f32.mrf.mxu0  ;;  %v2377_v14 = vpop.f32.mrf.mxu1 }
 0x46c   :  { %v2391_v30 = vadd.f32 %v2282_v42, %v2089_v59  ;;  %v2394_v5 = vadd.f32 %v2377_v14, %v2172_v16 }
 0x46d   :  { %v5015_v38 = vpop.f32.mrf.mxu0  ;;  %v5046_v15 = vpop.f32.mrf.mxu1 }
 0x471   :  { %v2287_v57 = vpop.f32.mrf.mxu0  ;;  %v2382_v36 = vpop.f32.mrf.mxu1 }
 0x472   :  { %v2392_v44 = vadd.f32 %v2287_v57, %v2094_v46  ;;  %v2395_v19 = vadd.f32 %v2382_v36, %v2177_v4 }
 0x473   :  { %v5018_v22 = vpop.f32.mrf.mxu0  ;;  %v5049_v56 = vpop.f32.mrf.mxu1 }
 0x477   :  { %v2292_v33 = vpop.f32.mrf.mxu0  ;;  %v2387_v31 = vpop.f32.mrf.mxu1 }
 0x478   :  { %v2393_v47 = vadd.f32 %v2292_v33, %v2099_v48  ;;  %v2396_v49 = vadd.f32 %v2387_v31, %v2182_v35 }
 0x479   :  { %v5021_v26 = vpop.f32.mrf.mxu0  ;;  %v5052_v23 = vpop.f32.mrf.mxu1 }
 0x487   :  { %v2494_v29 = vpop.f32.mrf.mxu0  ;;  %v2589_v17 = vpop.f32.mrf.mxu1 }
 0x488   :  { %v2603_v3 = vadd.f32 %v2494_v29, %v2391_v30  ;;  %v2606_v45 = vadd.f32 %v2589_v17, %v2394_v5 }
 0x489   :  { %v5077_v18 = vpop.f32.mrf.mxu0  ;;  %v5108_v0 = vpop.f32.mrf.mxu1 }
 0x48d   :  { %v2499_v51 = vpop.f32.mrf.mxu0  ;;  %v2594_v20 = vpop.f32.mrf.mxu1 }
 0x48e   :  { %v2604_v40 = vadd.f32 %v2499_v51, %v2392_v44  ;;  %v2607_v43 = vadd.f32 %v2594_v20, %v2395_v19 }
 0x48f   :  { %v5080_v12 = vpop.f32.mrf.mxu0  ;;  %v5111_v25 = vpop.f32.mrf.mxu1 }
 0x493   :  { %v2504_v60 = vpop.f32.mrf.mxu0  ;;  %v2599_v32 = vpop.f32.mrf.mxu1 }
 0x494   :  { %v2605_v59 = vadd.f32 %v2504_v60, %v2393_v47  ;;  %v2608_v16 = vadd.f32 %v2599_v32, %v2396_v49 }
 0x495   :  { %v5083_v39 = vpop.f32.mrf.mxu0  ;;  %v5114_v10 = vpop.f32.mrf.mxu1 }
 0x4a3   :  { %v2701_v11 = vpop.f32.mrf.mxu0  ;;  %v2796_v24 = vpop.f32.mrf.mxu1 }
 0x4a4   :  { %v7260_v55 = vadd.f32 %v2701_v11, %v2603_v3  ;;  %v7262_v34 = vadd.f32 %v2796_v24, %v2606_v45 }
 0x4a5   :  { %v5139_v28 = vpop.f32.mrf.mxu0  ;;  %v5170_v21 = vpop.f32.mrf.mxu1 }
 0x4a6   :  { %v2841_v37 = vmul.f32 %v7260_v55, %v7260_v55  ;;  %v2855_v61 = vmul.f32 %v7262_v34, %v7262_v34  ;;  %v2817_v27 = vsel %vm2816_vm11, %v7260_v55, 0.0  ;;  %v2829_v50 = vsel %vm2816_vm11, %v7262_v34, 0.0 }
 0x4a7   :  { %v2706_v1 = vpop.f32.mrf.mxu0  ;;  %v2801_v8 = vpop.f32.mrf.mxu1 }
 0x4a8   :  { %v7264_v53 = vadd.f32 %v2706_v1, %v2604_v40  ;;  %v7266_v54 = vadd.f32 %v2801_v8, %v2607_v43  ;;  %v2844_v38 = vsel %vm2816_vm11, %v2841_v37, 0.0  ;;  %v2858_v15 = vsel %vm2816_vm11, %v2855_v61, 0.0 }
 0x4a9   :  { %v5142_v62 = vpop.f32.mrf.mxu0  ;;  %v5173_v63 = vpop.f32.mrf.mxu1 }
 0x4aa   :  { %v2818_v46 = vsel %vm2816_vm11, %v7264_v53, 0.0  ;;  %v2842_v4 = vmul.f32 %v7264_v53, %v7264_v53  ;;  %v2830_v6 = vsel %vm2816_vm11, %v7266_v54, 0.0  ;;  %v2856_v7 = vmul.f32 %v7266_v54, %v7266_v54 }
 0x4ab   :  { %v2711_v48 = vpop.f32.mrf.mxu0  ;;  %v2806_v35 = vpop.f32.mrf.mxu1  ;;  %v2819_v57 = vadd.f32 %v2818_v46, %v2817_v27  ;;  %v2831_v36 = vadd.f32 %v2830_v6, %v2829_v50  ;;  %v3113_v6 = vld [vmem:[%s7590_s11 + $0x40] sm:$0xff] }
 0x4ac   :  { %v2845_v9 = vsel %vm2816_vm11, %v2842_v4, 0.0  ;;  %v2859_v52 = vsel %vm2816_vm11, %v2856_v7, 0.0  ;;  %v7286_v42 = vadd.f32 %v2711_v48, %v2605_v59  ;;  %v7288_v14 = vadd.f32 %v2806_v35, %v2608_v16  ;;  %v3114_v4 = vld [vmem:[%s7590_s11 + $0x48] sm:$0xff] }
 0x4ad   :  { %v5145_v22 = vpop.f32.mrf.mxu0  ;;  %v5176_v56 = vpop.f32.mrf.mxu1  ;;  %v2846_v29 = vadd.f32 %v2845_v9, %v2844_v38  ;;  %v2860_v17 = vadd.f32 %v2859_v52, %v2858_v15  ;;  %5216 = vmatpush3.msra.mxu1 %v3114_v4  ;;  %v2960_v15 = vld [vmem:[%s7588_s9] sm:$0x3] }
 0x4ae   :  { %v2821_v33 = vsel %vm2820_vm12, %v7286_v42, 0.0  ;;  %v2843_v31 = vmul.f32 %v7286_v42, %v7286_v42  ;;  %v2832_v26 = vsel %vm2820_vm12, %v7288_v14, 0.0  ;;  %v2857_v23 = vmul.f32 %v7288_v14, %v7288_v14  ;;  %5217 = vmatprep.subr.mxu1 %v5363_v2 }
 0x4af   :  { %v2822_v18 = vadd.f32 %v2821_v33, %v2819_v57  ;;  %v2833_v0 = vadd.f32 %v2832_v26, %v2831_v36  ;;  %5218 = vmatpush3.msra.mxu1 %v3113_v6 }
 0x4b0   :  { %v2847_v51 = vsel %vm2820_vm12, %v2843_v31, 0.0  ;;  %v2861_v20 = vsel %vm2820_vm12, %v2857_v23, 0.0  ;;  %5219 = vmatprep.subr.mxu1 %v5363_v2 }
 0x4b1   :  { %v2823_v12 = vrot.slane %v2822_v18, 4  ;;  %v2848_v25 = vadd.f32 %v2847_v51, %v2846_v29  ;;  %v2834_v60 = vrot.slane %v2833_v0, 4  ;;  %v2862_v32 = vadd.f32 %v2861_v20, %v2860_v17 }
 0x4b3   :  { %v2824_v39 = vadd.f32 %v2823_v12, %v2822_v18  ;;  %v2849_v10 = vrot.slane %v2848_v25, 4  ;;  %v2835_v30 = vadd.f32 %v2834_v60, %v2833_v0  ;;  %v2863_v5 = vrot.slane %v2862_v32, 4 }
 0x4b5   :  { %v2825_v3 = vrot.slane %v2824_v39, 2  ;;  %v2850_v45 = vadd.f32 %v2849_v10, %v2848_v25  ;;  %v2836_v11 = vrot.slane %v2835_v30, 2  ;;  %v2864_v24 = vadd.f32 %v2863_v5, %v2862_v32  ;;  %v3891_v10 = vld [vmem:[%s7590_s11 + $0x88] sm:$0xff]  ;;  %v3890_v5 = vld [vmem:[%s7590_s11 + $0x80] sm:$0xff] }
 0x4b7   :  { %v2826_v44 = vadd.f32 %v2825_v3, %v2824_v39  ;;  %v2851_v19 = vrot.slane %v2850_v45, 2  ;;  %v2837_v28 = vadd.f32 %v2836_v11, %v2835_v30  ;;  %v2865_v21 = vrot.slane %v2864_v24, 2  ;;  %v3112_v39 = vld [vmem:[%s7590_s11 + $0x38] sm:$0xff]  ;;  %v3111_v30 = vld [vmem:[%s7590_s11 + $0x30] sm:$0xff]  ;;  %v3110_v3 = vld [vmem:[%s7590_s11 + $0x28] sm:$0xff] }
 0x4b8   :  { %5220 = vmatpush3.msra.mxu1 %v3112_v39  ;;  %v3109_v11 = vld [vmem:[%s7590_s11 + $0x20] sm:$0xff] }
 0x4b9   :  { %v2827_v40 = vrot.slane %v2826_v44, 1  ;;  %v2852_v43 = vadd.f32 %v2851_v19, %v2850_v45  ;;  %v2838_v47 = vrot.slane %v2837_v28, 1  ;;  %v2866_v49 = vadd.f32 %v2865_v21, %v2864_v24  ;;  %5221 = vmatprep.subr.mxu1 %v5363_v2  ;;  %v3889_v45 = vld [vmem:[%s7590_s11 + $0x78] sm:$0xff]  ;;  %v3888_v24 = vld [vmem:[%s7590_s11 + $0x70] sm:$0xff]  ;;  %v3887_v19 = vld [vmem:[%s7590_s11 + $0x68] sm:$0xff] }
 0x4ba   :  { %5222 = vmatpush3.msra.mxu1 %v3111_v30  ;;  %v3886_v21 = vld [vmem:[%s7590_s11 + $0x60] sm:$0xff]  ;;  %v3919_v30 = vld [vmem:[%s7590_s11 + $0x150] sm:$0xff] }
 0x4bb   :  { %v2828_v1 = vadd.f32 %v2827_v40, %v2826_v44  ;;  %v2853_v8 = vrot.slane %v2852_v43, 1  ;;  %v2839_v59 = vadd.f32 %v2838_v47, %v2837_v28  ;;  %v2867_v16 = vrot.slane %v2866_v49, 1  ;;  %5223 = vmatprep.subr.mxu1 %v5363_v2  ;;  %v3108_v44 = vld [vmem:[%s7590_s11 + $0x18] sm:$0xff]  ;;  %v3107_v28 = vld [vmem:[%s7590_s11 + $0x10] sm:$0xff]  ;;  %v3106_v40 = vld [vmem:[%s7590_s11 + $0x8] sm:$0xff] }
 0x4bc   :  { %5224 = vmatpush3.msra.mxu1 %v3110_v3  ;;  %v3105_v47 = vld [vmem:[%s7590_s11] sm:$0xff] }
 0x4bd   :  { %v2854_v37 = vadd.f32 %v2853_v8, %v2852_v43  ;;  %v2868_v61 = vadd.f32 %v2867_v16, %v2866_v49  ;;  %v2840_v62 = vadd.f32 %v2839_v59, %v2828_v1  ;;  %5225 = vmatprep.subr.mxu1 %v5363_v2  ;;  %v3885_v43 = vld [vmem:[%s7590_s11 + $0x58] sm:$0xff]  ;;  %v3884_v49 = vld [vmem:[%s7590_s11 + $0x50] sm:$0xff]  ;;  %v3921_v39 = vld [vmem:[%s7590_s11 + $0x160] sm:$0xff] }
 0x4be   :  { %5226 = vmatpush3.msra.mxu1 %v3109_v11  ;;  %v3917_v3 = vld [vmem:[%s7590_s11 + $0x140] sm:$0xff] }
 0x4bf   :  { %v2869_v63 = vadd.f32 %v2868_v61, %v2854_v37  ;;  %5227 = vmatprep.subr.mxu1 %v5363_v2 }
 0x4c0   :  { %5228 = vmatpush3.msra.mxu1 %v3108_v44 }
 0x4c1   :  { %v2870_v46 = vsel %vm854_vm8, %v2840_v62, %v2869_v63  ;;  %5229 = vmatprep.subr.mxu1 %v5363_v2 }
 0x4c2   :  { %5198 = vmatmul.mubr.msk.f32.vlgmr.msra.gmra.mxu0 %vm2816_vm11, %v2870_v46  ;;  %5230 = vmatpush3.msra.mxu1 %v3107_v28 }
 0x4c3   :  { %5206 = vmatprep.mubr.msk.f32.mxu0 %vm5364_vm5, %v5363_v2  ;;  %5231 = vmatprep.subr.mxu1 %v5363_v2 }
 0x4c4   :  { %5232 = vmatpush3.msra.mxu1 %v3106_v40 }
 0x4c5   :  { %5233 = vmatprep.subr.mxu1 %v5363_v2 }
 0x4c6   :  { %5234 = vmatpush3.msra.mxu1 %v3105_v47 }
 0x4c7   :  { %5261 = vmatprep.subr.mxu1 %v5363_v2 }
 0x582   :  { %v2950_v7 = vpop.f32.mrf.mxu0 }
 0x583   :  { %v2954_v27 = vmul.f32 %v2950_v7, %v2950_v7 }
 0x584   :  { %v5199_v50 = vpop.f32.mrf.mxu0 }
 0x585   :  { %v2956_v48 = vrot.slane %v2954_v27, 7  ;;  %v3904_v50 = vld [vmem:[%s7590_s11 + $0xe8] sm:$0xff] }
 0x587   :  { %v2958_v35 = vsub.f32 %v2950_v7, %v2956_v48  ;;  %v3915_v48 = vld [vmem:[%s7590_s11 + $0x138] sm:$0xff] }
 0x589   :  { %v2959_v9 = vmax.f32 %v2958_v35, 0.0 }
 0x58b   :  { %v2961_v52 = vadd.f32 1e-05, %v2959_v9 }
 0x58d   :  { %5335 = vrsqrt.f32 %v2961_v52  ;;  %v3903_v52 = vld [vmem:[%s7590_s11 + $0xe0] sm:$0xff] }
 0x59a   :  { %v5336_v38 = vpop.eup %5335 }
 0x59b   :  { %v2964_v57 = vrot.slane %v5336_v38, 1  ;;  %v3914_v38 = vld [vmem:[%s7590_s11 + $0x130] sm:$0xff] }
 0x59d   :  { %v2966_v36 = vmul.f32 %v2964_v57, %v2960_v15  ;;  %v3913_v57 = vld [vmem:[%s7590_s11 + $0x128] sm:$0xff] }
 0x59f   :  { %v2967_v22 = vmul.f32 %v2966_v36, %v2950_v7  ;;  %v2975_v56 = vrot.slane %v2966_v36, %v1584_v13  ;;  %v3901_v36 = vld [vmem:[%s7590_s11 + $0xd0] sm:$0xff] }
 0x5a1   :  { %v2969_v33 = vrot.slane %v2967_v22, 7  ;;  %v2978_v26 = vmul.f32 %v2975_v56, %v7286_v42  ;;  %v2988_v29 = vmul.f32 %v2975_v56, %v7288_v14  ;;  %v2977_v17 = vmul.f32 %v2975_v56, %v7264_v53  ;;  %v3892_v53 = vld [vmem:[%s7590_s11 + $0x90] sm:$0xff]  ;;  %v3912_v22 = vld [vmem:[%s7590_s11 + $0x120] sm:$0xff] }
 0x5a2   :  { %v2987_v18 = vmul.f32 %v2975_v56, %v7266_v54  ;;  %v2976_v0 = vmul.f32 %v2975_v56, %v7260_v55  ;;  %v2986_v51 = vmul.f32 %v2975_v56, %v7262_v34  ;;  %v2995_v55 = vld [vmem:[%s7589_s10] sm:$0xff]  ;;  %v3893_v34 = vld [vmem:[%s7590_s11 + $0x98] sm:$0xff]  ;;  %v2996_v54 = vld [vmem:[%s7589_s10 + $0x8] sm:$0xff] }
 0x5a3   :  { %v2971_v31 = vsub.f32 %v2960_v15, %v2969_v33  ;;  %v2997_v14 = vld [vmem:[%s7589_s10 + $0x10] sm:$0xf]  ;;  %v3902_v15 = vld [vmem:[%s7590_s11 + $0xd8] sm:$0xff]  ;;  %v3900_v56 = vld [vmem:[%s7590_s11 + $0xc8] sm:$0xff] }
 0x5a4   :  { %v3911_v33 = vld [vmem:[%s7590_s11 + $0x118] sm:$0xff] }
 0x5a5   :  { %v2982_v23 = vrot.slane %v2971_v31, %v1595_v58  ;;  %v3899_v31 = vld [vmem:[%s7590_s11 + $0xc0] sm:$0xff] }
 0x5a7   :  { %v2985_v20 = vadd.f32 %v2982_v23, %v2978_v26  ;;  %v2991_v12 = vadd.f32 %v2988_v29, %v2982_v23  ;;  %v2984_v13 = vadd.f32 %v2982_v23, %v2977_v17  ;;  %v2990_v25 = vadd.f32 %v2987_v18, %v2982_v23  ;;  %v3910_v26 = vld [vmem:[%s7590_s11 + $0x110] sm:$0xff]  ;;  %v3909_v29 = vld [vmem:[%s7590_s11 + $0x108] sm:$0xff] }
 0x5a8   :  { %v2983_v32 = vadd.f32 %v2982_v23, %v2976_v0  ;;  %v2989_v42 = vadd.f32 %v2986_v51, %v2982_v23  ;;  %v3898_v23 = vld [vmem:[%s7590_s11 + $0xb8] sm:$0xff]  ;;  %v3897_v18 = vld [vmem:[%s7590_s11 + $0xb0] sm:$0xff]  ;;  %v3908_v0 = vld [vmem:[%s7590_s11 + $0x100] sm:$0xff] }
 0x5a9   :  { %v2994_v60 = vmax.f32 %v2985_v20, %v2991_v12  ;;  %v2993_v41 = vmax.f32 %v2984_v13, %v2990_v25  ;;  %v3896_v51 = vld [vmem:[%s7590_s11 + $0xa8] sm:$0xff]  ;;  %v3907_v20 = vld [vmem:[%s7590_s11 + $0xf8] sm:$0xff]  ;;  %v3895_v13 = vld [vmem:[%s7590_s11 + $0xa0] sm:$0xff] }
 0x5aa   :  { %v2992_v58 = vmax.f32 %v2983_v32, %v2989_v42  ;;  %v3906_v42 = vld [vmem:[%s7590_s11 + $0xf0] sm:$0xff] }
 0x5ab   :  { %5201 = vmatpush3.msk.msra.mxu0 %vm57_vm2, %v2994_v60 }
 0x5ac   :  { %5202 = vmatprep.subr.mxu0 %v5363_v2 }
 0x5ad   :  { %5203 = vmatpush3.msra.mxu0 %v2993_v41 }
 0x5ae   :  { %5204 = vmatprep.subr.mxu0 %v5363_v2 }
 0x5af   :  { %5205 = vmatpush3.msra.mxu0 %v2992_v58 }
 0x5b0   :  { %5207 = vmatmul.mubr.msk.f32.vlgmr.msra.gmra.mxu0 %vm2998_vm13, %v2995_v55  ;;  %5238 = vmatprep.subr.mxu0 %v5363_v2  ;;  %v3926_v55 = vld [vmem:[%s7590_s11 + $0x188] sm:$0xff] }
 0x5b1   :  { %5209 = vmatprep.mubr.msk.f32.mxu0 %vm5364_vm5, %v5363_v2  ;;  %5239 = vmatpush3.msra.mxu0 %v3893_v34  ;;  %v3925_v34 = vld [vmem:[%s7590_s11 + $0x180] sm:$0xff] }
 0x5b2   :  { %5240 = vmatprep.subr.mxu0 %v5363_v2 }
 0x5b3   :  { %5241 = vmatpush3.msra.mxu0 %v3892_v53  ;;  %v3924_v53 = vld [vmem:[%s7590_s11 + $0x178] sm:$0xff] }
 0x5b4   :  { %5210 = vmatmul.mubr.msk.f32.gmra.mxu0 %vm2998_vm13, %v2996_v54  ;;  %5242 = vmatprep.subr.mxu0 %v5363_v2  ;;  %v3923_v54 = vld [vmem:[%s7590_s11 + $0x170] sm:$0xff] }
 0x5b5   :  { %5212 = vmatprep.mubr.msk.f32.mxu0 %vm5364_vm5, %v5363_v2  ;;  %5243 = vmatpush3.msra.mxu0 %v3891_v10  ;;  %v3920_v10 = vld [vmem:[%s7590_s11 + $0x158] sm:$0xff] }
 0x5b6   :  { %5244 = vmatprep.subr.mxu0 %v5363_v2 }
 0x5b7   :  { %5245 = vmatpush3.msra.mxu0 %v3890_v5  ;;  %v3918_v5 = vld [vmem:[%s7590_s11 + $0x148] sm:$0xff] }
 0x5b8   :  { %5213 = vmatmul.mubr.msk.f32.gmra.mxu0 %vm2998_vm13, %v2997_v14  ;;  %5246 = vmatprep.subr.mxu0 %v5363_v2  ;;  %v3922_v14 = vld [vmem:[%s7590_s11 + $0x168] sm:$0xff] }
 0x5b9   :  { %5258 = vmatprep.mubr.msk.f32.mxu0 %vm5364_vm5, %v5363_v2  ;;  %5247 = vmatpush3.msra.mxu0 %v3889_v45 }
 0x5ba   :  { %5248 = vmatprep.subr.mxu0 %v5363_v2 }
 0x5bb   :  { %5249 = vmatpush3.msra.mxu0 %v3888_v24 }
 0x5bc   :  { %5250 = vmatprep.subr.mxu0 %v5363_v2 }
 0x5bd   :  { %5251 = vmatpush3.msra.mxu0 %v3887_v19 }
 0x5be   :  { %5252 = vmatprep.subr.mxu0 %v5363_v2 }
 0x5bf   :  { %5253 = vmatpush3.msra.mxu0 %v3886_v21 }
 0x5c0   :  { %5254 = vmatprep.subr.mxu0 %v5363_v2 }
 0x5c1   :  { %5255 = vmatpush3.msra.mxu0 %v3885_v43 }
 0x5c2   :  { %5256 = vmatprep.subr.mxu0 %v5363_v2 }
 0x5c3   :  { %5257 = vmatpush3.msra.mxu0 %v3884_v49 }
 0x5c4   :  { %5284 = vmatprep.subr.mxu0 %v5363_v2 }
 0x670   :  { %v3077_v1 = vpop.f32.mrf.mxu0 }
 0x672   :  { %v5208_v8 = vpop.f32.mrf.mxu0 }
 0x674   :  { %v3082_v59 = vpop.f32.mrf.mxu0 }
 0x675   :  { %v3093_v61 = vrot.slane %v3082_v59, 2 }
 0x676   :  { %v5211_v16 = vpop.f32.mrf.mxu0 }
 0x678   :  { %v3087_v37 = vpop.f32.mrf.mxu0 }
 0x679   :  { %v3094_v62 = vrot.slane %v3087_v37, 2 }
 0x67a   :  { %v5214_v63 = vpop.f32.mrf.mxu0 }
 0x67b   :  { %v3095_v46 = vsel %vm571_vm0, %v3093_v61, %v3094_v62  ;;  %v7486_v17 = vmax.f32 %v3082_v59, %v3094_v62 }
 0x67c   :  { %v7422_v4 = vmax.f32 %v3077_v1, %v3095_v46 }
 0x67d   :  { %v3378_v12 = vrot.slane %v7486_v17, 7 }
 0x67e   :  { %v3102_v6 = vrot.slane %v7422_v4, 4  ;;  %v3195_v7 = vrot.slane %v7422_v4, 1  ;;  %v3197_v27 = vrot.slane %v7422_v4, 5  ;;  %v3285_v25 = vrot.slane %v7422_v4, 2 }
 0x67f   :  { %v3287_v60 = vrot.slane %v7422_v4, 6  ;;  %v3375_v32 = vrot.slane %v7422_v4, 3 }
 0x680   :  { %v3104_v35 = vsel %vm854_vm8, %v7422_v4, %v3102_v6  ;;  %v3199_v9 = vsel %vm854_vm8, %v3195_v7, %v3197_v27  ;;  %v3466_v45 = vsel %vm854_vm8, %v3102_v6, %v7486_v17 }
 0x681   :  { %5236 = vmatmul.mubr.msk.f32.vlgmr.msra.gmra.mxu1 %vm2816_vm11, %v3104_v35  ;;  %5259 = vmatmul.mubr.msk.f32.vlgmr.msra.gmra.mxu0 %vm2816_vm11, %v3199_v9  ;;  %v3289_v41 = vsel %vm854_vm8, %v3285_v25, %v3287_v60  ;;  %v3380_v58 = vsel %vm854_vm8, %v3375_v32, %v3378_v12 }
 0x682   :  { %5262 = vmatpush3.msra.mxu1 %v3904_v50  ;;  %5285 = vmatpush3.msra.mxu0 %v3915_v48 }
 0x683   :  { %5263 = vmatprep.subr.mxu1 %v5363_v2  ;;  %5286 = vmatprep.subr.mxu0 %v5363_v2 }
 0x684   :  { %5264 = vmatpush3.msra.mxu1 %v3903_v52  ;;  %5287 = vmatpush3.msra.mxu0 %v3914_v38 }
 0x685   :  { %5265 = vmatprep.subr.mxu1 %v5363_v2  ;;  %5288 = vmatprep.subr.mxu0 %v5363_v2 }
 0x686   :  { %5266 = vmatpush3.msra.mxu1 %v3902_v15  ;;  %5289 = vmatpush3.msra.mxu0 %v3913_v57 }
 0x687   :  { %5267 = vmatprep.subr.mxu1 %v5363_v2  ;;  %5290 = vmatprep.subr.mxu0 %v5363_v2 }
 0x688   :  { %5268 = vmatpush3.msra.mxu1 %v3901_v36  ;;  %5291 = vmatpush3.msra.mxu0 %v3912_v22 }
 0x689   :  { %5269 = vmatprep.subr.mxu1 %v5363_v2  ;;  %5292 = vmatprep.subr.mxu0 %v5363_v2 }
 0x68a   :  { %5270 = vmatpush3.msra.mxu1 %v3900_v56  ;;  %5293 = vmatpush3.msra.mxu0 %v3911_v33 }
 0x68b   :  { %5271 = vmatprep.subr.mxu1 %v5363_v2  ;;  %5294 = vmatprep.subr.mxu0 %v5363_v2 }
 0x68c   :  { %5272 = vmatpush3.msra.mxu1 %v3899_v31  ;;  %5295 = vmatpush3.msra.mxu0 %v3910_v26 }
 0x68d   :  { %5273 = vmatprep.subr.mxu1 %v5363_v2  ;;  %5296 = vmatprep.subr.mxu0 %v5363_v2 }
 0x68e   :  { %5274 = vmatpush3.msra.mxu1 %v3898_v23  ;;  %5297 = vmatpush3.msra.mxu0 %v3909_v29 }
 0x68f   :  { %5275 = vmatprep.subr.mxu1 %v5363_v2  ;;  %5298 = vmatprep.subr.mxu0 %v5363_v2 }
 0x690   :  { %5276 = vmatpush3.msra.mxu1 %v3897_v18  ;;  %5299 = vmatpush3.msra.mxu0 %v3908_v0 }
 0x691   :  { %5277 = vmatprep.subr.mxu1 %v5363_v2  ;;  %5300 = vmatprep.subr.mxu0 %v5363_v2 }
 0x692   :  { %5278 = vmatpush3.msra.mxu1 %v3896_v51  ;;  %5301 = vmatpush3.msra.mxu0 %v3907_v20 }
 0x693   :  { %5279 = vmatprep.subr.mxu1 %v5363_v2  ;;  %5302 = vmatprep.subr.mxu0 %v5363_v2 }
 0x694   :  { %5280 = vmatpush3.msra.mxu1 %v3895_v13  ;;  %5281 = vmatprep.mubr.msk.f32.mxu1 %vm5364_vm5, %v5363_v2 }
 0x695   :  { %5303 = vmatpush3.msra.mxu0 %v3906_v42  ;;  %5304 = vmatprep.mubr.msk.f32.mxu0 %vm5364_vm5, %v5363_v2 }
 0x696   :  { %5282 = vmatmul.mubr.msk.f32.vlgmr.msra.gmra.mxu1 %vm2816_vm11, %v3289_v41  ;;  %5305 = vmatmul.mubr.msk.f32.vlgmr.msra.gmra.mxu0 %vm2816_vm11, %v3380_v58 }
 0x697   :  { %5307 = vmatprep.subr.mxu1 %v5363_v2  ;;  %5327 = vmatprep.mubr.msk.f32.mxu1 %vm5364_vm5, %v5363_v2 }
 0x698   :  { %5308 = vmatpush3.msra.mxu1 %v3926_v55 }
 0x699   :  { %5309 = vmatprep.subr.mxu1 %v5363_v2 }
 0x69a   :  { %5310 = vmatpush3.msra.mxu1 %v3925_v34 }
 0x69b   :  { %5311 = vmatprep.subr.mxu1 %v5363_v2 }
 0x69c   :  { %5312 = vmatpush3.msra.mxu1 %v3924_v53 }
 0x69d   :  { %5313 = vmatprep.subr.mxu1 %v5363_v2 }
 0x69e   :  { %5314 = vmatpush3.msra.mxu1 %v3923_v54 }
 0x69f   :  { %5315 = vmatprep.subr.mxu1 %v5363_v2 }
 0x6a0   :  { %5316 = vmatpush3.msra.mxu1 %v3922_v14 }
 0x6a1   :  { %5317 = vmatprep.subr.mxu1 %v5363_v2 }
 0x6a2   :  { %5318 = vmatpush3.msra.mxu1 %v3921_v39 }
 0x6a3   :  { %5319 = vmatprep.subr.mxu1 %v5363_v2 }
 0x6a4   :  { %5320 = vmatpush3.msra.mxu1 %v3920_v10 }
 0x6a5   :  { %5321 = vmatprep.subr.mxu1 %v5363_v2 }
 0x6a6   :  { %5322 = vmatpush3.msra.mxu1 %v3919_v30 }
 0x6a7   :  { %5323 = vmatprep.subr.mxu1 %v5363_v2 }
 0x6a8   :  { %5324 = vmatpush3.msra.mxu1 %v3918_v5 }
 0x6a9   :  { %5325 = vmatprep.subr.mxu1 %v5363_v2  ;;  %v3883_v2 = vld [vmem:[%s7591_s12] ss:$0 sm:$0xff] }
 0x6aa   :  { %5326 = vmatpush3.msra.mxu1 %v3917_v3 }
 0x6ab   :  { %5328 = vmatmul.mubr.msk.f32.vlgmr.msra.gmra.mxu1 %vm2816_vm11, %v3466_v45 }
 0x741   :  { %v3184_v11 = vpop.f32.mrf.mxu1  ;;  %v3280_v24 = vpop.f32.mrf.mxu0 }
 0x742   :  { %v3194_v47 = vadd.f32 %v3883_v2, %v3184_v11 }
 0x743   :  { %v5237_v44 = vpop.f32.mrf.mxu1  ;;  %v5260_v19 = vpop.f32.mrf.mxu0 }
 0x744   :  { %v3284_v49 = vadd.f32 %v3280_v24, %v3194_v47 }
 0x756   :  { %v3370_v28 = vpop.f32.mrf.mxu1  ;;  %v3461_v21 = vpop.f32.mrf.mxu0 }
 0x757   :  { %v3374_v1 = vadd.f32 %v3370_v28, %v3284_v49 }
 0x758   :  { %v5283_v40 = vpop.f32.mrf.mxu1  ;;  %v5306_v43 = vpop.f32.mrf.mxu0 }
 0x759   :  { %v3465_v8 = vadd.f32 %v3461_v21, %v3374_v1 }
 0x76b   :  { %v3547_v59 = vpop.f32.mrf.mxu1 }
 0x76c   :  { %v3551_v16 = vadd.f32 %v3547_v59, %v3465_v8 }
 0x76d   :  { %v5329_v37 = vpop.f32.mrf.mxu1 }
 0x76e   :  { %v3928_v61 = vmul.f32 -1.442695, %v3551_v16 }
 0x770   :  { %5337 = vpow2.f32 %v3928_v61 }
 0x77d   :  { %v5338_v62 = vpop.eup %5337 }
 0x77e   :  { %v3555_v63 = vadd.f32 1.0, %v5338_v62 }
 0x780   :  { %5339 = vrcp.f32 %v3555_v63 }
 0x78d   :  { %v5340_v46 = vpop.eup %5339 }
 0x78e   :  { %3559 = vst.msk [vmem:[#allocation2] sm:$0x3] %vm3558_vm14, %v5340_v46 }
 0x78f   :  { %5352 = shalt.err (!%p5349_p4)
}
 0x790   :  { %3569 = dma.vmem_to_hbm [thread:$0]  %s3567_s2, 32, %s7592_s13, [#allocation3]  }
 0x791   :  { %5361 = dma.done.wait [#allocation3], 32  }
 0x792   :  { %5362 = vsyncadd [#allocation3], 4294967264 }
 0x793   :  { %3573 = vsyncpa [#allocation3], 1 }

</bundles_post_ra>
